<compile_context>
chip_gen: v6e
topology: v6e:2x2x1
jax: 0.10.0
libtpu: 0.0.40
codegen_flags: <defaults>
</compile_context>

<pallas_src>
import functools
import math

import jax
import jax.numpy as jnp
from jax import lax
from jax.experimental import pallas as pl
from jax.experimental.pallas import tpu as pltpu


# ----------------------------------------------------------------------------
# helpers
# ----------------------------------------------------------------------------
def _full_spec(shape):
    """Whole-array block (grid=(1,)): block_shape == array shape."""
    return pl.BlockSpec(shape, lambda i: (0,) * len(shape))


def _layernorm(x, g, b, eps=1e-5):
    mean = jnp.mean(x, axis=-1, keepdims=True)
    var = jnp.mean(jnp.square(x - mean), axis=-1, keepdims=True)
    return (x - mean) * lax.rsqrt(var + eps) * g + b


_ARB = pltpu.CompilerParams(dimension_semantics=("arbitrary",))


# ----------------------------------------------------------------------------
# Kernel 1: input stage  (linear_input + positional encoding + embed_skeleton)
#   h_seq[b] = input_seq[b] @ W_in[:Din] + input_skel[b] @ W_in[Din:] + b_in + PE
#   tok[b]   = target_skel[b] @ W_emb + b_emb
# (the skeleton-broadcast + feature-concat + linear collapse into two matmuls)
# ----------------------------------------------------------------------------
def _make_input_stage_kernel(B, Din):
    def kernel(seq_ref, iskel_ref, tskel_ref, pe_ref,
               win_ref, bin_ref, wemb_ref, bemb_ref,
               tok_ref, hseq_ref):
        win = win_ref[...]
        w_seq = win[:Din, :]
        w_skel = win[Din:, :]
        b_in = bin_ref[...]
        pe = pe_ref[...]
        wemb = wemb_ref[...]
        bemb = bemb_ref[...]
        for b in range(B):
            xb = seq_ref[b]                                   # (S, Din)
            sk = iskel_ref[b]                                 # (1, Dsk)
            h = (jnp.dot(xb, w_seq, preferred_element_type=jnp.float32)
                 + jnp.dot(sk, w_skel, preferred_element_type=jnp.float32)
                 + b_in + pe)                                 # (S, D)
            tg = tskel_ref[b]                                 # (1, Dsk)
            tok = jnp.dot(tg, wemb, preferred_element_type=jnp.float32) + bemb
            tok_ref[b] = tok
            hseq_ref[b] = h
    return kernel


def input_stage(params, pe_table, input_seq, input_skeleton, target_skeleton):
    B, S, Din = input_seq.shape
    Dsk = input_skeleton.shape[-1]
    D = params["W_in"].shape[1]
    tok, hseq = pl.pallas_call(
        _make_input_stage_kernel(B, Din),
        out_shape=(jax.ShapeDtypeStruct((B, 1, D), jnp.float32),
                   jax.ShapeDtypeStruct((B, S, D), jnp.float32)),
        grid=(1,),
        in_specs=[
            _full_spec((B, S, Din)),
            _full_spec((B, 1, Dsk)),
            _full_spec((B, 1, Dsk)),
            _full_spec((S, D)),
            _full_spec((Din + Dsk, D)),
            _full_spec((1, D)),
            _full_spec((Dsk, D)),
            _full_spec((1, D)),
        ],
        out_specs=(_full_spec((B, 1, D)), _full_spec((B, S, D))),
        compiler_params=_ARB,
    )(input_seq, input_skeleton, target_skeleton, pe_table,
      params["W_in"], params["b_in"], params["W_emb"], params["b_emb"])
    # prepend target-skeleton token (single tiny XLA concat)
    return jnp.concatenate([tok, hseq], axis=1)               # (B, S+1, D)


# ----------------------------------------------------------------------------
# Kernel 2: fully fused post-LN encoder layer
# ----------------------------------------------------------------------------
def _make_encoder_layer_kernel(B, T, D, H, Dh, with_attn):
    scale = 1.0 / math.sqrt(Dh)

    def kernel(*refs):
        (x_ref, wqkv_ref, bqkv_ref, wo_ref, bo_ref,
         ln1g_ref, ln1b_ref, w1_ref, b1_ref, w2_ref, b2_ref,
         ln2g_ref, ln2b_ref) = refs[:13]
        if with_attn:
            y_ref, attn_ref = refs[13], refs[14]
        else:
            y_ref = refs[13]
            attn_ref = None

        wqkv = wqkv_ref[...]
        bqkv = bqkv_ref[...]
        wo = wo_ref[...]
        bo = bo_ref[...]
        g1, be1 = ln1g_ref[...], ln1b_ref[...]
        w1, b1 = w1_ref[...], b1_ref[...]
        w2, b2 = w2_ref[...], b2_ref[...]
        g2, be2 = ln2g_ref[...], ln2b_ref[...]

        for b in range(B):
            xb = x_ref[b]                                               # (T, D)
            # fused Q/K/V projection: one MXU pass with N = 3*D
            qkv = jnp.dot(xb, wqkv, preferred_element_type=jnp.float32) + bqkv  # (T, 3D)

            attn_out = jnp.zeros((T, D), jnp.float32)
            for hd in range(H):
                qh = qkv[:, hd * Dh:(hd + 1) * Dh]                      # (T, Dh)
                kh = qkv[:, D + hd * Dh:D + (hd + 1) * Dh]
                vh = qkv[:, 2 * D + hd * Dh:2 * D + (hd + 1) * Dh]
                # contract last dims -> no explicit K transpose
                s = lax.dot_general(qh, kh, (((1,), (1,)), ((), ())),
                                    preferred_element_type=jnp.float32) * scale
                m = jnp.max(s, axis=-1, keepdims=True)
                p = jnp.exp(s - m)
                p = p * pl.reciprocal(jnp.sum(p, axis=-1, keepdims=True),
                                      approx=True)
                if with_attn:
                    attn_ref[b, hd, :, :] = p
                ctx_h = jnp.dot(p, vh, preferred_element_type=jnp.float32)       # (T, Dh)
                # ctx @ Wo == sum_h ctx_h @ Wo[h*Dh:(h+1)*Dh]  (no head concat)
                attn_out = attn_out + jnp.dot(
                    ctx_h, wo[hd * Dh:(hd + 1) * Dh, :],
                    preferred_element_type=jnp.float32)

            attn_out = attn_out + bo
            h1 = _layernorm(attn_out + xb, g1, be1)                     # Add & LN1
            ff = jnp.maximum(
                jnp.dot(h1, w1, preferred_element_type=jnp.float32) + b1, 0.0)
            ff = jnp.dot(ff, w2, preferred_element_type=jnp.float32) + b2
            h2 = _layernorm(ff + h1, g2, be2)                           # Add & LN2
            y_ref[b] = h2
    return kernel


def encoder_layer_fused(lp, x, nr_heads, return_attn):
    B, T, D = x.shape
    H = nr_heads
    Dh = D // H
    Di = lp["W1"].shape[1]

    in_specs = [
        _full_spec((B, T, D)),
        _full_spec((D, 3 * D)), _full_spec((1, 3 * D)),
        _full_spec((D, D)), _full_spec((1, D)),
        _full_spec((1, D)), _full_spec((1, D)),
        _full_spec((D, Di)), _full_spec((1, Di)),
        _full_spec((Di, D)), _full_spec((1, D)),
        _full_spec((1, D)), _full_spec((1, D)),
    ]
    args = (x, lp["Wqkv"], lp["bqkv"], lp["Wo"], lp["bo"],
            lp["ln1_g"], lp["ln1_b"], lp["W1"], lp["b1"], lp["W2"], lp["b2"],
            lp["ln2_g"], lp["ln2_b"])

    if return_attn:
        out_shape = (jax.ShapeDtypeStruct((B, T, D), jnp.float32),
                     jax.ShapeDtypeStruct((B, H, T, T), jnp.float32))
        out_specs = (_full_spec((B, T, D)), _full_spec((B, H, T, T)))
    else:
        out_shape = jax.ShapeDtypeStruct((B, T, D), jnp.float32)
        out_specs = _full_spec((B, T, D))

    res = pl.pallas_call(
        _make_encoder_layer_kernel(B, T, D, H, Dh, return_attn),
        out_shape=out_shape,
        grid=(1,),
        in_specs=in_specs,
        out_specs=out_specs,
        compiler_params=_ARB,
    )(*args)

    if return_attn:
        y, attn = res
        return y, attn
    return res, None


# ----------------------------------------------------------------------------
# Kernel 3: output head  linear_output2( LeakyReLU_0.1( linear_output(reps) ) )
# ----------------------------------------------------------------------------
def _make_output_head_kernel(B):
    def kernel(reps_ref, wout_ref, bout_ref, wout2_ref, bout2_ref, o_ref):
        w1 = wout_ref[...]
        b1 = bout_ref[...]
        w2 = wout2_ref[...]
        b2 = bout2_ref[...]
        for b in range(B):
            r = reps_ref[b]                                            # (S, D)
            o = jnp.dot(r, w1, preferred_element_type=jnp.float32) + b1
            o = jnp.where(o >= 0.0, o, 0.1 * o)          # nn.LeakyReLU(0.1)
            o = jnp.dot(o, w2, preferred_element_type=jnp.float32) + b2
            o_ref[b] = o
    return kernel


def output_head(params, reps):
    B, S, D = reps.shape
    Din = params["W_out"].shape[1]
    return pl.pallas_call(
        _make_output_head_kernel(B),
        out_shape=jax.ShapeDtypeStruct((B, S, Din), jnp.float32),
        grid=(1,),
        in_specs=[_full_spec((B, S, D)),
                  _full_spec((D, Din)), _full_spec((1, Din)),
                  _full_spec((Din, Din)), _full_spec((1, Din))],
        out_specs=_full_spec((B, S, Din)),
        compiler_params=_ARB,
    )(reps, params["W_out"], params["b_out"], params["W_out2"], params["b_out2"])


# ----------------------------------------------------------------------------
# Model glue: parameter setup, PE table, forward
# ----------------------------------------------------------------------------
def sinusoidal_pe(max_len, d_model):
    pos = jnp.arange(max_len, dtype=jnp.float32)[:, None]
    div = jnp.exp(jnp.arange(0, d_model, 2, dtype=jnp.float32)
                  * (-math.log(10000.0) / d_model))
    pe = jnp.zeros((max_len, d_model), jnp.float32)
    pe = pe.at[:, 0::2].set(jnp.sin(pos * div))
    pe = pe.at[:, 1::2].set(jnp.cos(pos * div))
    return pe


def init_linear(key, d_in, d_out, scale=0.05):
    kw, kb = jax.random.split(key)
    w = jax.random.normal(kw, (d_in, d_out), jnp.float32) * scale
    b = jax.random.normal(kb, (1, d_out), jnp.float32) * scale
    return w, b


def init_params(key, nr_layers, dim_input, dim_model, dim_skeleton, dim_inter):
    keys = jax.random.split(key, 5 + nr_layers)
    p = {}
    p["W_in"], p["b_in"] = init_linear(keys[0], dim_input + dim_skeleton, dim_model)
    p["W_out"], p["b_out"] = init_linear(keys[1], dim_model, dim_input)
    p["W_out2"], p["b_out2"] = init_linear(keys[2], dim_input, dim_input)
    p["W_emb"], p["b_emb"] = init_linear(keys[3], dim_skeleton, dim_model)
    layers = []
    for l in range(nr_layers):
        lk = jax.random.split(keys[5 + l], 4)
        lp = {}
        # fused Q/K/V projection weights: (D, 3D), (1, 3D)
        lp["Wqkv"], lp["bqkv"] = init_linear(lk[0], dim_model, 3 * dim_model)
        lp["Wo"], lp["bo"] = init_linear(lk[1], dim_model, dim_model)
        lp["W1"], lp["b1"] = init_linear(lk[2], dim_model, dim_inter)
        lp["W2"], lp["b2"] = init_linear(lk[3], dim_inter, dim_model)
        lp["ln1_g"] = jnp.ones((1, dim_model), jnp.float32)
        lp["ln1_b"] = jnp.zeros((1, dim_model), jnp.float32)
        lp["ln2_g"] = jnp.ones((1, dim_model), jnp.float32)
        lp["ln2_b"] = jnp.zeros((1, dim_model), jnp.float32)
        layers.append(lp)
    p["layers"] = layers
    return p


@functools.partial(jax.jit, static_argnames=("nr_heads",))
def retargeter_encoder_forward(params, pe_table, input_seq, input_skeleton,
                               target_skeleton, nr_heads):
    h = input_stage(params, pe_table, input_seq, input_skeleton, target_skeleton)

    attn = None
    n_layers = len(params["layers"])
    for li, lp in enumerate(params["layers"]):
        # only the final layer's attention is returned by the module; skip
        # materializing it for earlier layers (dead HBM writes otherwise).
        h, a = encoder_layer_fused(lp, h, nr_heads,
                                   return_attn=(li == n_layers - 1))
        if a is not None:
            attn = a

    encoder_reps = h[:, 1:, :]                                 # (B, S, Dm)
    encoder_output = output_head(params, encoder_reps)         # (B, S, Din)
    return encoder_output, encoder_reps, attn


# ----------------------------------------------------------------------------
# Main
# ----------------------------------------------------------------------------
if __name__ == "__main__":
    nr_layers = 2
    dim_input = 16
    dim_model = 32
    seq_len = 8
    dim_skeleton = 8
    nr_heads = 4
    dim_inter = 64
    batch = 2

    key = jax.random.PRNGKey(0)
    k_par, k_seq, k_iskel, k_tskel = jax.random.split(key, 4)

    params = init_params(k_par, nr_layers, dim_input, dim_model,
                         dim_skeleton, dim_inter)
    pe_table = sinusoidal_pe(max_len=seq_len, d_model=dim_model)

    input_seq = jax.random.normal(k_seq, (batch, seq_len, dim_input), jnp.float32)
    input_skeleton = jax.random.normal(k_iskel, (batch, 1, dim_skeleton), jnp.float32)
    target_skeleton = jax.random.normal(k_tskel, (batch, 1, dim_skeleton), jnp.float32)

    out, reps, attn = retargeter_encoder_forward(
        params, pe_table, input_seq, input_skeleton, target_skeleton, nr_heads)

    jax.block_until_ready((out, reps, attn))
    assert out.shape == (batch, seq_len, dim_input)
    assert reps.shape == (batch, seq_len, dim_model)
    assert attn.shape == (batch, nr_heads, seq_len + 1, seq_len + 1)
    assert bool(jnp.all(jnp.isfinite(out)))
    print("KERNEL_OK")
</pallas_src>

<mosaic_0001>
module attributes {stable_mosaic.version = 11 : i64} {
  func.func @kernel(%arg0: i32, %arg1: memref<2x8x16xf32, #tpu.memory_space<vmem>>, %arg2: memref<2x1x8xf32, #tpu.memory_space<vmem>>, %arg3: memref<2x1x8xf32, #tpu.memory_space<vmem>>, %arg4: memref<8x32xf32, #tpu.memory_space<vmem>>, %arg5: memref<24x32xf32, #tpu.memory_space<vmem>>, %arg6: memref<1x32xf32, #tpu.memory_space<vmem>>, %arg7: memref<8x32xf32, #tpu.memory_space<vmem>>, %arg8: memref<1x32xf32, #tpu.memory_space<vmem>>, %arg9: memref<2x1x32xf32, #tpu.memory_space<vmem>>, %arg10: memref<2x8x32xf32, #tpu.memory_space<vmem>>) attributes {dimension_semantics = [#tpu.dimension_semantics<arbitrary>], iteration_bounds = array<i64: 1>, scalar_prefetch = 0 : i64, scratch_operands = 0 : i64, tpu.core_type = #tpu.core_type<tc>, window_params = [{pipeline_mode = #tpu.pipeline_mode<synchronous>, transform_indices = @transform_0, window_bounds = array<i64: 2, 8, 16>}, {pipeline_mode = #tpu.pipeline_mode<synchronous>, transform_indices = @transform_1, window_bounds = array<i64: 2, 1, 8>}, {pipeline_mode = #tpu.pipeline_mode<synchronous>, transform_indices = @transform_2, window_bounds = array<i64: 2, 1, 8>}, {pipeline_mode = #tpu.pipeline_mode<synchronous>, transform_indices = @transform_3, window_bounds = array<i64: 8, 32>}, {pipeline_mode = #tpu.pipeline_mode<synchronous>, transform_indices = @transform_4, window_bounds = array<i64: 24, 32>}, {pipeline_mode = #tpu.pipeline_mode<synchronous>, transform_indices = @transform_5, window_bounds = array<i64: 1, 32>}, {pipeline_mode = #tpu.pipeline_mode<synchronous>, transform_indices = @transform_6, window_bounds = array<i64: 8, 32>}, {pipeline_mode = #tpu.pipeline_mode<synchronous>, transform_indices = @transform_7, window_bounds = array<i64: 1, 32>}, {pipeline_mode = #tpu.pipeline_mode<synchronous>, transform_indices = @transform_8, window_bounds = array<i64: 2, 1, 32>}, {pipeline_mode = #tpu.pipeline_mode<synchronous>, transform_indices = @transform_9, window_bounds = array<i64: 2, 8, 32>}]} {
    %c0 = arith.constant 0 : index
    %c0_0 = arith.constant 0 : index
    %0 = vector.load %arg5[%c0, %c0_0] : memref<24x32xf32, #tpu.memory_space<vmem>>, vector<24x32xf32>
    %1 = vector.extract_strided_slice %0 {offsets = [0, 0], sizes = [16, 32], strides = [1, 1]} : vector<24x32xf32> to vector<16x32xf32>
    %2 = vector.extract_strided_slice %0 {offsets = [16, 0], sizes = [8, 32], strides = [1, 1]} : vector<24x32xf32> to vector<8x32xf32>
    %c0_1 = arith.constant 0 : index
    %c0_2 = arith.constant 0 : index
    %3 = vector.load %arg6[%c0_1, %c0_2] : memref<1x32xf32, #tpu.memory_space<vmem>>, vector<1x32xf32>
    %c0_3 = arith.constant 0 : index
    %c0_4 = arith.constant 0 : index
    %4 = vector.load %arg4[%c0_3, %c0_4] : memref<8x32xf32, #tpu.memory_space<vmem>>, vector<8x32xf32>
    %c0_5 = arith.constant 0 : index
    %c0_6 = arith.constant 0 : index
    %5 = vector.load %arg7[%c0_5, %c0_6] : memref<8x32xf32, #tpu.memory_space<vmem>>, vector<8x32xf32>
    %c0_7 = arith.constant 0 : index
    %c0_8 = arith.constant 0 : index
    %6 = vector.load %arg8[%c0_7, %c0_8] : memref<1x32xf32, #tpu.memory_space<vmem>>, vector<1x32xf32>
    %c0_9 = arith.constant 0 : index
    %c0_10 = arith.constant 0 : index
    %c0_11 = arith.constant 0 : index
    %7 = vector.load %arg1[%c0_9, %c0_10, %c0_11] : memref<2x8x16xf32, #tpu.memory_space<vmem>>, vector<1x8x16xf32>
    %8 = vector.shape_cast %7 : vector<1x8x16xf32> to vector<8x16xf32>
    %c0_12 = arith.constant 0 : index
    %c0_13 = arith.constant 0 : index
    %c0_14 = arith.constant 0 : index
    %9 = vector.load %arg2[%c0_12, %c0_13, %c0_14] : memref<2x1x8xf32, #tpu.memory_space<vmem>>, vector<1x1x8xf32>
    %10 = vector.shape_cast %9 : vector<1x1x8xf32> to vector<1x8xf32>
    %cst = arith.constant dense<0.000000e+00> : vector<8x32xf32>
    %11 = tpu.matmul %8, %1, %cst {dimension_numbers = #tpu.dot_dimension_numbers<[1], [0], [0], [1], [0, 0, 1, 1], [], []>} : vector<8x16xf32>, vector<16x32xf32>, vector<8x32xf32> -> vector<8x32xf32>
    %cst_15 = arith.constant dense<0.000000e+00> : vector<1x32xf32>
    %12 = tpu.matmul %10, %2, %cst_15 {dimension_numbers = #tpu.dot_dimension_numbers<[1], [0], [0], [1], [0, 0, 1, 1], [], []>} : vector<1x8xf32>, vector<8x32xf32>, vector<1x32xf32> -> vector<1x32xf32>
    %13 = vector.broadcast %12 : vector<1x32xf32> to vector<8x32xf32>
    %14 = arith.addf %11, %13 : vector<8x32xf32>
    %15 = vector.broadcast %3 : vector<1x32xf32> to vector<8x32xf32>
    %16 = arith.addf %14, %15 : vector<8x32xf32>
    %17 = arith.addf %16, %4 : vector<8x32xf32>
    %c0_16 = arith.constant 0 : index
    %c0_17 = arith.constant 0 : index
    %c0_18 = arith.constant 0 : index
    %18 = vector.load %arg3[%c0_16, %c0_17, %c0_18] : memref<2x1x8xf32, #tpu.memory_space<vmem>>, vector<1x1x8xf32>
    %19 = vector.shape_cast %18 : vector<1x1x8xf32> to vector<1x8xf32>
    %cst_19 = arith.constant dense<0.000000e+00> : vector<1x32xf32>
    %20 = tpu.matmul %19, %5, %cst_19 {dimension_numbers = #tpu.dot_dimension_numbers<[1], [0], [0], [1], [0, 0, 1, 1], [], []>} : vector<1x8xf32>, vector<8x32xf32>, vector<1x32xf32> -> vector<1x32xf32>
    %21 = arith.addf %20, %6 : vector<1x32xf32>
    %c0_20 = arith.constant 0 : index
    %c0_21 = arith.constant 0 : index
    %c0_22 = arith.constant 0 : index
    %22 = vector.load %arg9[%c0_20, %c0_21, %c0_22] : memref<2x1x32xf32, #tpu.memory_space<vmem>>, vector<1x1x32xf32>
    %23 = vector.shape_cast %22 : vector<1x1x32xf32> to vector<1x32xf32>
    %24 = vector.shape_cast %21 : vector<1x32xf32> to vector<1x1x32xf32>
    tpu.vector_store %arg9[%c0_20, %c0_21, %c0_22], %24 {strides = array<i32>} : memref<2x1x32xf32, #tpu.memory_space<vmem>>, vector<1x1x32xf32>,
    %c0_23 = arith.constant 0 : index
    %c0_24 = arith.constant 0 : index
    %c0_25 = arith.constant 0 : index
    %25 = vector.load %arg10[%c0_23, %c0_24, %c0_25] : memref<2x8x32xf32, #tpu.memory_space<vmem>>, vector<1x8x32xf32>
    %26 = vector.shape_cast %25 : vector<1x8x32xf32> to vector<8x32xf32>
    %27 = vector.shape_cast %17 : vector<8x32xf32> to vector<1x8x32xf32>
    tpu.vector_store %arg10[%c0_23, %c0_24, %c0_25], %27 {strides = array<i32>} : memref<2x8x32xf32, #tpu.memory_space<vmem>>, vector<1x8x32xf32>,
    %c1 = arith.constant 1 : index
    %c0_26 = arith.constant 0 : index
    %c0_27 = arith.constant 0 : index
    %28 = vector.load %arg1[%c1, %c0_26, %c0_27] : memref<2x8x16xf32, #tpu.memory_space<vmem>>, vector<1x8x16xf32>
    %29 = vector.shape_cast %28 : vector<1x8x16xf32> to vector<8x16xf32>
    %c1_28 = arith.constant 1 : index
    %c0_29 = arith.constant 0 : index
    %c0_30 = arith.constant 0 : index
    %30 = vector.load %arg2[%c1_28, %c0_29, %c0_30] : memref<2x1x8xf32, #tpu.memory_space<vmem>>, vector<1x1x8xf32>
    %31 = vector.shape_cast %30 : vector<1x1x8xf32> to vector<1x8xf32>
    %cst_31 = arith.constant dense<0.000000e+00> : vector<8x32xf32>
    %32 = tpu.matmul %29, %1, %cst_31 {dimension_numbers = #tpu.dot_dimension_numbers<[1], [0], [0], [1], [0, 0, 1, 1], [], []>} : vector<8x16xf32>, vector<16x32xf32>, vector<8x32xf32> -> vector<8x32xf32>
    %cst_32 = arith.constant dense<0.000000e+00> : vector<1x32xf32>
    %33 = tpu.matmul %31, %2, %cst_32 {dimension_numbers = #tpu.dot_dimension_numbers<[1], [0], [0], [1], [0, 0, 1, 1], [], []>} : vector<1x8xf32>, vector<8x32xf32>, vector<1x32xf32> -> vector<1x32xf32>
    %34 = vector.broadcast %33 : vector<1x32xf32> to vector<8x32xf32>
    %35 = arith.addf %32, %34 : vector<8x32xf32>
    %36 = vector.broadcast %3 : vector<1x32xf32> to vector<8x32xf32>
    %37 = arith.addf %35, %36 : vector<8x32xf32>
    %38 = arith.addf %37, %4 : vector<8x32xf32>
    %c1_33 = arith.constant 1 : index
    %c0_34 = arith.constant 0 : index
    %c0_35 = arith.constant 0 : index
    %39 = vector.load %arg3[%c1_33, %c0_34, %c0_35] : memref<2x1x8xf32, #tpu.memory_space<vmem>>, vector<1x1x8xf32>
    %40 = vector.shape_cast %39 : vector<1x1x8xf32> to vector<1x8xf32>
    %cst_36 = arith.constant dense<0.000000e+00> : vector<1x32xf32>
    %41 = tpu.matmul %40, %5, %cst_36 {dimension_numbers = #tpu.dot_dimension_numbers<[1], [0], [0], [1], [0, 0, 1, 1], [], []>} : vector<1x8xf32>, vector<8x32xf32>, vector<1x32xf32> -> vector<1x32xf32>
    %42 = arith.addf %41, %6 : vector<1x32xf32>
    %c1_37 = arith.constant 1 : index
    %c0_38 = arith.constant 0 : index
    %c0_39 = arith.constant 0 : index
    %43 = vector.load %arg9[%c1_37, %c0_38, %c0_39] : memref<2x1x32xf32, #tpu.memory_space<vmem>>, vector<1x1x32xf32>
    %44 = vector.shape_cast %43 : vector<1x1x32xf32> to vector<1x32xf32>
    %45 = vector.shape_cast %42 : vector<1x32xf32> to vector<1x1x32xf32>
    tpu.vector_store %arg9[%c1_37, %c0_38, %c0_39], %45 {strides = array<i32>} : memref<2x1x32xf32, #tpu.memory_space<vmem>>, vector<1x1x32xf32>,
    %c1_40 = arith.constant 1 : index
    %c0_41 = arith.constant 0 : index
    %c0_42 = arith.constant 0 : index
    %46 = vector.load %arg10[%c1_40, %c0_41, %c0_42] : memref<2x8x32xf32, #tpu.memory_space<vmem>>, vector<1x8x32xf32>
    %47 = vector.shape_cast %46 : vector<1x8x32xf32> to vector<8x32xf32>
    %48 = vector.shape_cast %38 : vector<8x32xf32> to vector<1x8x32xf32>
    tpu.vector_store %arg10[%c1_40, %c0_41, %c0_42], %48 {strides = array<i32>} : memref<2x8x32xf32, #tpu.memory_space<vmem>>, vector<1x8x32xf32>,
    return
  }
  func.func @transform_0(%arg0: i32) -> (i32, i32, i32) {
    %c0_i32 = arith.constant 0 : i32
    %c0_i32_0 = arith.constant 0 : i32
    %c0_i32_1 = arith.constant 0 : i32
    %c0_i32_2 = arith.constant 0 : i32
    return %c0_i32, %c0_i32_0, %c0_i32_1 : i32, i32, i32
  }
  func.func @transform_1(%arg0: i32) -> (i32, i32, i32) {
    %c0_i32 = arith.constant 0 : i32
    %c0_i32_0 = arith.constant 0 : i32
    %c0_i32_1 = arith.constant 0 : i32
    %c0_i32_2 = arith.constant 0 : i32
    return %c0_i32, %c0_i32_0, %c0_i32_1 : i32, i32, i32
  }
  func.func @transform_2(%arg0: i32) -> (i32, i32, i32) {
    %c0_i32 = arith.constant 0 : i32
    %c0_i32_0 = arith.constant 0 : i32
    %c0_i32_1 = arith.constant 0 : i32
    %c0_i32_2 = arith.constant 0 : i32
    return %c0_i32, %c0_i32_0, %c0_i32_1 : i32, i32, i32
  }
  func.func @transform_3(%arg0: i32) -> (i32, i32) {
    %c0_i32 = arith.constant 0 : i32
    %c0_i32_0 = arith.constant 0 : i32
    %c0_i32_1 = arith.constant 0 : i32
    return %c0_i32, %c0_i32_0 : i32, i32
  }
  func.func @transform_4(%arg0: i32) -> (i32, i32) {
    %c0_i32 = arith.constant 0 : i32
    %c0_i32_0 = arith.constant 0 : i32
    %c0_i32_1 = arith.constant 0 : i32
    return %c0_i32, %c0_i32_0 : i32, i32
  }
  func.func @transform_5(%arg0: i32) -> (i32, i32) {
    %c0_i32 = arith.constant 0 : i32
    %c0_i32_0 = arith.constant 0 : i32
    %c0_i32_1 = arith.constant 0 : i32
    return %c0_i32, %c0_i32_0 : i32, i32
  }
  func.func @transform_6(%arg0: i32) -> (i32, i32) {
    %c0_i32 = arith.constant 0 : i32
    %c0_i32_0 = arith.constant 0 : i32
    %c0_i32_1 = arith.constant 0 : i32
    return %c0_i32, %c0_i32_0 : i32, i32
  }
  func.func @transform_7(%arg0: i32) -> (i32, i32) {
    %c0_i32 = arith.constant 0 : i32
    %c0_i32_0 = arith.constant 0 : i32
    %c0_i32_1 = arith.constant 0 : i32
    return %c0_i32, %c0_i32_0 : i32, i32
  }
  func.func @transform_8(%arg0: i32) -> (i32, i32, i32) {
    %c0_i32 = arith.constant 0 : i32
    %c0_i32_0 = arith.constant 0 : i32
    %c0_i32_1 = arith.constant 0 : i32
    %c0_i32_2 = arith.constant 0 : i32
    return %c0_i32, %c0_i32_0, %c0_i32_1 : i32, i32, i32
  }
  func.func @transform_9(%arg0: i32) -> (i32, i32, i32) {
    %c0_i32 = arith.constant 0 : i32
    %c0_i32_0 = arith.constant 0 : i32
    %c0_i32_1 = arith.constant 0 : i32
    %c0_i32_2 = arith.constant 0 : i32
    return %c0_i32, %c0_i32_0, %c0_i32_1 : i32, i32, i32
  }
}

module attributes {stable_mosaic.version = 11 : i64} {
  func.func @kernel(%arg0: i32, %arg1: memref<2x9x32xf32, #tpu.memory_space<vmem>>, %arg2: memref<32x96xf32, #tpu.memory_space<vmem>>, %arg3: memref<1x96xf32, #tpu.memory_space<vmem>>, %arg4: memref<32x32xf32, #tpu.memory_space<vmem>>, %arg5: memref<1x32xf32, #tpu.memory_space<vmem>>, %arg6: memref<1x32xf32, #tpu.memory_space<vmem>>, %arg7: memref<1x32xf32, #tpu.memory_space<vmem>>, %arg8: memref<32x64xf32, #tpu.memory_space<vmem>>, %arg9: memref<1x64xf32, #tpu.memory_space<vmem>>, %arg10: memref<64x32xf32, #tpu.memory_space<vmem>>, %arg11: memref<1x32xf32, #tpu.memory_space<vmem>>, %arg12: memref<1x32xf32, #tpu.memory_space<vmem>>, %arg13: memref<1x32xf32, #tpu.memory_space<vmem>>, %arg14: memref<2x9x32xf32, #tpu.memory_space<vmem>>) attributes {dimension_semantics = [#tpu.dimension_semantics<arbitrary>], iteration_bounds = array<i64: 1>, scalar_prefetch = 0 : i64, scratch_operands = 0 : i64, tpu.core_type = #tpu.core_type<tc>, window_params = [{pipeline_mode = #tpu.pipeline_mode<synchronous>, transform_indices = @transform_0, window_bounds = array<i64: 2, 9, 32>}, {pipeline_mode = #tpu.pipeline_mode<synchronous>, transform_indices = @transform_1, window_bounds = array<i64: 32, 96>}, {pipeline_mode = #tpu.pipeline_mode<synchronous>, transform_indices = @transform_2, window_bounds = array<i64: 1, 96>}, {pipeline_mode = #tpu.pipeline_mode<synchronous>, transform_indices = @transform_3, window_bounds = array<i64: 32, 32>}, {pipeline_mode = #tpu.pipeline_mode<synchronous>, transform_indices = @transform_4, window_bounds = array<i64: 1, 32>}, {pipeline_mode = #tpu.pipeline_mode<synchronous>, transform_indices = @transform_5, window_bounds = array<i64: 1, 32>}, {pipeline_mode = #tpu.pipeline_mode<synchronous>, transform_indices = @transform_6, window_bounds = array<i64: 1, 32>}, {pipeline_mode = #tpu.pipeline_mode<synchronous>, transform_indices = @transform_7, window_bounds = array<i64: 32, 64>}, {pipeline_mode = #tpu.pipeline_mode<synchronous>, transform_indices = @transform_8, window_bounds = array<i64: 1, 64>}, {pipeline_mode = #tpu.pipeline_mode<synchronous>, transform_indices = @transform_9, window_bounds = array<i64: 64, 32>}, {pipeline_mode = #tpu.pipeline_mode<synchronous>, transform_indices = @transform_10, window_bounds = array<i64: 1, 32>}, {pipeline_mode = #tpu.pipeline_mode<synchronous>, transform_indices = @transform_11, window_bounds = array<i64: 1, 32>}, {pipeline_mode = #tpu.pipeline_mode<synchronous>, transform_indices = @transform_12, window_bounds = array<i64: 1, 32>}, {pipeline_mode = #tpu.pipeline_mode<synchronous>, transform_indices = @transform_13, window_bounds = array<i64: 2, 9, 32>}]} {
    %c0 = arith.constant 0 : index
    %c0_0 = arith.constant 0 : index
    %0 = vector.load %arg2[%c0, %c0_0] : memref<32x96xf32, #tpu.memory_space<vmem>>, vector<32x96xf32>
    %c0_1 = arith.constant 0 : index
    %c0_2 = arith.constant 0 : index
    %1 = vector.load %arg3[%c0_1, %c0_2] : memref<1x96xf32, #tpu.memory_space<vmem>>, vector<1x96xf32>
    %c0_3 = arith.constant 0 : index
    %c0_4 = arith.constant 0 : index
    %2 = vector.load %arg4[%c0_3, %c0_4] : memref<32x32xf32, #tpu.memory_space<vmem>>, vector<32x32xf32>
    %c0_5 = arith.constant 0 : index
    %c0_6 = arith.constant 0 : index
    %3 = vector.load %arg5[%c0_5, %c0_6] : memref<1x32xf32, #tpu.memory_space<vmem>>, vector<1x32xf32>
    %c0_7 = arith.constant 0 : index
    %c0_8 = arith.constant 0 : index
    %4 = vector.load %arg6[%c0_7, %c0_8] : memref<1x32xf32, #tpu.memory_space<vmem>>, vector<1x32xf32>
    %c0_9 = arith.constant 0 : index
    %c0_10 = arith.constant 0 : index
    %5 = vector.load %arg7[%c0_9, %c0_10] : memref<1x32xf32, #tpu.memory_space<vmem>>, vector<1x32xf32>
    %c0_11 = arith.constant 0 : index
    %c0_12 = arith.constant 0 : index
    %6 = vector.load %arg8[%c0_11, %c0_12] : memref<32x64xf32, #tpu.memory_space<vmem>>, vector<32x64xf32>
    %c0_13 = arith.constant 0 : index
    %c0_14 = arith.constant 0 : index
    %7 = vector.load %arg9[%c0_13, %c0_14] : memref<1x64xf32, #tpu.memory_space<vmem>>, vector<1x64xf32>
    %c0_15 = arith.constant 0 : index
    %c0_16 = arith.constant 0 : index
    %8 = vector.load %arg10[%c0_15, %c0_16] : memref<64x32xf32, #tpu.memory_space<vmem>>, vector<64x32xf32>
    %c0_17 = arith.constant 0 : index
    %c0_18 = arith.constant 0 : index
    %9 = vector.load %arg11[%c0_17, %c0_18] : memref<1x32xf32, #tpu.memory_space<vmem>>, vector<1x32xf32>
    %c0_19 = arith.constant 0 : index
    %c0_20 = arith.constant 0 : index
    %10 = vector.load %arg12[%c0_19, %c0_20] : memref<1x32xf32, #tpu.memory_space<vmem>>, vector<1x32xf32>
    %c0_21 = arith.constant 0 : index
    %c0_22 = arith.constant 0 : index
    %11 = vector.load %arg13[%c0_21, %c0_22] : memref<1x32xf32, #tpu.memory_space<vmem>>, vector<1x32xf32>
    %c0_23 = arith.constant 0 : index
    %c0_24 = arith.constant 0 : index
    %c0_25 = arith.constant 0 : index
    %12 = vector.load %arg1[%c0_23, %c0_24, %c0_25] : memref<2x9x32xf32, #tpu.memory_space<vmem>>, vector<1x9x32xf32>
    %13 = vector.shape_cast %12 : vector<1x9x32xf32> to vector<9x32xf32>
    %cst = arith.constant dense<0.000000e+00> : vector<9x96xf32>
    %14 = tpu.matmul %13, %0, %cst {dimension_numbers = #tpu.dot_dimension_numbers<[1], [0], [0], [1], [0, 0, 1, 1], [], []>} : vector<9x32xf32>, vector<32x96xf32>, vector<9x96xf32> -> vector<9x96xf32>
    %15 = vector.broadcast %1 : vector<1x96xf32> to vector<9x96xf32>
    %16 = arith.addf %14, %15 : vector<9x96xf32>
    %cst_26 = arith.constant 0.000000e+00 : f32
    %17 = vector.broadcast %cst_26 : f32 to vector<9x32xf32>
    %18 = vector.extract_strided_slice %16 {offsets = [0, 0], sizes = [9, 8], strides = [1, 1]} : vector<9x96xf32> to vector<9x8xf32>
    %19 = vector.extract_strided_slice %16 {offsets = [0, 32], sizes = [9, 8], strides = [1, 1]} : vector<9x96xf32> to vector<9x8xf32>
    %20 = vector.extract_strided_slice %16 {offsets = [0, 64], sizes = [9, 8], strides = [1, 1]} : vector<9x96xf32> to vector<9x8xf32>
    %cst_27 = arith.constant dense<0.000000e+00> : vector<9x9xf32>
    %21 = tpu.matmul %18, %19, %cst_27 {dimension_numbers = #tpu.dot_dimension_numbers<[1], [1], [0], [0], [0, 0, 1, 0], [], []>} : vector<9x8xf32>, vector<9x8xf32>, vector<9x9xf32> -> vector<9x9xf32>
    %cst_28 = arith.constant 0.353553385 : f32
    %22 = vector.broadcast %cst_28 : f32 to vector<9x9xf32>
    %23 = arith.mulf %21, %22 : vector<9x9xf32>
    %cst_29 = arith.constant dense<0xFF800000> : vector<9xf32>
    %24 = vector.multi_reduction <maximumf>, %23, %cst_29 [1] : vector<9x9xf32> to vector<9xf32>
    %25 = vector.shape_cast %24 : vector<9xf32> to vector<9x1xf32>
    %26 = vector.broadcast %25 : vector<9x1xf32> to vector<9x9xf32>
    %27 = arith.subf %23, %26 : vector<9x9xf32>
    %28 = math.exp %27 : vector<9x9xf32>
    %cst_30 = arith.constant dense<0.000000e+00> : vector<9xf32>
    %29 = vector.multi_reduction <add>, %28, %cst_30 [1] : vector<9x9xf32> to vector<9xf32>
    %30 = vector.shape_cast %29 : vector<9xf32> to vector<9x1xf32>
    %31 = tpu.reciprocal %30 {approx = true} : vector<9x1xf32> -> vector<9x1xf32>
    %32 = vector.broadcast %31 : vector<9x1xf32> to vector<9x9xf32>
    %33 = arith.mulf %28, %32 : vector<9x9xf32>
    %cst_31 = arith.constant dense<0.000000e+00> : vector<9x8xf32>
    %34 = tpu.matmul %33, %20, %cst_31 {dimension_numbers = #tpu.dot_dimension_numbers<[1], [0], [0], [1], [0, 0, 1, 1], [], []>} : vector<9x9xf32>, vector<9x8xf32>, vector<9x8xf32> -> vector<9x8xf32>
    %35 = vector.extract_strided_slice %2 {offsets = [0, 0], sizes = [8, 32], strides = [1, 1]} : vector<32x32xf32> to vector<8x32xf32>
    %cst_32 = arith.constant dense<0.000000e+00> : vector<9x32xf32>
    %36 = tpu.matmul %34, %35, %cst_32 {dimension_numbers = #tpu.dot_dimension_numbers<[1], [0], [0], [1], [0, 0, 1, 1], [], []>} : vector<9x8xf32>, vector<8x32xf32>, vector<9x32xf32> -> vector<9x32xf32>
    %37 = arith.addf %17, %36 : vector<9x32xf32>
    %38 = vector.extract_strided_slice %16 {offsets = [0, 8], sizes = [9, 8], strides = [1, 1]} : vector<9x96xf32> to vector<9x8xf32>
    %39 = vector.extract_strided_slice %16 {offsets = [0, 40], sizes = [9, 8], strides = [1, 1]} : vector<9x96xf32> to vector<9x8xf32>
    %40 = vector.extract_strided_slice %16 {offsets = [0, 72], sizes = [9, 8], strides = [1, 1]} : vector<9x96xf32> to vector<9x8xf32>
    %cst_33 = arith.constant dense<0.000000e+00> : vector<9x9xf32>
    %41 = tpu.matmul %38, %39, %cst_33 {dimension_numbers = #tpu.dot_dimension_numbers<[1], [1], [0], [0], [0, 0, 1, 0], [], []>} : vector<9x8xf32>, vector<9x8xf32>, vector<9x9xf32> -> vector<9x9xf32>
    %cst_34 = arith.constant 0.353553385 : f32
    %42 = vector.broadcast %cst_34 : f32 to vector<9x9xf32>
    %43 = arith.mulf %41, %42 : vector<9x9xf32>
    %cst_35 = arith.constant dense<0xFF800000> : vector<9xf32>
    %44 = vector.multi_reduction <maximumf>, %43, %cst_35 [1] : vector<9x9xf32> to vector<9xf32>
    %45 = vector.shape_cast %44 : vector<9xf32> to vector<9x1xf32>
    %46 = vector.broadcast %45 : vector<9x1xf32> to vector<9x9xf32>
    %47 = arith.subf %43, %46 : vector<9x9xf32>
    %48 = math.exp %47 : vector<9x9xf32>
    %cst_36 = arith.constant dense<0.000000e+00> : vector<9xf32>
    %49 = vector.multi_reduction <add>, %48, %cst_36 [1] : vector<9x9xf32> to vector<9xf32>
    %50 = vector.shape_cast %49 : vector<9xf32> to vector<9x1xf32>
    %51 = tpu.reciprocal %50 {approx = true} : vector<9x1xf32> -> vector<9x1xf32>
    %52 = vector.broadcast %51 : vector<9x1xf32> to vector<9x9xf32>
    %53 = arith.mulf %48, %52 : vector<9x9xf32>
    %cst_37 = arith.constant dense<0.000000e+00> : vector<9x8xf32>
    %54 = tpu.matmul %53, %40, %cst_37 {dimension_numbers = #tpu.dot_dimension_numbers<[1], [0], [0], [1], [0, 0, 1, 1], [], []>} : vector<9x9xf32>, vector<9x8xf32>, vector<9x8xf32> -> vector<9x8xf32>
    %55 = vector.extract_strided_slice %2 {offsets = [8, 0], sizes = [8, 32], strides = [1, 1]} : vector<32x32xf32> to vector<8x32xf32>
    %cst_38 = arith.constant dense<0.000000e+00> : vector<9x32xf32>
    %56 = tpu.matmul %54, %55, %cst_38 {dimension_numbers = #tpu.dot_dimension_numbers<[1], [0], [0], [1], [0, 0, 1, 1], [], []>} : vector<9x8xf32>, vector<8x32xf32>, vector<9x32xf32> -> vector<9x32xf32>
    %57 = arith.addf %37, %56 : vector<9x32xf32>
    %58 = vector.extract_strided_slice %16 {offsets = [0, 16], sizes = [9, 8], strides = [1, 1]} : vector<9x96xf32> to vector<9x8xf32>
    %59 = vector.extract_strided_slice %16 {offsets = [0, 48], sizes = [9, 8], strides = [1, 1]} : vector<9x96xf32> to vector<9x8xf32>
    %60 = vector.extract_strided_slice %16 {offsets = [0, 80], sizes = [9, 8], strides = [1, 1]} : vector<9x96xf32> to vector<9x8xf32>
    %cst_39 = arith.constant dense<0.000000e+00> : vector<9x9xf32>
    %61 = tpu.matmul %58, %59, %cst_39 {dimension_numbers = #tpu.dot_dimension_numbers<[1], [1], [0], [0], [0, 0, 1, 0], [], []>} : vector<9x8xf32>, vector<9x8xf32>, vector<9x9xf32> -> vector<9x9xf32>
    %cst_40 = arith.constant 0.353553385 : f32
    %62 = vector.broadcast %cst_40 : f32 to vector<9x9xf32>
    %63 = arith.mulf %61, %62 : vector<9x9xf32>
    %cst_41 = arith.constant dense<0xFF800000> : vector<9xf32>
    %64 = vector.multi_reduction <maximumf>, %63, %cst_41 [1] : vector<9x9xf32> to vector<9xf32>
    %65 = vector.shape_cast %64 : vector<9xf32> to vector<9x1xf32>
    %66 = vector.broadcast %65 : vector<9x1xf32> to vector<9x9xf32>
    %67 = arith.subf %63, %66 : vector<9x9xf32>
    %68 = math.exp %67 : vector<9x9xf32>
    %cst_42 = arith.constant dense<0.000000e+00> : vector<9xf32>
    %69 = vector.multi_reduction <add>, %68, %cst_42 [1] : vector<9x9xf32> to vector<9xf32>
    %70 = vector.shape_cast %69 : vector<9xf32> to vector<9x1xf32>
    %71 = tpu.reciprocal %70 {approx = true} : vector<9x1xf32> -> vector<9x1xf32>
    %72 = vector.broadcast %71 : vector<9x1xf32> to vector<9x9xf32>
    %73 = arith.mulf %68, %72 : vector<9x9xf32>
    %cst_43 = arith.constant dense<0.000000e+00> : vector<9x8xf32>
    %74 = tpu.matmul %73, %60, %cst_43 {dimension_numbers = #tpu.dot_dimension_numbers<[1], [0], [0], [1], [0, 0, 1, 1], [], []>} : vector<9x9xf32>, vector<9x8xf32>, vector<9x8xf32> -> vector<9x8xf32>
    %75 = vector.extract_strided_slice %2 {offsets = [16, 0], sizes = [8, 32], strides = [1, 1]} : vector<32x32xf32> to vector<8x32xf32>
    %cst_44 = arith.constant dense<0.000000e+00> : vector<9x32xf32>
    %76 = tpu.matmul %74, %75, %cst_44 {dimension_numbers = #tpu.dot_dimension_numbers<[1], [0], [0], [1], [0, 0, 1, 1], [], []>} : vector<9x8xf32>, vector<8x32xf32>, vector<9x32xf32> -> vector<9x32xf32>
    %77 = arith.addf %57, %76 : vector<9x32xf32>
    %78 = vector.extract_strided_slice %16 {offsets = [0, 24], sizes = [9, 8], strides = [1, 1]} : vector<9x96xf32> to vector<9x8xf32>
    %79 = vector.extract_strided_slice %16 {offsets = [0, 56], sizes = [9, 8], strides = [1, 1]} : vector<9x96xf32> to vector<9x8xf32>
    %80 = vector.extract_strided_slice %16 {offsets = [0, 88], sizes = [9, 8], strides = [1, 1]} : vector<9x96xf32> to vector<9x8xf32>
    %cst_45 = arith.constant dense<0.000000e+00> : vector<9x9xf32>
    %81 = tpu.matmul %78, %79, %cst_45 {dimension_numbers = #tpu.dot_dimension_numbers<[1], [1], [0], [0], [0, 0, 1, 0], [], []>} : vector<9x8xf32>, vector<9x8xf32>, vector<9x9xf32> -> vector<9x9xf32>
    %cst_46 = arith.constant 0.353553385 : f32
    %82 = vector.broadcast %cst_46 : f32 to vector<9x9xf32>
    %83 = arith.mulf %81, %82 : vector<9x9xf32>
    %cst_47 = arith.constant dense<0xFF800000> : vector<9xf32>
    %84 = vector.multi_reduction <maximumf>, %83, %cst_47 [1] : vector<9x9xf32> to vector<9xf32>
    %85 = vector.shape_cast %84 : vector<9xf32> to vector<9x1xf32>
    %86 = vector.broadcast %85 : vector<9x1xf32> to vector<9x9xf32>
    %87 = arith.subf %83, %86 : vector<9x9xf32>
    %88 = math.exp %87 : vector<9x9xf32>
    %cst_48 = arith.constant dense<0.000000e+00> : vector<9xf32>
    %89 = vector.multi_reduction <add>, %88, %cst_48 [1] : vector<9x9xf32> to vector<9xf32>
    %90 = vector.shape_cast %89 : vector<9xf32> to vector<9x1xf32>
    %91 = tpu.reciprocal %90 {approx = true} : vector<9x1xf32> -> vector<9x1xf32>
    %92 = vector.broadcast %91 : vector<9x1xf32> to vector<9x9xf32>
    %93 = arith.mulf %88, %92 : vector<9x9xf32>
    %cst_49 = arith.constant dense<0.000000e+00> : vector<9x8xf32>
    %94 = tpu.matmul %93, %80, %cst_49 {dimension_numbers = #tpu.dot_dimension_numbers<[1], [0], [0], [1], [0, 0, 1, 1], [], []>} : vector<9x9xf32>, vector<9x8xf32>, vector<9x8xf32> -> vector<9x8xf32>
    %95 = vector.extract_strided_slice %2 {offsets = [24, 0], sizes = [8, 32], strides = [1, 1]} : vector<32x32xf32> to vector<8x32xf32>
    %cst_50 = arith.constant dense<0.000000e+00> : vector<9x32xf32>
    %96 = tpu.matmul %94, %95, %cst_50 {dimension_numbers = #tpu.dot_dimension_numbers<[1], [0], [0], [1], [0, 0, 1, 1], [], []>} : vector<9x8xf32>, vector<8x32xf32>, vector<9x32xf32> -> vector<9x32xf32>
    %97 = arith.addf %77, %96 : vector<9x32xf32>
    %98 = vector.broadcast %3 : vector<1x32xf32> to vector<9x32xf32>
    %99 = arith.addf %97, %98 : vector<9x32xf32>
    %100 = arith.addf %99, %13 : vector<9x32xf32>
    %cst_51 = arith.constant dense<0.000000e+00> : vector<9xf32>
    %101 = vector.multi_reduction <add>, %100, %cst_51 [1] : vector<9x32xf32> to vector<9xf32>
    %102 = vector.shape_cast %101 : vector<9xf32> to vector<9x1xf32>
    %cst_52 = arith.constant 3.200000e+01 : f32
    %103 = vector.broadcast %cst_52 : f32 to vector<9x1xf32>
    %104 = arith.divf %102, %103 : vector<9x1xf32>
    %105 = vector.broadcast %104 : vector<9x1xf32> to vector<9x32xf32>
    %106 = arith.subf %100, %105 : vector<9x32xf32>
    %107 = arith.mulf %106, %106 : vector<9x32xf32>
    %cst_53 = arith.constant dense<0.000000e+00> : vector<9xf32>
    %108 = vector.multi_reduction <add>, %107, %cst_53 [1] : vector<9x32xf32> to vector<9xf32>
    %109 = vector.shape_cast %108 : vector<9xf32> to vector<9x1xf32>
    %cst_54 = arith.constant 3.200000e+01 : f32
    %110 = vector.broadcast %cst_54 : f32 to vector<9x1xf32>
    %111 = arith.divf %109, %110 : vector<9x1xf32>
    %112 = vector.broadcast %104 : vector<9x1xf32> to vector<9x32xf32>
    %113 = arith.subf %100, %112 : vector<9x32xf32>
    %cst_55 = arith.constant 9.99999974E-6 : f32
    %114 = vector.broadcast %cst_55 : f32 to vector<9x1xf32>
    %115 = arith.addf %111, %114 : vector<9x1xf32>
    %116 = math.rsqrt %115 : vector<9x1xf32>
    %117 = vector.broadcast %116 : vector<9x1xf32> to vector<9x32xf32>
    %118 = arith.mulf %113, %117 : vector<9x32xf32>
    %119 = vector.broadcast %4 : vector<1x32xf32> to vector<9x32xf32>
    %120 = arith.mulf %118, %119 : vector<9x32xf32>
    %121 = vector.broadcast %5 : vector<1x32xf32> to vector<9x32xf32>
    %122 = arith.addf %120, %121 : vector<9x32xf32>
    %cst_56 = arith.constant dense<0.000000e+00> : vector<9x64xf32>
    %123 = tpu.matmul %122, %6, %cst_56 {dimension_numbers = #tpu.dot_dimension_numbers<[1], [0], [0], [1], [0, 0, 1, 1], [], []>} : vector<9x32xf32>, vector<32x64xf32>, vector<9x64xf32> -> vector<9x64xf32>
    %124 = vector.broadcast %7 : vector<1x64xf32> to vector<9x64xf32>
    %125 = arith.addf %123, %124 : vector<9x64xf32>
    %cst_57 = arith.constant 0.000000e+00 : f32
    %126 = vector.broadcast %cst_57 : f32 to vector<9x64xf32>
    %127 = arith.maximumf %125, %126 : vector<9x64xf32>
    %cst_58 = arith.constant dense<0.000000e+00> : vector<9x32xf32>
    %128 = tpu.matmul %127, %8, %cst_58 {dimension_numbers = #tpu.dot_dimension_numbers<[1], [0], [0], [1], [0, 0, 1, 1], [], []>} : vector<9x64xf32>, vector<64x32xf32>, vector<9x32xf32> -> vector<9x32xf32>
    %129 = vector.broadcast %9 : vector<1x32xf32> to vector<9x32xf32>
    %130 = arith.addf %128, %129 : vector<9x32xf32>
    %131 = arith.addf %130, %122 : vector<9x32xf32>
    %cst_59 = arith.constant dense<0.000000e+00> : vector<9xf32>
    %132 = vector.multi_reduction <add>, %131, %cst_59 [1] : vector<9x32xf32> to vector<9xf32>
    %133 = vector.shape_cast %132 : vector<9xf32> to vector<9x1xf32>
    %cst_60 = arith.constant 3.200000e+01 : f32
    %134 = vector.broadcast %cst_60 : f32 to vector<9x1xf32>
    %135 = arith.divf %133, %134 : vector<9x1xf32>
    %136 = vector.broadcast %135 : vector<9x1xf32> to vector<9x32xf32>
    %137 = arith.subf %131, %136 : vector<9x32xf32>
    %138 = arith.mulf %137, %137 : vector<9x32xf32>
    %cst_61 = arith.constant dense<0.000000e+00> : vector<9xf32>
    %139 = vector.multi_reduction <add>, %138, %cst_61 [1] : vector<9x32xf32> to vector<9xf32>
    %140 = vector.shape_cast %139 : vector<9xf32> to vector<9x1xf32>
    %cst_62 = arith.constant 3.200000e+01 : f32
    %141 = vector.broadcast %cst_62 : f32 to vector<9x1xf32>
    %142 = arith.divf %140, %141 : vector<9x1xf32>
    %143 = vector.broadcast %135 : vector<9x1xf32> to vector<9x32xf32>
    %144 = arith.subf %131, %143 : vector<9x32xf32>
    %cst_63 = arith.constant 9.99999974E-6 : f32
    %145 = vector.broadcast %cst_63 : f32 to vector<9x1xf32>
    %146 = arith.addf %142, %145 : vector<9x1xf32>
    %147 = math.rsqrt %146 : vector<9x1xf32>
    %148 = vector.broadcast %147 : vector<9x1xf32> to vector<9x32xf32>
    %149 = arith.mulf %144, %148 : vector<9x32xf32>
    %150 = vector.broadcast %10 : vector<1x32xf32> to vector<9x32xf32>
    %151 = arith.mulf %149, %150 : vector<9x32xf32>
    %152 = vector.broadcast %11 : vector<1x32xf32> to vector<9x32xf32>
    %153 = arith.addf %151, %152 : vector<9x32xf32>
    %c0_64 = arith.constant 0 : index
    %c0_65 = arith.constant 0 : index
    %c0_66 = arith.constant 0 : index
    %154 = vector.load %arg14[%c0_64, %c0_65, %c0_66] : memref<2x9x32xf32, #tpu.memory_space<vmem>>, vector<1x9x32xf32>
    %155 = vector.shape_cast %154 : vector<1x9x32xf32> to vector<9x32xf32>
    %156 = vector.shape_cast %153 : vector<9x32xf32> to vector<1x9x32xf32>
    tpu.vector_store %arg14[%c0_64, %c0_65, %c0_66], %156 {strides = array<i32>} : memref<2x9x32xf32, #tpu.memory_space<vmem>>, vector<1x9x32xf32>,
    %c1 = arith.constant 1 : index
    %c0_67 = arith.constant 0 : index
    %c0_68 = arith.constant 0 : index
    %157 = vector.load %arg1[%c1, %c0_67, %c0_68] : memref<2x9x32xf32, #tpu.memory_space<vmem>>, vector<1x9x32xf32>
    %158 = vector.shape_cast %157 : vector<1x9x32xf32> to vector<9x32xf32>
    %cst_69 = arith.constant dense<0.000000e+00> : vector<9x96xf32>
    %159 = tpu.matmul %158, %0, %cst_69 {dimension_numbers = #tpu.dot_dimension_numbers<[1], [0], [0], [1], [0, 0, 1, 1], [], []>} : vector<9x32xf32>, vector<32x96xf32>, vector<9x96xf32> -> vector<9x96xf32>
    %160 = vector.broadcast %1 : vector<1x96xf32> to vector<9x96xf32>
    %161 = arith.addf %159, %160 : vector<9x96xf32>
    %cst_70 = arith.constant 0.000000e+00 : f32
    %162 = vector.broadcast %cst_70 : f32 to vector<9x32xf32>
    %163 = vector.extract_strided_slice %161 {offsets = [0, 0], sizes = [9, 8], strides = [1, 1]} : vector<9x96xf32> to vector<9x8xf32>
    %164 = vector.extract_strided_slice %161 {offsets = [0, 32], sizes = [9, 8], strides = [1, 1]} : vector<9x96xf32> to vector<9x8xf32>
    %165 = vector.extract_strided_slice %161 {offsets = [0, 64], sizes = [9, 8], strides = [1, 1]} : vector<9x96xf32> to vector<9x8xf32>
    %cst_71 = arith.constant dense<0.000000e+00> : vector<9x9xf32>
    %166 = tpu.matmul %163, %164, %cst_71 {dimension_numbers = #tpu.dot_dimension_numbers<[1], [1], [0], [0], [0, 0, 1, 0], [], []>} : vector<9x8xf32>, vector<9x8xf32>, vector<9x9xf32> -> vector<9x9xf32>
    %cst_72 = arith.constant 0.353553385 : f32
    %167 = vector.broadcast %cst_72 : f32 to vector<9x9xf32>
    %168 = arith.mulf %166, %167 : vector<9x9xf32>
    %cst_73 = arith.constant dense<0xFF800000> : vector<9xf32>
    %169 = vector.multi_reduction <maximumf>, %168, %cst_73 [1] : vector<9x9xf32> to vector<9xf32>
    %170 = vector.shape_cast %169 : vector<9xf32> to vector<9x1xf32>
    %171 = vector.broadcast %170 : vector<9x1xf32> to vector<9x9xf32>
    %172 = arith.subf %168, %171 : vector<9x9xf32>
    %173 = math.exp %172 : vector<9x9xf32>
    %cst_74 = arith.constant dense<0.000000e+00> : vector<9xf32>
    %174 = vector.multi_reduction <add>, %173, %cst_74 [1] : vector<9x9xf32> to vector<9xf32>
    %175 = vector.shape_cast %174 : vector<9xf32> to vector<9x1xf32>
    %176 = tpu.reciprocal %175 {approx = true} : vector<9x1xf32> -> vector<9x1xf32>
    %177 = vector.broadcast %176 : vector<9x1xf32> to vector<9x9xf32>
    %178 = arith.mulf %173, %177 : vector<9x9xf32>
    %cst_75 = arith.constant dense<0.000000e+00> : vector<9x8xf32>
    %179 = tpu.matmul %178, %165, %cst_75 {dimension_numbers = #tpu.dot_dimension_numbers<[1], [0], [0], [1], [0, 0, 1, 1], [], []>} : vector<9x9xf32>, vector<9x8xf32>, vector<9x8xf32> -> vector<9x8xf32>
    %180 = vector.extract_strided_slice %2 {offsets = [0, 0], sizes = [8, 32], strides = [1, 1]} : vector<32x32xf32> to vector<8x32xf32>
    %cst_76 = arith.constant dense<0.000000e+00> : vector<9x32xf32>
    %181 = tpu.matmul %179, %180, %cst_76 {dimension_numbers = #tpu.dot_dimension_numbers<[1], [0], [0], [1], [0, 0, 1, 1], [], []>} : vector<9x8xf32>, vector<8x32xf32>, vector<9x32xf32> -> vector<9x32xf32>
    %182 = arith.addf %162, %181 : vector<9x32xf32>
    %183 = vector.extract_strided_slice %161 {offsets = [0, 8], sizes = [9, 8], strides = [1, 1]} : vector<9x96xf32> to vector<9x8xf32>
    %184 = vector.extract_strided_slice %161 {offsets = [0, 40], sizes = [9, 8], strides = [1, 1]} : vector<9x96xf32> to vector<9x8xf32>
    %185 = vector.extract_strided_slice %161 {offsets = [0, 72], sizes = [9, 8], strides = [1, 1]} : vector<9x96xf32> to vector<9x8xf32>
    %cst_77 = arith.constant dense<0.000000e+00> : vector<9x9xf32>
    %186 = tpu.matmul %183, %184, %cst_77 {dimension_numbers = #tpu.dot_dimension_numbers<[1], [1], [0], [0], [0, 0, 1, 0], [], []>} : vector<9x8xf32>, vector<9x8xf32>, vector<9x9xf32> -> vector<9x9xf32>
    %cst_78 = arith.constant 0.353553385 : f32
    %187 = vector.broadcast %cst_78 : f32 to vector<9x9xf32>
    %188 = arith.mulf %186, %187 : vector<9x9xf32>
    %cst_79 = arith.constant dense<0xFF800000> : vector<9xf32>
    %189 = vector.multi_reduction <maximumf>, %188, %cst_79 [1] : vector<9x9xf32> to vector<9xf32>
    %190 = vector.shape_cast %189 : vector<9xf32> to vector<9x1xf32>
    %191 = vector.broadcast %190 : vector<9x1xf32> to vector<9x9xf32>
    %192 = arith.subf %188, %191 : vector<9x9xf32>
    %193 = math.exp %192 : vector<9x9xf32>
    %cst_80 = arith.constant dense<0.000000e+00> : vector<9xf32>
    %194 = vector.multi_reduction <add>, %193, %cst_80 [1] : vector<9x9xf32> to vector<9xf32>
    %195 = vector.shape_cast %194 : vector<9xf32> to vector<9x1xf32>
    %196 = tpu.reciprocal %195 {approx = true} : vector<9x1xf32> -> vector<9x1xf32>
    %197 = vector.broadcast %196 : vector<9x1xf32> to vector<9x9xf32>
    %198 = arith.mulf %193, %197 : vector<9x9xf32>
    %cst_81 = arith.constant dense<0.000000e+00> : vector<9x8xf32>
    %199 = tpu.matmul %198, %185, %cst_81 {dimension_numbers = #tpu.dot_dimension_numbers<[1], [0], [0], [1], [0, 0, 1, 1], [], []>} : vector<9x9xf32>, vector<9x8xf32>, vector<9x8xf32> -> vector<9x8xf32>
    %200 = vector.extract_strided_slice %2 {offsets = [8, 0], sizes = [8, 32], strides = [1, 1]} : vector<32x32xf32> to vector<8x32xf32>
    %cst_82 = arith.constant dense<0.000000e+00> : vector<9x32xf32>
    %201 = tpu.matmul %199, %200, %cst_82 {dimension_numbers = #tpu.dot_dimension_numbers<[1], [0], [0], [1], [0, 0, 1, 1], [], []>} : vector<9x8xf32>, vector<8x32xf32>, vector<9x32xf32> -> vector<9x32xf32>
    %202 = arith.addf %182, %201 : vector<9x32xf32>
    %203 = vector.extract_strided_slice %161 {offsets = [0, 16], sizes = [9, 8], strides = [1, 1]} : vector<9x96xf32> to vector<9x8xf32>
    %204 = vector.extract_strided_slice %161 {offsets = [0, 48], sizes = [9, 8], strides = [1, 1]} : vector<9x96xf32> to vector<9x8xf32>
    %205 = vector.extract_strided_slice %161 {offsets = [0, 80], sizes = [9, 8], strides = [1, 1]} : vector<9x96xf32> to vector<9x8xf32>
    %cst_83 = arith.constant dense<0.000000e+00> : vector<9x9xf32>
    %206 = tpu.matmul %203, %204, %cst_83 {dimension_numbers = #tpu.dot_dimension_numbers<[1], [1], [0], [0], [0, 0, 1, 0], [], []>} : vector<9x8xf32>, vector<9x8xf32>, vector<9x9xf32> -> vector<9x9xf32>
    %cst_84 = arith.constant 0.353553385 : f32
    %207 = vector.broadcast %cst_84 : f32 to vector<9x9xf32>
    %208 = arith.mulf %206, %207 : vector<9x9xf32>
    %cst_85 = arith.constant dense<0xFF800000> : vector<9xf32>
    %209 = vector.multi_reduction <maximumf>, %208, %cst_85 [1] : vector<9x9xf32> to vector<9xf32>
    %210 = vector.shape_cast %209 : vector<9xf32> to vector<9x1xf32>
    %211 = vector.broadcast %210 : vector<9x1xf32> to vector<9x9xf32>
    %212 = arith.subf %208, %211 : vector<9x9xf32>
    %213 = math.exp %212 : vector<9x9xf32>
    %cst_86 = arith.constant dense<0.000000e+00> : vector<9xf32>
    %214 = vector.multi_reduction <add>, %213, %cst_86 [1] : vector<9x9xf32> to vector<9xf32>
    %215 = vector.shape_cast %214 : vector<9xf32> to vector<9x1xf32>
    %216 = tpu.reciprocal %215 {approx = true} : vector<9x1xf32> -> vector<9x1xf32>
    %217 = vector.broadcast %216 : vector<9x1xf32> to vector<9x9xf32>
    %218 = arith.mulf %213, %217 : vector<9x9xf32>
    %cst_87 = arith.constant dense<0.000000e+00> : vector<9x8xf32>
    %219 = tpu.matmul %218, %205, %cst_87 {dimension_numbers = #tpu.dot_dimension_numbers<[1], [0], [0], [1], [0, 0, 1, 1], [], []>} : vector<9x9xf32>, vector<9x8xf32>, vector<9x8xf32> -> vector<9x8xf32>
    %220 = vector.extract_strided_slice %2 {offsets = [16, 0], sizes = [8, 32], strides = [1, 1]} : vector<32x32xf32> to vector<8x32xf32>
    %cst_88 = arith.constant dense<0.000000e+00> : vector<9x32xf32>
    %221 = tpu.matmul %219, %220, %cst_88 {dimension_numbers = #tpu.dot_dimension_numbers<[1], [0], [0], [1], [0, 0, 1, 1], [], []>} : vector<9x8xf32>, vector<8x32xf32>, vector<9x32xf32> -> vector<9x32xf32>
    %222 = arith.addf %202, %221 : vector<9x32xf32>
    %223 = vector.extract_strided_slice %161 {offsets = [0, 24], sizes = [9, 8], strides = [1, 1]} : vector<9x96xf32> to vector<9x8xf32>
    %224 = vector.extract_strided_slice %161 {offsets = [0, 56], sizes = [9, 8], strides = [1, 1]} : vector<9x96xf32> to vector<9x8xf32>
    %225 = vector.extract_strided_slice %161 {offsets = [0, 88], sizes = [9, 8], strides = [1, 1]} : vector<9x96xf32> to vector<9x8xf32>
    %cst_89 = arith.constant dense<0.000000e+00> : vector<9x9xf32>
    %226 = tpu.matmul %223, %224, %cst_89 {dimension_numbers = #tpu.dot_dimension_numbers<[1], [1], [0], [0], [0, 0, 1, 0], [], []>} : vector<9x8xf32>, vector<9x8xf32>, vector<9x9xf32> -> vector<9x9xf32>
    %cst_90 = arith.constant 0.353553385 : f32
    %227 = vector.broadcast %cst_90 : f32 to vector<9x9xf32>
    %228 = arith.mulf %226, %227 : vector<9x9xf32>
    %cst_91 = arith.constant dense<0xFF800000> : vector<9xf32>
    %229 = vector.multi_reduction <maximumf>, %228, %cst_91 [1] : vector<9x9xf32> to vector<9xf32>
    %230 = vector.shape_cast %229 : vector<9xf32> to vector<9x1xf32>
    %231 = vector.broadcast %230 : vector<9x1xf32> to vector<9x9xf32>
    %232 = arith.subf %228, %231 : vector<9x9xf32>
    %233 = math.exp %232 : vector<9x9xf32>
    %cst_92 = arith.constant dense<0.000000e+00> : vector<9xf32>
    %234 = vector.multi_reduction <add>, %233, %cst_92 [1] : vector<9x9xf32> to vector<9xf32>
    %235 = vector.shape_cast %234 : vector<9xf32> to vector<9x1xf32>
    %236 = tpu.reciprocal %235 {approx = true} : vector<9x1xf32> -> vector<9x1xf32>
    %237 = vector.broadcast %236 : vector<9x1xf32> to vector<9x9xf32>
    %238 = arith.mulf %233, %237 : vector<9x9xf32>
    %cst_93 = arith.constant dense<0.000000e+00> : vector<9x8xf32>
    %239 = tpu.matmul %238, %225, %cst_93 {dimension_numbers = #tpu.dot_dimension_numbers<[1], [0], [0], [1], [0, 0, 1, 1], [], []>} : vector<9x9xf32>, vector<9x8xf32>, vector<9x8xf32> -> vector<9x8xf32>
    %240 = vector.extract_strided_slice %2 {offsets = [24, 0], sizes = [8, 32], strides = [1, 1]} : vector<32x32xf32> to vector<8x32xf32>
    %cst_94 = arith.constant dense<0.000000e+00> : vector<9x32xf32>
    %241 = tpu.matmul %239, %240, %cst_94 {dimension_numbers = #tpu.dot_dimension_numbers<[1], [0], [0], [1], [0, 0, 1, 1], [], []>} : vector<9x8xf32>, vector<8x32xf32>, vector<9x32xf32> -> vector<9x32xf32>
    %242 = arith.addf %222, %241 : vector<9x32xf32>
    %243 = vector.broadcast %3 : vector<1x32xf32> to vector<9x32xf32>
    %244 = arith.addf %242, %243 : vector<9x32xf32>
    %245 = arith.addf %244, %158 : vector<9x32xf32>
    %cst_95 = arith.constant dense<0.000000e+00> : vector<9xf32>
    %246 = vector.multi_reduction <add>, %245, %cst_95 [1] : vector<9x32xf32> to vector<9xf32>
    %247 = vector.shape_cast %246 : vector<9xf32> to vector<9x1xf32>
    %cst_96 = arith.constant 3.200000e+01 : f32
    %248 = vector.broadcast %cst_96 : f32 to vector<9x1xf32>
    %249 = arith.divf %247, %248 : vector<9x1xf32>
    %250 = vector.broadcast %249 : vector<9x1xf32> to vector<9x32xf32>
    %251 = arith.subf %245, %250 : vector<9x32xf32>
    %252 = arith.mulf %251, %251 : vector<9x32xf32>
    %cst_97 = arith.constant dense<0.000000e+00> : vector<9xf32>
    %253 = vector.multi_reduction <add>, %252, %cst_97 [1] : vector<9x32xf32> to vector<9xf32>
    %254 = vector.shape_cast %253 : vector<9xf32> to vector<9x1xf32>
    %cst_98 = arith.constant 3.200000e+01 : f32
    %255 = vector.broadcast %cst_98 : f32 to vector<9x1xf32>
    %256 = arith.divf %254, %255 : vector<9x1xf32>
    %257 = vector.broadcast %249 : vector<9x1xf32> to vector<9x32xf32>
    %258 = arith.subf %245, %257 : vector<9x32xf32>
    %cst_99 = arith.constant 9.99999974E-6 : f32
    %259 = vector.broadcast %cst_99 : f32 to vector<9x1xf32>
    %260 = arith.addf %256, %259 : vector<9x1xf32>
    %261 = math.rsqrt %260 : vector<9x1xf32>
    %262 = vector.broadcast %261 : vector<9x1xf32> to vector<9x32xf32>
    %263 = arith.mulf %258, %262 : vector<9x32xf32>
    %264 = vector.broadcast %4 : vector<1x32xf32> to vector<9x32xf32>
    %265 = arith.mulf %263, %264 : vector<9x32xf32>
    %266 = vector.broadcast %5 : vector<1x32xf32> to vector<9x32xf32>
    %267 = arith.addf %265, %266 : vector<9x32xf32>
    %cst_100 = arith.constant dense<0.000000e+00> : vector<9x64xf32>
    %268 = tpu.matmul %267, %6, %cst_100 {dimension_numbers = #tpu.dot_dimension_numbers<[1], [0], [0], [1], [0, 0, 1, 1], [], []>} : vector<9x32xf32>, vector<32x64xf32>, vector<9x64xf32> -> vector<9x64xf32>
    %269 = vector.broadcast %7 : vector<1x64xf32> to vector<9x64xf32>
    %270 = arith.addf %268, %269 : vector<9x64xf32>
    %cst_101 = arith.constant 0.000000e+00 : f32
    %271 = vector.broadcast %cst_101 : f32 to vector<9x64xf32>
    %272 = arith.maximumf %270, %271 : vector<9x64xf32>
    %cst_102 = arith.constant dense<0.000000e+00> : vector<9x32xf32>
    %273 = tpu.matmul %272, %8, %cst_102 {dimension_numbers = #tpu.dot_dimension_numbers<[1], [0], [0], [1], [0, 0, 1, 1], [], []>} : vector<9x64xf32>, vector<64x32xf32>, vector<9x32xf32> -> vector<9x32xf32>
    %274 = vector.broadcast %9 : vector<1x32xf32> to vector<9x32xf32>
    %275 = arith.addf %273, %274 : vector<9x32xf32>
    %276 = arith.addf %275, %267 : vector<9x32xf32>
    %cst_103 = arith.constant dense<0.000000e+00> : vector<9xf32>
    %277 = vector.multi_reduction <add>, %276, %cst_103 [1] : vector<9x32xf32> to vector<9xf32>
    %278 = vector.shape_cast %277 : vector<9xf32> to vector<9x1xf32>
    %cst_104 = arith.constant 3.200000e+01 : f32
    %279 = vector.broadcast %cst_104 : f32 to vector<9x1xf32>
    %280 = arith.divf %278, %279 : vector<9x1xf32>
    %281 = vector.broadcast %280 : vector<9x1xf32> to vector<9x32xf32>
    %282 = arith.subf %276, %281 : vector<9x32xf32>
    %283 = arith.mulf %282, %282 : vector<9x32xf32>
    %cst_105 = arith.constant dense<0.000000e+00> : vector<9xf32>
    %284 = vector.multi_reduction <add>, %283, %cst_105 [1] : vector<9x32xf32> to vector<9xf32>
    %285 = vector.shape_cast %284 : vector<9xf32> to vector<9x1xf32>
    %cst_106 = arith.constant 3.200000e+01 : f32
    %286 = vector.broadcast %cst_106 : f32 to vector<9x1xf32>
    %287 = arith.divf %285, %286 : vector<9x1xf32>
    %288 = vector.broadcast %280 : vector<9x1xf32> to vector<9x32xf32>
    %289 = arith.subf %276, %288 : vector<9x32xf32>
    %cst_107 = arith.constant 9.99999974E-6 : f32
    %290 = vector.broadcast %cst_107 : f32 to vector<9x1xf32>
    %291 = arith.addf %287, %290 : vector<9x1xf32>
    %292 = math.rsqrt %291 : vector<9x1xf32>
    %293 = vector.broadcast %292 : vector<9x1xf32> to vector<9x32xf32>
    %294 = arith.mulf %289, %293 : vector<9x32xf32>
    %295 = vector.broadcast %10 : vector<1x32xf32> to vector<9x32xf32>
    %296 = arith.mulf %294, %295 : vector<9x32xf32>
    %297 = vector.broadcast %11 : vector<1x32xf32> to vector<9x32xf32>
    %298 = arith.addf %296, %297 : vector<9x32xf32>
    %c1_108 = arith.constant 1 : index
    %c0_109 = arith.constant 0 : index
    %c0_110 = arith.constant 0 : index
    %299 = vector.load %arg14[%c1_108, %c0_109, %c0_110] : memref<2x9x32xf32, #tpu.memory_space<vmem>>, vector<1x9x32xf32>
    %300 = vector.shape_cast %299 : vector<1x9x32xf32> to vector<9x32xf32>
    %301 = vector.shape_cast %298 : vector<9x32xf32> to vector<1x9x32xf32>
    tpu.vector_store %arg14[%c1_108, %c0_109, %c0_110], %301 {strides = array<i32>} : memref<2x9x32xf32, #tpu.memory_space<vmem>>, vector<1x9x32xf32>,
    return
  }
  func.func @transform_0(%arg0: i32) -> (i32, i32, i32) {
    %c0_i32 = arith.constant 0 : i32
    %c0_i32_0 = arith.constant 0 : i32
    %c0_i32_1 = arith.constant 0 : i32
    %c0_i32_2 = arith.constant 0 : i32
    return %c0_i32, %c0_i32_0, %c0_i32_1 : i32, i32, i32
  }
  func.func @transform_1(%arg0: i32) -> (i32, i32) {
    %c0_i32 = arith.constant 0 : i32
    %c0_i32_0 = arith.constant 0 : i32
    %c0_i32_1 = arith.constant 0 : i32
    return %c0_i32, %c0_i32_0 : i32, i32
  }
  func.func @transform_2(%arg0: i32) -> (i32, i32) {
    %c0_i32 = arith.constant 0 : i32
    %c0_i32_0 = arith.constant 0 : i32
    %c0_i32_1 = arith.constant 0 : i32
    return %c0_i32, %c0_i32_0 : i32, i32
  }
  func.func @transform_3(%arg0: i32) -> (i32, i32) {
    %c0_i32 = arith.constant 0 : i32
    %c0_i32_0 = arith.constant 0 : i32
    %c0_i32_1 = arith.constant 0 : i32
    return %c0_i32, %c0_i32_0 : i32, i32
  }
  func.func @transform_4(%arg0: i32) -> (i32, i32) {
    %c0_i32 = arith.constant 0 : i32
    %c0_i32_0 = arith.constant 0 : i32
    %c0_i32_1 = arith.constant 0 : i32
    return %c0_i32, %c0_i32_0 : i32, i32
  }
  func.func @transform_5(%arg0: i32) -> (i32, i32) {
    %c0_i32 = arith.constant 0 : i32
    %c0_i32_0 = arith.constant 0 : i32
    %c0_i32_1 = arith.constant 0 : i32
    return %c0_i32, %c0_i32_0 : i32, i32
  }
  func.func @transform_6(%arg0: i32) -> (i32, i32) {
    %c0_i32 = arith.constant 0 : i32
    %c0_i32_0 = arith.constant 0 : i32
    %c0_i32_1 = arith.constant 0 : i32
    return %c0_i32, %c0_i32_0 : i32, i32
  }
  func.func @transform_7(%arg0: i32) -> (i32, i32) {
    %c0_i32 = arith.constant 0 : i32
    %c0_i32_0 = arith.constant 0 : i32
    %c0_i32_1 = arith.constant 0 : i32
    return %c0_i32, %c0_i32_0 : i32, i32
  }
  func.func @transform_8(%arg0: i32) -> (i32, i32) {
    %c0_i32 = arith.constant 0 : i32
    %c0_i32_0 = arith.constant 0 : i32
    %c0_i32_1 = arith.constant 0 : i32
    return %c0_i32, %c0_i32_0 : i32, i32
  }
  func.func @transform_9(%arg0: i32) -> (i32, i32) {
    %c0_i32 = arith.constant 0 : i32
    %c0_i32_0 = arith.constant 0 : i32
    %c0_i32_1 = arith.constant 0 : i32
    return %c0_i32, %c0_i32_0 : i32, i32
  }
  func.func @transform_10(%arg0: i32) -> (i32, i32) {
    %c0_i32 = arith.constant 0 : i32
    %c0_i32_0 = arith.constant 0 : i32
    %c0_i32_1 = arith.constant 0 : i32
    return %c0_i32, %c0_i32_0 : i32, i32
  }
  func.func @transform_11(%arg0: i32) -> (i32, i32) {
    %c0_i32 = arith.constant 0 : i32
    %c0_i32_0 = arith.constant 0 : i32
    %c0_i32_1 = arith.constant 0 : i32
    return %c0_i32, %c0_i32_0 : i32, i32
  }
  func.func @transform_12(%arg0: i32) -> (i32, i32) {
    %c0_i32 = arith.constant 0 : i32
    %c0_i32_0 = arith.constant 0 : i32
    %c0_i32_1 = arith.constant 0 : i32
    return %c0_i32, %c0_i32_0 : i32, i32
  }
  func.func @transform_13(%arg0: i32) -> (i32, i32, i32) {
    %c0_i32 = arith.constant 0 : i32
    %c0_i32_0 = arith.constant 0 : i32
    %c0_i32_1 = arith.constant 0 : i32
    %c0_i32_2 = arith.constant 0 : i32
    return %c0_i32, %c0_i32_0, %c0_i32_1 : i32, i32, i32
  }
}

module attributes {stable_mosaic.version = 11 : i64} {
  func.func @kernel(%arg0: i32, %arg1: memref<2x9x32xf32, #tpu.memory_space<vmem>>, %arg2: memref<32x96xf32, #tpu.memory_space<vmem>>, %arg3: memref<1x96xf32, #tpu.memory_space<vmem>>, %arg4: memref<32x32xf32, #tpu.memory_space<vmem>>, %arg5: memref<1x32xf32, #tpu.memory_space<vmem>>, %arg6: memref<1x32xf32, #tpu.memory_space<vmem>>, %arg7: memref<1x32xf32, #tpu.memory_space<vmem>>, %arg8: memref<32x64xf32, #tpu.memory_space<vmem>>, %arg9: memref<1x64xf32, #tpu.memory_space<vmem>>, %arg10: memref<64x32xf32, #tpu.memory_space<vmem>>, %arg11: memref<1x32xf32, #tpu.memory_space<vmem>>, %arg12: memref<1x32xf32, #tpu.memory_space<vmem>>, %arg13: memref<1x32xf32, #tpu.memory_space<vmem>>, %arg14: memref<2x9x32xf32, #tpu.memory_space<vmem>>, %arg15: memref<2x4x9x9xf32, #tpu.memory_space<vmem>>) attributes {dimension_semantics = [#tpu.dimension_semantics<arbitrary>], iteration_bounds = array<i64: 1>, scalar_prefetch = 0 : i64, scratch_operands = 0 : i64, tpu.core_type = #tpu.core_type<tc>, window_params = [{pipeline_mode = #tpu.pipeline_mode<synchronous>, transform_indices = @transform_0, window_bounds = array<i64: 2, 9, 32>}, {pipeline_mode = #tpu.pipeline_mode<synchronous>, transform_indices = @transform_1, window_bounds = array<i64: 32, 96>}, {pipeline_mode = #tpu.pipeline_mode<synchronous>, transform_indices = @transform_2, window_bounds = array<i64: 1, 96>}, {pipeline_mode = #tpu.pipeline_mode<synchronous>, transform_indices = @transform_3, window_bounds = array<i64: 32, 32>}, {pipeline_mode = #tpu.pipeline_mode<synchronous>, transform_indices = @transform_4, window_bounds = array<i64: 1, 32>}, {pipeline_mode = #tpu.pipeline_mode<synchronous>, transform_indices = @transform_5, window_bounds = array<i64: 1, 32>}, {pipeline_mode = #tpu.pipeline_mode<synchronous>, transform_indices = @transform_6, window_bounds = array<i64: 1, 32>}, {pipeline_mode = #tpu.pipeline_mode<synchronous>, transform_indices = @transform_7, window_bounds = array<i64: 32, 64>}, {pipeline_mode = #tpu.pipeline_mode<synchronous>, transform_indices = @transform_8, window_bounds = array<i64: 1, 64>}, {pipeline_mode = #tpu.pipeline_mode<synchronous>, transform_indices = @transform_9, window_bounds = array<i64: 64, 32>}, {pipeline_mode = #tpu.pipeline_mode<synchronous>, transform_indices = @transform_10, window_bounds = array<i64: 1, 32>}, {pipeline_mode = #tpu.pipeline_mode<synchronous>, transform_indices = @transform_11, window_bounds = array<i64: 1, 32>}, {pipeline_mode = #tpu.pipeline_mode<synchronous>, transform_indices = @transform_12, window_bounds = array<i64: 1, 32>}, {pipeline_mode = #tpu.pipeline_mode<synchronous>, transform_indices = @transform_13, window_bounds = array<i64: 2, 9, 32>}, {pipeline_mode = #tpu.pipeline_mode<synchronous>, transform_indices = @transform_14, window_bounds = array<i64: 2, 4, 9, 9>}]} {
    %c0 = arith.constant 0 : index
    %c0_0 = arith.constant 0 : index
    %0 = vector.load %arg2[%c0, %c0_0] : memref<32x96xf32, #tpu.memory_space<vmem>>, vector<32x96xf32>
    %c0_1 = arith.constant 0 : index
    %c0_2 = arith.constant 0 : index
    %1 = vector.load %arg3[%c0_1, %c0_2] : memref<1x96xf32, #tpu.memory_space<vmem>>, vector<1x96xf32>
    %c0_3 = arith.constant 0 : index
    %c0_4 = arith.constant 0 : index
    %2 = vector.load %arg4[%c0_3, %c0_4] : memref<32x32xf32, #tpu.memory_space<vmem>>, vector<32x32xf32>
    %c0_5 = arith.constant 0 : index
    %c0_6 = arith.constant 0 : index
    %3 = vector.load %arg5[%c0_5, %c0_6] : memref<1x32xf32, #tpu.memory_space<vmem>>, vector<1x32xf32>
    %c0_7 = arith.constant 0 : index
    %c0_8 = arith.constant 0 : index
    %4 = vector.load %arg6[%c0_7, %c0_8] : memref<1x32xf32, #tpu.memory_space<vmem>>, vector<1x32xf32>
    %c0_9 = arith.constant 0 : index
    %c0_10 = arith.constant 0 : index
    %5 = vector.load %arg7[%c0_9, %c0_10] : memref<1x32xf32, #tpu.memory_space<vmem>>, vector<1x32xf32>
    %c0_11 = arith.constant 0 : index
    %c0_12 = arith.constant 0 : index
    %6 = vector.load %arg8[%c0_11, %c0_12] : memref<32x64xf32, #tpu.memory_space<vmem>>, vector<32x64xf32>
    %c0_13 = arith.constant 0 : index
    %c0_14 = arith.constant 0 : index
    %7 = vector.load %arg9[%c0_13, %c0_14] : memref<1x64xf32, #tpu.memory_space<vmem>>, vector<1x64xf32>
    %c0_15 = arith.constant 0 : index
    %c0_16 = arith.constant 0 : index
    %8 = vector.load %arg10[%c0_15, %c0_16] : memref<64x32xf32, #tpu.memory_space<vmem>>, vector<64x32xf32>
    %c0_17 = arith.constant 0 : index
    %c0_18 = arith.constant 0 : index
    %9 = vector.load %arg11[%c0_17, %c0_18] : memref<1x32xf32, #tpu.memory_space<vmem>>, vector<1x32xf32>
    %c0_19 = arith.constant 0 : index
    %c0_20 = arith.constant 0 : index
    %10 = vector.load %arg12[%c0_19, %c0_20] : memref<1x32xf32, #tpu.memory_space<vmem>>, vector<1x32xf32>
    %c0_21 = arith.constant 0 : index
    %c0_22 = arith.constant 0 : index
    %11 = vector.load %arg13[%c0_21, %c0_22] : memref<1x32xf32, #tpu.memory_space<vmem>>, vector<1x32xf32>
    %c0_23 = arith.constant 0 : index
    %c0_24 = arith.constant 0 : index
    %c0_25 = arith.constant 0 : index
    %12 = vector.load %arg1[%c0_23, %c0_24, %c0_25] : memref<2x9x32xf32, #tpu.memory_space<vmem>>, vector<1x9x32xf32>
    %13 = vector.shape_cast %12 : vector<1x9x32xf32> to vector<9x32xf32>
    %cst = arith.constant dense<0.000000e+00> : vector<9x96xf32>
    %14 = tpu.matmul %13, %0, %cst {dimension_numbers = #tpu.dot_dimension_numbers<[1], [0], [0], [1], [0, 0, 1, 1], [], []>} : vector<9x32xf32>, vector<32x96xf32>, vector<9x96xf32> -> vector<9x96xf32>
    %15 = vector.broadcast %1 : vector<1x96xf32> to vector<9x96xf32>
    %16 = arith.addf %14, %15 : vector<9x96xf32>
    %cst_26 = arith.constant 0.000000e+00 : f32
    %17 = vector.broadcast %cst_26 : f32 to vector<9x32xf32>
    %18 = vector.extract_strided_slice %16 {offsets = [0, 0], sizes = [9, 8], strides = [1, 1]} : vector<9x96xf32> to vector<9x8xf32>
    %19 = vector.extract_strided_slice %16 {offsets = [0, 32], sizes = [9, 8], strides = [1, 1]} : vector<9x96xf32> to vector<9x8xf32>
    %20 = vector.extract_strided_slice %16 {offsets = [0, 64], sizes = [9, 8], strides = [1, 1]} : vector<9x96xf32> to vector<9x8xf32>
    %cst_27 = arith.constant dense<0.000000e+00> : vector<9x9xf32>
    %21 = tpu.matmul %18, %19, %cst_27 {dimension_numbers = #tpu.dot_dimension_numbers<[1], [1], [0], [0], [0, 0, 1, 0], [], []>} : vector<9x8xf32>, vector<9x8xf32>, vector<9x9xf32> -> vector<9x9xf32>
    %cst_28 = arith.constant 0.353553385 : f32
    %22 = vector.broadcast %cst_28 : f32 to vector<9x9xf32>
    %23 = arith.mulf %21, %22 : vector<9x9xf32>
    %cst_29 = arith.constant dense<0xFF800000> : vector<9xf32>
    %24 = vector.multi_reduction <maximumf>, %23, %cst_29 [1] : vector<9x9xf32> to vector<9xf32>
    %25 = vector.shape_cast %24 : vector<9xf32> to vector<9x1xf32>
    %26 = vector.broadcast %25 : vector<9x1xf32> to vector<9x9xf32>
    %27 = arith.subf %23, %26 : vector<9x9xf32>
    %28 = math.exp %27 : vector<9x9xf32>
    %cst_30 = arith.constant dense<0.000000e+00> : vector<9xf32>
    %29 = vector.multi_reduction <add>, %28, %cst_30 [1] : vector<9x9xf32> to vector<9xf32>
    %30 = vector.shape_cast %29 : vector<9xf32> to vector<9x1xf32>
    %31 = tpu.reciprocal %30 {approx = true} : vector<9x1xf32> -> vector<9x1xf32>
    %32 = vector.broadcast %31 : vector<9x1xf32> to vector<9x9xf32>
    %33 = arith.mulf %28, %32 : vector<9x9xf32>
    %c0_31 = arith.constant 0 : index
    %c0_32 = arith.constant 0 : index
    %c0_33 = arith.constant 0 : index
    %c0_34 = arith.constant 0 : index
    %34 = vector.load %arg15[%c0_31, %c0_32, %c0_33, %c0_34] : memref<2x4x9x9xf32, #tpu.memory_space<vmem>>, vector<1x1x9x9xf32>
    %35 = vector.shape_cast %34 : vector<1x1x9x9xf32> to vector<9x9xf32>
    %36 = vector.shape_cast %33 : vector<9x9xf32> to vector<1x1x9x9xf32>
    tpu.vector_store %arg15[%c0_31, %c0_32, %c0_33, %c0_34], %36 {strides = array<i32>} : memref<2x4x9x9xf32, #tpu.memory_space<vmem>>, vector<1x1x9x9xf32>,
    %cst_35 = arith.constant dense<0.000000e+00> : vector<9x8xf32>
    %37 = tpu.matmul %33, %20, %cst_35 {dimension_numbers = #tpu.dot_dimension_numbers<[1], [0], [0], [1], [0, 0, 1, 1], [], []>} : vector<9x9xf32>, vector<9x8xf32>, vector<9x8xf32> -> vector<9x8xf32>
    %38 = vector.extract_strided_slice %2 {offsets = [0, 0], sizes = [8, 32], strides = [1, 1]} : vector<32x32xf32> to vector<8x32xf32>
    %cst_36 = arith.constant dense<0.000000e+00> : vector<9x32xf32>
    %39 = tpu.matmul %37, %38, %cst_36 {dimension_numbers = #tpu.dot_dimension_numbers<[1], [0], [0], [1], [0, 0, 1, 1], [], []>} : vector<9x8xf32>, vector<8x32xf32>, vector<9x32xf32> -> vector<9x32xf32>
    %40 = arith.addf %17, %39 : vector<9x32xf32>
    %41 = vector.extract_strided_slice %16 {offsets = [0, 8], sizes = [9, 8], strides = [1, 1]} : vector<9x96xf32> to vector<9x8xf32>
    %42 = vector.extract_strided_slice %16 {offsets = [0, 40], sizes = [9, 8], strides = [1, 1]} : vector<9x96xf32> to vector<9x8xf32>
    %43 = vector.extract_strided_slice %16 {offsets = [0, 72], sizes = [9, 8], strides = [1, 1]} : vector<9x96xf32> to vector<9x8xf32>
    %cst_37 = arith.constant dense<0.000000e+00> : vector<9x9xf32>
    %44 = tpu.matmul %41, %42, %cst_37 {dimension_numbers = #tpu.dot_dimension_numbers<[1], [1], [0], [0], [0, 0, 1, 0], [], []>} : vector<9x8xf32>, vector<9x8xf32>, vector<9x9xf32> -> vector<9x9xf32>
    %cst_38 = arith.constant 0.353553385 : f32
    %45 = vector.broadcast %cst_38 : f32 to vector<9x9xf32>
    %46 = arith.mulf %44, %45 : vector<9x9xf32>
    %cst_39 = arith.constant dense<0xFF800000> : vector<9xf32>
    %47 = vector.multi_reduction <maximumf>, %46, %cst_39 [1] : vector<9x9xf32> to vector<9xf32>
    %48 = vector.shape_cast %47 : vector<9xf32> to vector<9x1xf32>
    %49 = vector.broadcast %48 : vector<9x1xf32> to vector<9x9xf32>
    %50 = arith.subf %46, %49 : vector<9x9xf32>
    %51 = math.exp %50 : vector<9x9xf32>
    %cst_40 = arith.constant dense<0.000000e+00> : vector<9xf32>
    %52 = vector.multi_reduction <add>, %51, %cst_40 [1] : vector<9x9xf32> to vector<9xf32>
    %53 = vector.shape_cast %52 : vector<9xf32> to vector<9x1xf32>
    %54 = tpu.reciprocal %53 {approx = true} : vector<9x1xf32> -> vector<9x1xf32>
    %55 = vector.broadcast %54 : vector<9x1xf32> to vector<9x9xf32>
    %56 = arith.mulf %51, %55 : vector<9x9xf32>
    %c0_41 = arith.constant 0 : index
    %c1 = arith.constant 1 : index
    %c0_42 = arith.constant 0 : index
    %c0_43 = arith.constant 0 : index
    %57 = vector.load %arg15[%c0_41, %c1, %c0_42, %c0_43] : memref<2x4x9x9xf32, #tpu.memory_space<vmem>>, vector<1x1x9x9xf32>
    %58 = vector.shape_cast %57 : vector<1x1x9x9xf32> to vector<9x9xf32>
    %59 = vector.shape_cast %56 : vector<9x9xf32> to vector<1x1x9x9xf32>
    tpu.vector_store %arg15[%c0_41, %c1, %c0_42, %c0_43], %59 {strides = array<i32>} : memref<2x4x9x9xf32, #tpu.memory_space<vmem>>, vector<1x1x9x9xf32>,
    %cst_44 = arith.constant dense<0.000000e+00> : vector<9x8xf32>
    %60 = tpu.matmul %56, %43, %cst_44 {dimension_numbers = #tpu.dot_dimension_numbers<[1], [0], [0], [1], [0, 0, 1, 1], [], []>} : vector<9x9xf32>, vector<9x8xf32>, vector<9x8xf32> -> vector<9x8xf32>
    %61 = vector.extract_strided_slice %2 {offsets = [8, 0], sizes = [8, 32], strides = [1, 1]} : vector<32x32xf32> to vector<8x32xf32>
    %cst_45 = arith.constant dense<0.000000e+00> : vector<9x32xf32>
    %62 = tpu.matmul %60, %61, %cst_45 {dimension_numbers = #tpu.dot_dimension_numbers<[1], [0], [0], [1], [0, 0, 1, 1], [], []>} : vector<9x8xf32>, vector<8x32xf32>, vector<9x32xf32> -> vector<9x32xf32>
    %63 = arith.addf %40, %62 : vector<9x32xf32>
    %64 = vector.extract_strided_slice %16 {offsets = [0, 16], sizes = [9, 8], strides = [1, 1]} : vector<9x96xf32> to vector<9x8xf32>
    %65 = vector.extract_strided_slice %16 {offsets = [0, 48], sizes = [9, 8], strides = [1, 1]} : vector<9x96xf32> to vector<9x8xf32>
    %66 = vector.extract_strided_slice %16 {offsets = [0, 80], sizes = [9, 8], strides = [1, 1]} : vector<9x96xf32> to vector<9x8xf32>
    %cst_46 = arith.constant dense<0.000000e+00> : vector<9x9xf32>
    %67 = tpu.matmul %64, %65, %cst_46 {dimension_numbers = #tpu.dot_dimension_numbers<[1], [1], [0], [0], [0, 0, 1, 0], [], []>} : vector<9x8xf32>, vector<9x8xf32>, vector<9x9xf32> -> vector<9x9xf32>
    %cst_47 = arith.constant 0.353553385 : f32
    %68 = vector.broadcast %cst_47 : f32 to vector<9x9xf32>
    %69 = arith.mulf %67, %68 : vector<9x9xf32>
    %cst_48 = arith.constant dense<0xFF800000> : vector<9xf32>
    %70 = vector.multi_reduction <maximumf>, %69, %cst_48 [1] : vector<9x9xf32> to vector<9xf32>
    %71 = vector.shape_cast %70 : vector<9xf32> to vector<9x1xf32>
    %72 = vector.broadcast %71 : vector<9x1xf32> to vector<9x9xf32>
    %73 = arith.subf %69, %72 : vector<9x9xf32>
    %74 = math.exp %73 : vector<9x9xf32>
    %cst_49 = arith.constant dense<0.000000e+00> : vector<9xf32>
    %75 = vector.multi_reduction <add>, %74, %cst_49 [1] : vector<9x9xf32> to vector<9xf32>
    %76 = vector.shape_cast %75 : vector<9xf32> to vector<9x1xf32>
    %77 = tpu.reciprocal %76 {approx = true} : vector<9x1xf32> -> vector<9x1xf32>
    %78 = vector.broadcast %77 : vector<9x1xf32> to vector<9x9xf32>
    %79 = arith.mulf %74, %78 : vector<9x9xf32>
    %c0_50 = arith.constant 0 : index
    %c2 = arith.constant 2 : index
    %c0_51 = arith.constant 0 : index
    %c0_52 = arith.constant 0 : index
    %80 = vector.load %arg15[%c0_50, %c2, %c0_51, %c0_52] : memref<2x4x9x9xf32, #tpu.memory_space<vmem>>, vector<1x1x9x9xf32>
    %81 = vector.shape_cast %80 : vector<1x1x9x9xf32> to vector<9x9xf32>
    %82 = vector.shape_cast %79 : vector<9x9xf32> to vector<1x1x9x9xf32>
    tpu.vector_store %arg15[%c0_50, %c2, %c0_51, %c0_52], %82 {strides = array<i32>} : memref<2x4x9x9xf32, #tpu.memory_space<vmem>>, vector<1x1x9x9xf32>,
    %cst_53 = arith.constant dense<0.000000e+00> : vector<9x8xf32>
    %83 = tpu.matmul %79, %66, %cst_53 {dimension_numbers = #tpu.dot_dimension_numbers<[1], [0], [0], [1], [0, 0, 1, 1], [], []>} : vector<9x9xf32>, vector<9x8xf32>, vector<9x8xf32> -> vector<9x8xf32>
    %84 = vector.extract_strided_slice %2 {offsets = [16, 0], sizes = [8, 32], strides = [1, 1]} : vector<32x32xf32> to vector<8x32xf32>
    %cst_54 = arith.constant dense<0.000000e+00> : vector<9x32xf32>
    %85 = tpu.matmul %83, %84, %cst_54 {dimension_numbers = #tpu.dot_dimension_numbers<[1], [0], [0], [1], [0, 0, 1, 1], [], []>} : vector<9x8xf32>, vector<8x32xf32>, vector<9x32xf32> -> vector<9x32xf32>
    %86 = arith.addf %63, %85 : vector<9x32xf32>
    %87 = vector.extract_strided_slice %16 {offsets = [0, 24], sizes = [9, 8], strides = [1, 1]} : vector<9x96xf32> to vector<9x8xf32>
    %88 = vector.extract_strided_slice %16 {offsets = [0, 56], sizes = [9, 8], strides = [1, 1]} : vector<9x96xf32> to vector<9x8xf32>
    %89 = vector.extract_strided_slice %16 {offsets = [0, 88], sizes = [9, 8], strides = [1, 1]} : vector<9x96xf32> to vector<9x8xf32>
    %cst_55 = arith.constant dense<0.000000e+00> : vector<9x9xf32>
    %90 = tpu.matmul %87, %88, %cst_55 {dimension_numbers = #tpu.dot_dimension_numbers<[1], [1], [0], [0], [0, 0, 1, 0], [], []>} : vector<9x8xf32>, vector<9x8xf32>, vector<9x9xf32> -> vector<9x9xf32>
    %cst_56 = arith.constant 0.353553385 : f32
    %91 = vector.broadcast %cst_56 : f32 to vector<9x9xf32>
    %92 = arith.mulf %90, %91 : vector<9x9xf32>
    %cst_57 = arith.constant dense<0xFF800000> : vector<9xf32>
    %93 = vector.multi_reduction <maximumf>, %92, %cst_57 [1] : vector<9x9xf32> to vector<9xf32>
    %94 = vector.shape_cast %93 : vector<9xf32> to vector<9x1xf32>
    %95 = vector.broadcast %94 : vector<9x1xf32> to vector<9x9xf32>
    %96 = arith.subf %92, %95 : vector<9x9xf32>
    %97 = math.exp %96 : vector<9x9xf32>
    %cst_58 = arith.constant dense<0.000000e+00> : vector<9xf32>
    %98 = vector.multi_reduction <add>, %97, %cst_58 [1] : vector<9x9xf32> to vector<9xf32>
    %99 = vector.shape_cast %98 : vector<9xf32> to vector<9x1xf32>
    %100 = tpu.reciprocal %99 {approx = true} : vector<9x1xf32> -> vector<9x1xf32>
    %101 = vector.broadcast %100 : vector<9x1xf32> to vector<9x9xf32>
    %102 = arith.mulf %97, %101 : vector<9x9xf32>
    %c0_59 = arith.constant 0 : index
    %c3 = arith.constant 3 : index
    %c0_60 = arith.constant 0 : index
    %c0_61 = arith.constant 0 : index
    %103 = vector.load %arg15[%c0_59, %c3, %c0_60, %c0_61] : memref<2x4x9x9xf32, #tpu.memory_space<vmem>>, vector<1x1x9x9xf32>
    %104 = vector.shape_cast %103 : vector<1x1x9x9xf32> to vector<9x9xf32>
    %105 = vector.shape_cast %102 : vector<9x9xf32> to vector<1x1x9x9xf32>
    tpu.vector_store %arg15[%c0_59, %c3, %c0_60, %c0_61], %105 {strides = array<i32>} : memref<2x4x9x9xf32, #tpu.memory_space<vmem>>, vector<1x1x9x9xf32>,
    %cst_62 = arith.constant dense<0.000000e+00> : vector<9x8xf32>
    %106 = tpu.matmul %102, %89, %cst_62 {dimension_numbers = #tpu.dot_dimension_numbers<[1], [0], [0], [1], [0, 0, 1, 1], [], []>} : vector<9x9xf32>, vector<9x8xf32>, vector<9x8xf32> -> vector<9x8xf32>
    %107 = vector.extract_strided_slice %2 {offsets = [24, 0], sizes = [8, 32], strides = [1, 1]} : vector<32x32xf32> to vector<8x32xf32>
    %cst_63 = arith.constant dense<0.000000e+00> : vector<9x32xf32>
    %108 = tpu.matmul %106, %107, %cst_63 {dimension_numbers = #tpu.dot_dimension_numbers<[1], [0], [0], [1], [0, 0, 1, 1], [], []>} : vector<9x8xf32>, vector<8x32xf32>, vector<9x32xf32> -> vector<9x32xf32>
    %109 = arith.addf %86, %108 : vector<9x32xf32>
    %110 = vector.broadcast %3 : vector<1x32xf32> to vector<9x32xf32>
    %111 = arith.addf %109, %110 : vector<9x32xf32>
    %112 = arith.addf %111, %13 : vector<9x32xf32>
    %cst_64 = arith.constant dense<0.000000e+00> : vector<9xf32>
    %113 = vector.multi_reduction <add>, %112, %cst_64 [1] : vector<9x32xf32> to vector<9xf32>
    %114 = vector.shape_cast %113 : vector<9xf32> to vector<9x1xf32>
    %cst_65 = arith.constant 3.200000e+01 : f32
    %115 = vector.broadcast %cst_65 : f32 to vector<9x1xf32>
    %116 = arith.divf %114, %115 : vector<9x1xf32>
    %117 = vector.broadcast %116 : vector<9x1xf32> to vector<9x32xf32>
    %118 = arith.subf %112, %117 : vector<9x32xf32>
    %119 = arith.mulf %118, %118 : vector<9x32xf32>
    %cst_66 = arith.constant dense<0.000000e+00> : vector<9xf32>
    %120 = vector.multi_reduction <add>, %119, %cst_66 [1] : vector<9x32xf32> to vector<9xf32>
    %121 = vector.shape_cast %120 : vector<9xf32> to vector<9x1xf32>
    %cst_67 = arith.constant 3.200000e+01 : f32
    %122 = vector.broadcast %cst_67 : f32 to vector<9x1xf32>
    %123 = arith.divf %121, %122 : vector<9x1xf32>
    %124 = vector.broadcast %116 : vector<9x1xf32> to vector<9x32xf32>
    %125 = arith.subf %112, %124 : vector<9x32xf32>
    %cst_68 = arith.constant 9.99999974E-6 : f32
    %126 = vector.broadcast %cst_68 : f32 to vector<9x1xf32>
    %127 = arith.addf %123, %126 : vector<9x1xf32>
    %128 = math.rsqrt %127 : vector<9x1xf32>
    %129 = vector.broadcast %128 : vector<9x1xf32> to vector<9x32xf32>
    %130 = arith.mulf %125, %129 : vector<9x32xf32>
    %131 = vector.broadcast %4 : vector<1x32xf32> to vector<9x32xf32>
    %132 = arith.mulf %130, %131 : vector<9x32xf32>
    %133 = vector.broadcast %5 : vector<1x32xf32> to vector<9x32xf32>
    %134 = arith.addf %132, %133 : vector<9x32xf32>
    %cst_69 = arith.constant dense<0.000000e+00> : vector<9x64xf32>
    %135 = tpu.matmul %134, %6, %cst_69 {dimension_numbers = #tpu.dot_dimension_numbers<[1], [0], [0], [1], [0, 0, 1, 1], [], []>} : vector<9x32xf32>, vector<32x64xf32>, vector<9x64xf32> -> vector<9x64xf32>
    %136 = vector.broadcast %7 : vector<1x64xf32> to vector<9x64xf32>
    %137 = arith.addf %135, %136 : vector<9x64xf32>
    %cst_70 = arith.constant 0.000000e+00 : f32
    %138 = vector.broadcast %cst_70 : f32 to vector<9x64xf32>
    %139 = arith.maximumf %137, %138 : vector<9x64xf32>
    %cst_71 = arith.constant dense<0.000000e+00> : vector<9x32xf32>
    %140 = tpu.matmul %139, %8, %cst_71 {dimension_numbers = #tpu.dot_dimension_numbers<[1], [0], [0], [1], [0, 0, 1, 1], [], []>} : vector<9x64xf32>, vector<64x32xf32>, vector<9x32xf32> -> vector<9x32xf32>
    %141 = vector.broadcast %9 : vector<1x32xf32> to vector<9x32xf32>
    %142 = arith.addf %140, %141 : vector<9x32xf32>
    %143 = arith.addf %142, %134 : vector<9x32xf32>
    %cst_72 = arith.constant dense<0.000000e+00> : vector<9xf32>
    %144 = vector.multi_reduction <add>, %143, %cst_72 [1] : vector<9x32xf32> to vector<9xf32>
    %145 = vector.shape_cast %144 : vector<9xf32> to vector<9x1xf32>
    %cst_73 = arith.constant 3.200000e+01 : f32
    %146 = vector.broadcast %cst_73 : f32 to vector<9x1xf32>
    %147 = arith.divf %145, %146 : vector<9x1xf32>
    %148 = vector.broadcast %147 : vector<9x1xf32> to vector<9x32xf32>
    %149 = arith.subf %143, %148 : vector<9x32xf32>
    %150 = arith.mulf %149, %149 : vector<9x32xf32>
    %cst_74 = arith.constant dense<0.000000e+00> : vector<9xf32>
    %151 = vector.multi_reduction <add>, %150, %cst_74 [1] : vector<9x32xf32> to vector<9xf32>
    %152 = vector.shape_cast %151 : vector<9xf32> to vector<9x1xf32>
    %cst_75 = arith.constant 3.200000e+01 : f32
    %153 = vector.broadcast %cst_75 : f32 to vector<9x1xf32>
    %154 = arith.divf %152, %153 : vector<9x1xf32>
    %155 = vector.broadcast %147 : vector<9x1xf32> to vector<9x32xf32>
    %156 = arith.subf %143, %155 : vector<9x32xf32>
    %cst_76 = arith.constant 9.99999974E-6 : f32
    %157 = vector.broadcast %cst_76 : f32 to vector<9x1xf32>
    %158 = arith.addf %154, %157 : vector<9x1xf32>
    %159 = math.rsqrt %158 : vector<9x1xf32>
    %160 = vector.broadcast %159 : vector<9x1xf32> to vector<9x32xf32>
    %161 = arith.mulf %156, %160 : vector<9x32xf32>
    %162 = vector.broadcast %10 : vector<1x32xf32> to vector<9x32xf32>
    %163 = arith.mulf %161, %162 : vector<9x32xf32>
    %164 = vector.broadcast %11 : vector<1x32xf32> to vector<9x32xf32>
    %165 = arith.addf %163, %164 : vector<9x32xf32>
    %c0_77 = arith.constant 0 : index
    %c0_78 = arith.constant 0 : index
    %c0_79 = arith.constant 0 : index
    %166 = vector.load %arg14[%c0_77, %c0_78, %c0_79] : memref<2x9x32xf32, #tpu.memory_space<vmem>>, vector<1x9x32xf32>
    %167 = vector.shape_cast %166 : vector<1x9x32xf32> to vector<9x32xf32>
    %168 = vector.shape_cast %165 : vector<9x32xf32> to vector<1x9x32xf32>
    tpu.vector_store %arg14[%c0_77, %c0_78, %c0_79], %168 {strides = array<i32>} : memref<2x9x32xf32, #tpu.memory_space<vmem>>, vector<1x9x32xf32>,
    %c1_80 = arith.constant 1 : index
    %c0_81 = arith.constant 0 : index
    %c0_82 = arith.constant 0 : index
    %169 = vector.load %arg1[%c1_80, %c0_81, %c0_82] : memref<2x9x32xf32, #tpu.memory_space<vmem>>, vector<1x9x32xf32>
    %170 = vector.shape_cast %169 : vector<1x9x32xf32> to vector<9x32xf32>
    %cst_83 = arith.constant dense<0.000000e+00> : vector<9x96xf32>
    %171 = tpu.matmul %170, %0, %cst_83 {dimension_numbers = #tpu.dot_dimension_numbers<[1], [0], [0], [1], [0, 0, 1, 1], [], []>} : vector<9x32xf32>, vector<32x96xf32>, vector<9x96xf32> -> vector<9x96xf32>
    %172 = vector.broadcast %1 : vector<1x96xf32> to vector<9x96xf32>
    %173 = arith.addf %171, %172 : vector<9x96xf32>
    %cst_84 = arith.constant 0.000000e+00 : f32
    %174 = vector.broadcast %cst_84 : f32 to vector<9x32xf32>
    %175 = vector.extract_strided_slice %173 {offsets = [0, 0], sizes = [9, 8], strides = [1, 1]} : vector<9x96xf32> to vector<9x8xf32>
    %176 = vector.extract_strided_slice %173 {offsets = [0, 32], sizes = [9, 8], strides = [1, 1]} : vector<9x96xf32> to vector<9x8xf32>
    %177 = vector.extract_strided_slice %173 {offsets = [0, 64], sizes = [9, 8], strides = [1, 1]} : vector<9x96xf32> to vector<9x8xf32>
    %cst_85 = arith.constant dense<0.000000e+00> : vector<9x9xf32>
    %178 = tpu.matmul %175, %176, %cst_85 {dimension_numbers = #tpu.dot_dimension_numbers<[1], [1], [0], [0], [0, 0, 1, 0], [], []>} : vector<9x8xf32>, vector<9x8xf32>, vector<9x9xf32> -> vector<9x9xf32>
    %cst_86 = arith.constant 0.353553385 : f32
    %179 = vector.broadcast %cst_86 : f32 to vector<9x9xf32>
    %180 = arith.mulf %178, %179 : vector<9x9xf32>
    %cst_87 = arith.constant dense<0xFF800000> : vector<9xf32>
    %181 = vector.multi_reduction <maximumf>, %180, %cst_87 [1] : vector<9x9xf32> to vector<9xf32>
    %182 = vector.shape_cast %181 : vector<9xf32> to vector<9x1xf32>
    %183 = vector.broadcast %182 : vector<9x1xf32> to vector<9x9xf32>
    %184 = arith.subf %180, %183 : vector<9x9xf32>
    %185 = math.exp %184 : vector<9x9xf32>
    %cst_88 = arith.constant dense<0.000000e+00> : vector<9xf32>
    %186 = vector.multi_reduction <add>, %185, %cst_88 [1] : vector<9x9xf32> to vector<9xf32>
    %187 = vector.shape_cast %186 : vector<9xf32> to vector<9x1xf32>
    %188 = tpu.reciprocal %187 {approx = true} : vector<9x1xf32> -> vector<9x1xf32>
    %189 = vector.broadcast %188 : vector<9x1xf32> to vector<9x9xf32>
    %190 = arith.mulf %185, %189 : vector<9x9xf32>
    %c1_89 = arith.constant 1 : index
    %c0_90 = arith.constant 0 : index
    %c0_91 = arith.constant 0 : index
    %c0_92 = arith.constant 0 : index
    %191 = vector.load %arg15[%c1_89, %c0_90, %c0_91, %c0_92] : memref<2x4x9x9xf32, #tpu.memory_space<vmem>>, vector<1x1x9x9xf32>
    %192 = vector.shape_cast %191 : vector<1x1x9x9xf32> to vector<9x9xf32>
    %193 = vector.shape_cast %190 : vector<9x9xf32> to vector<1x1x9x9xf32>
    tpu.vector_store %arg15[%c1_89, %c0_90, %c0_91, %c0_92], %193 {strides = array<i32>} : memref<2x4x9x9xf32, #tpu.memory_space<vmem>>, vector<1x1x9x9xf32>,
    %cst_93 = arith.constant dense<0.000000e+00> : vector<9x8xf32>
    %194 = tpu.matmul %190, %177, %cst_93 {dimension_numbers = #tpu.dot_dimension_numbers<[1], [0], [0], [1], [0, 0, 1, 1], [], []>} : vector<9x9xf32>, vector<9x8xf32>, vector<9x8xf32> -> vector<9x8xf32>
    %195 = vector.extract_strided_slice %2 {offsets = [0, 0], sizes = [8, 32], strides = [1, 1]} : vector<32x32xf32> to vector<8x32xf32>
    %cst_94 = arith.constant dense<0.000000e+00> : vector<9x32xf32>
    %196 = tpu.matmul %194, %195, %cst_94 {dimension_numbers = #tpu.dot_dimension_numbers<[1], [0], [0], [1], [0, 0, 1, 1], [], []>} : vector<9x8xf32>, vector<8x32xf32>, vector<9x32xf32> -> vector<9x32xf32>
    %197 = arith.addf %174, %196 : vector<9x32xf32>
    %198 = vector.extract_strided_slice %173 {offsets = [0, 8], sizes = [9, 8], strides = [1, 1]} : vector<9x96xf32> to vector<9x8xf32>
    %199 = vector.extract_strided_slice %173 {offsets = [0, 40], sizes = [9, 8], strides = [1, 1]} : vector<9x96xf32> to vector<9x8xf32>
    %200 = vector.extract_strided_slice %173 {offsets = [0, 72], sizes = [9, 8], strides = [1, 1]} : vector<9x96xf32> to vector<9x8xf32>
    %cst_95 = arith.constant dense<0.000000e+00> : vector<9x9xf32>
    %201 = tpu.matmul %198, %199, %cst_95 {dimension_numbers = #tpu.dot_dimension_numbers<[1], [1], [0], [0], [0, 0, 1, 0], [], []>} : vector<9x8xf32>, vector<9x8xf32>, vector<9x9xf32> -> vector<9x9xf32>
    %cst_96 = arith.constant 0.353553385 : f32
    %202 = vector.broadcast %cst_96 : f32 to vector<9x9xf32>
    %203 = arith.mulf %201, %202 : vector<9x9xf32>
    %cst_97 = arith.constant dense<0xFF800000> : vector<9xf32>
    %204 = vector.multi_reduction <maximumf>, %203, %cst_97 [1] : vector<9x9xf32> to vector<9xf32>
    %205 = vector.shape_cast %204 : vector<9xf32> to vector<9x1xf32>
    %206 = vector.broadcast %205 : vector<9x1xf32> to vector<9x9xf32>
    %207 = arith.subf %203, %206 : vector<9x9xf32>
    %208 = math.exp %207 : vector<9x9xf32>
    %cst_98 = arith.constant dense<0.000000e+00> : vector<9xf32>
    %209 = vector.multi_reduction <add>, %208, %cst_98 [1] : vector<9x9xf32> to vector<9xf32>
    %210 = vector.shape_cast %209 : vector<9xf32> to vector<9x1xf32>
    %211 = tpu.reciprocal %210 {approx = true} : vector<9x1xf32> -> vector<9x1xf32>
    %212 = vector.broadcast %211 : vector<9x1xf32> to vector<9x9xf32>
    %213 = arith.mulf %208, %212 : vector<9x9xf32>
    %c1_99 = arith.constant 1 : index
    %c1_100 = arith.constant 1 : index
    %c0_101 = arith.constant 0 : index
    %c0_102 = arith.constant 0 : index
    %214 = vector.load %arg15[%c1_99, %c1_100, %c0_101, %c0_102] : memref<2x4x9x9xf32, #tpu.memory_space<vmem>>, vector<1x1x9x9xf32>
    %215 = vector.shape_cast %214 : vector<1x1x9x9xf32> to vector<9x9xf32>
    %216 = vector.shape_cast %213 : vector<9x9xf32> to vector<1x1x9x9xf32>
    tpu.vector_store %arg15[%c1_99, %c1_100, %c0_101, %c0_102], %216 {strides = array<i32>} : memref<2x4x9x9xf32, #tpu.memory_space<vmem>>, vector<1x1x9x9xf32>,
    %cst_103 = arith.constant dense<0.000000e+00> : vector<9x8xf32>
    %217 = tpu.matmul %213, %200, %cst_103 {dimension_numbers = #tpu.dot_dimension_numbers<[1], [0], [0], [1], [0, 0, 1, 1], [], []>} : vector<9x9xf32>, vector<9x8xf32>, vector<9x8xf32> -> vector<9x8xf32>
    %218 = vector.extract_strided_slice %2 {offsets = [8, 0], sizes = [8, 32], strides = [1, 1]} : vector<32x32xf32> to vector<8x32xf32>
    %cst_104 = arith.constant dense<0.000000e+00> : vector<9x32xf32>
    %219 = tpu.matmul %217, %218, %cst_104 {dimension_numbers = #tpu.dot_dimension_numbers<[1], [0], [0], [1], [0, 0, 1, 1], [], []>} : vector<9x8xf32>, vector<8x32xf32>, vector<9x32xf32> -> vector<9x32xf32>
    %220 = arith.addf %197, %219 : vector<9x32xf32>
    %221 = vector.extract_strided_slice %173 {offsets = [0, 16], sizes = [9, 8], strides = [1, 1]} : vector<9x96xf32> to vector<9x8xf32>
    %222 = vector.extract_strided_slice %173 {offsets = [0, 48], sizes = [9, 8], strides = [1, 1]} : vector<9x96xf32> to vector<9x8xf32>
    %223 = vector.extract_strided_slice %173 {offsets = [0, 80], sizes = [9, 8], strides = [1, 1]} : vector<9x96xf32> to vector<9x8xf32>
    %cst_105 = arith.constant dense<0.000000e+00> : vector<9x9xf32>
    %224 = tpu.matmul %221, %222, %cst_105 {dimension_numbers = #tpu.dot_dimension_numbers<[1], [1], [0], [0], [0, 0, 1, 0], [], []>} : vector<9x8xf32>, vector<9x8xf32>, vector<9x9xf32> -> vector<9x9xf32>
    %cst_106 = arith.constant 0.353553385 : f32
    %225 = vector.broadcast %cst_106 : f32 to vector<9x9xf32>
    %226 = arith.mulf %224, %225 : vector<9x9xf32>
    %cst_107 = arith.constant dense<0xFF800000> : vector<9xf32>
    %227 = vector.multi_reduction <maximumf>, %226, %cst_107 [1] : vector<9x9xf32> to vector<9xf32>
    %228 = vector.shape_cast %227 : vector<9xf32> to vector<9x1xf32>
    %229 = vector.broadcast %228 : vector<9x1xf32> to vector<9x9xf32>
    %230 = arith.subf %226, %229 : vector<9x9xf32>
    %231 = math.exp %230 : vector<9x9xf32>
    %cst_108 = arith.constant dense<0.000000e+00> : vector<9xf32>
    %232 = vector.multi_reduction <add>, %231, %cst_108 [1] : vector<9x9xf32> to vector<9xf32>
    %233 = vector.shape_cast %232 : vector<9xf32> to vector<9x1xf32>
    %234 = tpu.reciprocal %233 {approx = true} : vector<9x1xf32> -> vector<9x1xf32>
    %235 = vector.broadcast %234 : vector<9x1xf32> to vector<9x9xf32>
    %236 = arith.mulf %231, %235 : vector<9x9xf32>
    %c1_109 = arith.constant 1 : index
    %c2_110 = arith.constant 2 : index
    %c0_111 = arith.constant 0 : index
    %c0_112 = arith.constant 0 : index
    %237 = vector.load %arg15[%c1_109, %c2_110, %c0_111, %c0_112] : memref<2x4x9x9xf32, #tpu.memory_space<vmem>>, vector<1x1x9x9xf32>
    %238 = vector.shape_cast %237 : vector<1x1x9x9xf32> to vector<9x9xf32>
    %239 = vector.shape_cast %236 : vector<9x9xf32> to vector<1x1x9x9xf32>
    tpu.vector_store %arg15[%c1_109, %c2_110, %c0_111, %c0_112], %239 {strides = array<i32>} : memref<2x4x9x9xf32, #tpu.memory_space<vmem>>, vector<1x1x9x9xf32>,
    %cst_113 = arith.constant dense<0.000000e+00> : vector<9x8xf32>
    %240 = tpu.matmul %236, %223, %cst_113 {dimension_numbers = #tpu.dot_dimension_numbers<[1], [0], [0], [1], [0, 0, 1, 1], [], []>} : vector<9x9xf32>, vector<9x8xf32>, vector<9x8xf32> -> vector<9x8xf32>
    %241 = vector.extract_strided_slice %2 {offsets = [16, 0], sizes = [8, 32], strides = [1, 1]} : vector<32x32xf32> to vector<8x32xf32>
    %cst_114 = arith.constant dense<0.000000e+00> : vector<9x32xf32>
    %242 = tpu.matmul %240, %241, %cst_114 {dimension_numbers = #tpu.dot_dimension_numbers<[1], [0], [0], [1], [0, 0, 1, 1], [], []>} : vector<9x8xf32>, vector<8x32xf32>, vector<9x32xf32> -> vector<9x32xf32>
    %243 = arith.addf %220, %242 : vector<9x32xf32>
    %244 = vector.extract_strided_slice %173 {offsets = [0, 24], sizes = [9, 8], strides = [1, 1]} : vector<9x96xf32> to vector<9x8xf32>
    %245 = vector.extract_strided_slice %173 {offsets = [0, 56], sizes = [9, 8], strides = [1, 1]} : vector<9x96xf32> to vector<9x8xf32>
    %246 = vector.extract_strided_slice %173 {offsets = [0, 88], sizes = [9, 8], strides = [1, 1]} : vector<9x96xf32> to vector<9x8xf32>
    %cst_115 = arith.constant dense<0.000000e+00> : vector<9x9xf32>
    %247 = tpu.matmul %244, %245, %cst_115 {dimension_numbers = #tpu.dot_dimension_numbers<[1], [1], [0], [0], [0, 0, 1, 0], [], []>} : vector<9x8xf32>, vector<9x8xf32>, vector<9x9xf32> -> vector<9x9xf32>
    %cst_116 = arith.constant 0.353553385 : f32
    %248 = vector.broadcast %cst_116 : f32 to vector<9x9xf32>
    %249 = arith.mulf %247, %248 : vector<9x9xf32>
    %cst_117 = arith.constant dense<0xFF800000> : vector<9xf32>
    %250 = vector.multi_reduction <maximumf>, %249, %cst_117 [1] : vector<9x9xf32> to vector<9xf32>
    %251 = vector.shape_cast %250 : vector<9xf32> to vector<9x1xf32>
    %252 = vector.broadcast %251 : vector<9x1xf32> to vector<9x9xf32>
    %253 = arith.subf %249, %252 : vector<9x9xf32>
    %254 = math.exp %253 : vector<9x9xf32>
    %cst_118 = arith.constant dense<0.000000e+00> : vector<9xf32>
    %255 = vector.multi_reduction <add>, %254, %cst_118 [1] : vector<9x9xf32> to vector<9xf32>
    %256 = vector.shape_cast %255 : vector<9xf32> to vector<9x1xf32>
    %257 = tpu.reciprocal %256 {approx = true} : vector<9x1xf32> -> vector<9x1xf32>
    %258 = vector.broadcast %257 : vector<9x1xf32> to vector<9x9xf32>
    %259 = arith.mulf %254, %258 : vector<9x9xf32>
    %c1_119 = arith.constant 1 : index
    %c3_120 = arith.constant 3 : index
    %c0_121 = arith.constant 0 : index
    %c0_122 = arith.constant 0 : index
    %260 = vector.load %arg15[%c1_119, %c3_120, %c0_121, %c0_122] : memref<2x4x9x9xf32, #tpu.memory_space<vmem>>, vector<1x1x9x9xf32>
    %261 = vector.shape_cast %260 : vector<1x1x9x9xf32> to vector<9x9xf32>
    %262 = vector.shape_cast %259 : vector<9x9xf32> to vector<1x1x9x9xf32>
    tpu.vector_store %arg15[%c1_119, %c3_120, %c0_121, %c0_122], %262 {strides = array<i32>} : memref<2x4x9x9xf32, #tpu.memory_space<vmem>>, vector<1x1x9x9xf32>,
    %cst_123 = arith.constant dense<0.000000e+00> : vector<9x8xf32>
    %263 = tpu.matmul %259, %246, %cst_123 {dimension_numbers = #tpu.dot_dimension_numbers<[1], [0], [0], [1], [0, 0, 1, 1], [], []>} : vector<9x9xf32>, vector<9x8xf32>, vector<9x8xf32> -> vector<9x8xf32>
    %264 = vector.extract_strided_slice %2 {offsets = [24, 0], sizes = [8, 32], strides = [1, 1]} : vector<32x32xf32> to vector<8x32xf32>
    %cst_124 = arith.constant dense<0.000000e+00> : vector<9x32xf32>
    %265 = tpu.matmul %263, %264, %cst_124 {dimension_numbers = #tpu.dot_dimension_numbers<[1], [0], [0], [1], [0, 0, 1, 1], [], []>} : vector<9x8xf32>, vector<8x32xf32>, vector<9x32xf32> -> vector<9x32xf32>
    %266 = arith.addf %243, %265 : vector<9x32xf32>
    %267 = vector.broadcast %3 : vector<1x32xf32> to vector<9x32xf32>
    %268 = arith.addf %266, %267 : vector<9x32xf32>
    %269 = arith.addf %268, %170 : vector<9x32xf32>
    %cst_125 = arith.constant dense<0.000000e+00> : vector<9xf32>
    %270 = vector.multi_reduction <add>, %269, %cst_125 [1] : vector<9x32xf32> to vector<9xf32>
    %271 = vector.shape_cast %270 : vector<9xf32> to vector<9x1xf32>
    %cst_126 = arith.constant 3.200000e+01 : f32
    %272 = vector.broadcast %cst_126 : f32 to vector<9x1xf32>
    %273 = arith.divf %271, %272 : vector<9x1xf32>
    %274 = vector.broadcast %273 : vector<9x1xf32> to vector<9x32xf32>
    %275 = arith.subf %269, %274 : vector<9x32xf32>
    %276 = arith.mulf %275, %275 : vector<9x32xf32>
    %cst_127 = arith.constant dense<0.000000e+00> : vector<9xf32>
    %277 = vector.multi_reduction <add>, %276, %cst_127 [1] : vector<9x32xf32> to vector<9xf32>
    %278 = vector.shape_cast %277 : vector<9xf32> to vector<9x1xf32>
    %cst_128 = arith.constant 3.200000e+01 : f32
    %279 = vector.broadcast %cst_128 : f32 to vector<9x1xf32>
    %280 = arith.divf %278, %279 : vector<9x1xf32>
    %281 = vector.broadcast %273 : vector<9x1xf32> to vector<9x32xf32>
    %282 = arith.subf %269, %281 : vector<9x32xf32>
    %cst_129 = arith.constant 9.99999974E-6 : f32
    %283 = vector.broadcast %cst_129 : f32 to vector<9x1xf32>
    %284 = arith.addf %280, %283 : vector<9x1xf32>
    %285 = math.rsqrt %284 : vector<9x1xf32>
    %286 = vector.broadcast %285 : vector<9x1xf32> to vector<9x32xf32>
    %287 = arith.mulf %282, %286 : vector<9x32xf32>
    %288 = vector.broadcast %4 : vector<1x32xf32> to vector<9x32xf32>
    %289 = arith.mulf %287, %288 : vector<9x32xf32>
    %290 = vector.broadcast %5 : vector<1x32xf32> to vector<9x32xf32>
    %291 = arith.addf %289, %290 : vector<9x32xf32>
    %cst_130 = arith.constant dense<0.000000e+00> : vector<9x64xf32>
    %292 = tpu.matmul %291, %6, %cst_130 {dimension_numbers = #tpu.dot_dimension_numbers<[1], [0], [0], [1], [0, 0, 1, 1], [], []>} : vector<9x32xf32>, vector<32x64xf32>, vector<9x64xf32> -> vector<9x64xf32>
    %293 = vector.broadcast %7 : vector<1x64xf32> to vector<9x64xf32>
    %294 = arith.addf %292, %293 : vector<9x64xf32>
    %cst_131 = arith.constant 0.000000e+00 : f32
    %295 = vector.broadcast %cst_131 : f32 to vector<9x64xf32>
    %296 = arith.maximumf %294, %295 : vector<9x64xf32>
    %cst_132 = arith.constant dense<0.000000e+00> : vector<9x32xf32>
    %297 = tpu.matmul %296, %8, %cst_132 {dimension_numbers = #tpu.dot_dimension_numbers<[1], [0], [0], [1], [0, 0, 1, 1], [], []>} : vector<9x64xf32>, vector<64x32xf32>, vector<9x32xf32> -> vector<9x32xf32>
    %298 = vector.broadcast %9 : vector<1x32xf32> to vector<9x32xf32>
    %299 = arith.addf %297, %298 : vector<9x32xf32>
    %300 = arith.addf %299, %291 : vector<9x32xf32>
    %cst_133 = arith.constant dense<0.000000e+00> : vector<9xf32>
    %301 = vector.multi_reduction <add>, %300, %cst_133 [1] : vector<9x32xf32> to vector<9xf32>
    %302 = vector.shape_cast %301 : vector<9xf32> to vector<9x1xf32>
    %cst_134 = arith.constant 3.200000e+01 : f32
    %303 = vector.broadcast %cst_134 : f32 to vector<9x1xf32>
    %304 = arith.divf %302, %303 : vector<9x1xf32>
    %305 = vector.broadcast %304 : vector<9x1xf32> to vector<9x32xf32>
    %306 = arith.subf %300, %305 : vector<9x32xf32>
    %307 = arith.mulf %306, %306 : vector<9x32xf32>
    %cst_135 = arith.constant dense<0.000000e+00> : vector<9xf32>
    %308 = vector.multi_reduction <add>, %307, %cst_135 [1] : vector<9x32xf32> to vector<9xf32>
    %309 = vector.shape_cast %308 : vector<9xf32> to vector<9x1xf32>
    %cst_136 = arith.constant 3.200000e+01 : f32
    %310 = vector.broadcast %cst_136 : f32 to vector<9x1xf32>
    %311 = arith.divf %309, %310 : vector<9x1xf32>
    %312 = vector.broadcast %304 : vector<9x1xf32> to vector<9x32xf32>
    %313 = arith.subf %300, %312 : vector<9x32xf32>
    %cst_137 = arith.constant 9.99999974E-6 : f32
    %314 = vector.broadcast %cst_137 : f32 to vector<9x1xf32>
    %315 = arith.addf %311, %314 : vector<9x1xf32>
    %316 = math.rsqrt %315 : vector<9x1xf32>
    %317 = vector.broadcast %316 : vector<9x1xf32> to vector<9x32xf32>
    %318 = arith.mulf %313, %317 : vector<9x32xf32>
    %319 = vector.broadcast %10 : vector<1x32xf32> to vector<9x32xf32>
    %320 = arith.mulf %318, %319 : vector<9x32xf32>
    %321 = vector.broadcast %11 : vector<1x32xf32> to vector<9x32xf32>
    %322 = arith.addf %320, %321 : vector<9x32xf32>
    %c1_138 = arith.constant 1 : index
    %c0_139 = arith.constant 0 : index
    %c0_140 = arith.constant 0 : index
    %323 = vector.load %arg14[%c1_138, %c0_139, %c0_140] : memref<2x9x32xf32, #tpu.memory_space<vmem>>, vector<1x9x32xf32>
    %324 = vector.shape_cast %323 : vector<1x9x32xf32> to vector<9x32xf32>
    %325 = vector.shape_cast %322 : vector<9x32xf32> to vector<1x9x32xf32>
    tpu.vector_store %arg14[%c1_138, %c0_139, %c0_140], %325 {strides = array<i32>} : memref<2x9x32xf32, #tpu.memory_space<vmem>>, vector<1x9x32xf32>,
    return
  }
  func.func @transform_0(%arg0: i32) -> (i32, i32, i32) {
    %c0_i32 = arith.constant 0 : i32
    %c0_i32_0 = arith.constant 0 : i32
    %c0_i32_1 = arith.constant 0 : i32
    %c0_i32_2 = arith.constant 0 : i32
    return %c0_i32, %c0_i32_0, %c0_i32_1 : i32, i32, i32
  }
  func.func @transform_1(%arg0: i32) -> (i32, i32) {
    %c0_i32 = arith.constant 0 : i32
    %c0_i32_0 = arith.constant 0 : i32
    %c0_i32_1 = arith.constant 0 : i32
    return %c0_i32, %c0_i32_0 : i32, i32
  }
  func.func @transform_2(%arg0: i32) -> (i32, i32) {
    %c0_i32 = arith.constant 0 : i32
    %c0_i32_0 = arith.constant 0 : i32
    %c0_i32_1 = arith.constant 0 : i32
    return %c0_i32, %c0_i32_0 : i32, i32
  }
  func.func @transform_3(%arg0: i32) -> (i32, i32) {
    %c0_i32 = arith.constant 0 : i32
    %c0_i32_0 = arith.constant 0 : i32
    %c0_i32_1 = arith.constant 0 : i32
    return %c0_i32, %c0_i32_0 : i32, i32
  }
  func.func @transform_4(%arg0: i32) -> (i32, i32) {
    %c0_i32 = arith.constant 0 : i32
    %c0_i32_0 = arith.constant 0 : i32
    %c0_i32_1 = arith.constant 0 : i32
    return %c0_i32, %c0_i32_0 : i32, i32
  }
  func.func @transform_5(%arg0: i32) -> (i32, i32) {
    %c0_i32 = arith.constant 0 : i32
    %c0_i32_0 = arith.constant 0 : i32
    %c0_i32_1 = arith.constant 0 : i32
    return %c0_i32, %c0_i32_0 : i32, i32
  }
  func.func @transform_6(%arg0: i32) -> (i32, i32) {
    %c0_i32 = arith.constant 0 : i32
    %c0_i32_0 = arith.constant 0 : i32
    %c0_i32_1 = arith.constant 0 : i32
    return %c0_i32, %c0_i32_0 : i32, i32
  }
  func.func @transform_7(%arg0: i32) -> (i32, i32) {
    %c0_i32 = arith.constant 0 : i32
    %c0_i32_0 = arith.constant 0 : i32
    %c0_i32_1 = arith.constant 0 : i32
    return %c0_i32, %c0_i32_0 : i32, i32
  }
  func.func @transform_8(%arg0: i32) -> (i32, i32) {
    %c0_i32 = arith.constant 0 : i32
    %c0_i32_0 = arith.constant 0 : i32
    %c0_i32_1 = arith.constant 0 : i32
    return %c0_i32, %c0_i32_0 : i32, i32
  }
  func.func @transform_9(%arg0: i32) -> (i32, i32) {
    %c0_i32 = arith.constant 0 : i32
    %c0_i32_0 = arith.constant 0 : i32
    %c0_i32_1 = arith.constant 0 : i32
    return %c0_i32, %c0_i32_0 : i32, i32
  }
  func.func @transform_10(%arg0: i32) -> (i32, i32) {
    %c0_i32 = arith.constant 0 : i32
    %c0_i32_0 = arith.constant 0 : i32
    %c0_i32_1 = arith.constant 0 : i32
    return %c0_i32, %c0_i32_0 : i32, i32
  }
  func.func @transform_11(%arg0: i32) -> (i32, i32) {
    %c0_i32 = arith.constant 0 : i32
    %c0_i32_0 = arith.constant 0 : i32
    %c0_i32_1 = arith.constant 0 : i32
    return %c0_i32, %c0_i32_0 : i32, i32
  }
  func.func @transform_12(%arg0: i32) -> (i32, i32) {
    %c0_i32 = arith.constant 0 : i32
    %c0_i32_0 = arith.constant 0 : i32
    %c0_i32_1 = arith.constant 0 : i32
    return %c0_i32, %c0_i32_0 : i32, i32
  }
  func.func @transform_13(%arg0: i32) -> (i32, i32, i32) {
    %c0_i32 = arith.constant 0 : i32
    %c0_i32_0 = arith.constant 0 : i32
    %c0_i32_1 = arith.constant 0 : i32
    %c0_i32_2 = arith.constant 0 : i32
    return %c0_i32, %c0_i32_0, %c0_i32_1 : i32, i32, i32
  }
  func.func @transform_14(%arg0: i32) -> (i32, i32, i32, i32) {
    %c0_i32 = arith.constant 0 : i32
    %c0_i32_0 = arith.constant 0 : i32
    %c0_i32_1 = arith.constant 0 : i32
    %c0_i32_2 = arith.constant 0 : i32
    %c0_i32_3 = arith.constant 0 : i32
    return %c0_i32, %c0_i32_0, %c0_i32_1, %c0_i32_2 : i32, i32, i32, i32
  }
}

module attributes {stable_mosaic.version = 11 : i64} {
  func.func @kernel(%arg0: i32, %arg1: memref<2x8x32xf32, #tpu.memory_space<vmem>>, %arg2: memref<32x16xf32, #tpu.memory_space<vmem>>, %arg3: memref<1x16xf32, #tpu.memory_space<vmem>>, %arg4: memref<16x16xf32, #tpu.memory_space<vmem>>, %arg5: memref<1x16xf32, #tpu.memory_space<vmem>>, %arg6: memref<2x8x16xf32, #tpu.memory_space<vmem>>) attributes {dimension_semantics = [#tpu.dimension_semantics<arbitrary>], iteration_bounds = array<i64: 1>, scalar_prefetch = 0 : i64, scratch_operands = 0 : i64, tpu.core_type = #tpu.core_type<tc>, window_params = [{pipeline_mode = #tpu.pipeline_mode<synchronous>, transform_indices = @transform_0, window_bounds = array<i64: 2, 8, 32>}, {pipeline_mode = #tpu.pipeline_mode<synchronous>, transform_indices = @transform_1, window_bounds = array<i64: 32, 16>}, {pipeline_mode = #tpu.pipeline_mode<synchronous>, transform_indices = @transform_2, window_bounds = array<i64: 1, 16>}, {pipeline_mode = #tpu.pipeline_mode<synchronous>, transform_indices = @transform_3, window_bounds = array<i64: 16, 16>}, {pipeline_mode = #tpu.pipeline_mode<synchronous>, transform_indices = @transform_4, window_bounds = array<i64: 1, 16>}, {pipeline_mode = #tpu.pipeline_mode<synchronous>, transform_indices = @transform_5, window_bounds = array<i64: 2, 8, 16>}]} {
    %c0 = arith.constant 0 : index
    %c0_0 = arith.constant 0 : index
    %0 = vector.load %arg2[%c0, %c0_0] : memref<32x16xf32, #tpu.memory_space<vmem>>, vector<32x16xf32>
    %c0_1 = arith.constant 0 : index
    %c0_2 = arith.constant 0 : index
    %1 = vector.load %arg3[%c0_1, %c0_2] : memref<1x16xf32, #tpu.memory_space<vmem>>, vector<1x16xf32>
    %c0_3 = arith.constant 0 : index
    %c0_4 = arith.constant 0 : index
    %2 = vector.load %arg4[%c0_3, %c0_4] : memref<16x16xf32, #tpu.memory_space<vmem>>, vector<16x16xf32>
    %c0_5 = arith.constant 0 : index
    %c0_6 = arith.constant 0 : index
    %3 = vector.load %arg5[%c0_5, %c0_6] : memref<1x16xf32, #tpu.memory_space<vmem>>, vector<1x16xf32>
    %c0_7 = arith.constant 0 : index
    %c0_8 = arith.constant 0 : index
    %c0_9 = arith.constant 0 : index
    %4 = vector.load %arg1[%c0_7, %c0_8, %c0_9] : memref<2x8x32xf32, #tpu.memory_space<vmem>>, vector<1x8x32xf32>
    %5 = vector.shape_cast %4 : vector<1x8x32xf32> to vector<8x32xf32>
    %cst = arith.constant dense<0.000000e+00> : vector<8x16xf32>
    %6 = tpu.matmul %5, %0, %cst {dimension_numbers = #tpu.dot_dimension_numbers<[1], [0], [0], [1], [0, 0, 1, 1], [], []>} : vector<8x32xf32>, vector<32x16xf32>, vector<8x16xf32> -> vector<8x16xf32>
    %7 = vector.broadcast %1 : vector<1x16xf32> to vector<8x16xf32>
    %8 = arith.addf %6, %7 : vector<8x16xf32>
    %cst_10 = arith.constant 0.000000e+00 : f32
    %9 = vector.broadcast %cst_10 : f32 to vector<8x16xf32>
    %10 = arith.cmpf oge, %8, %9 : vector<8x16xf32>
    %cst_11 = arith.constant 1.000000e-01 : f32
    %11 = vector.broadcast %cst_11 : f32 to vector<8x16xf32>
    %12 = arith.mulf %11, %8 : vector<8x16xf32>
    %13 = arith.select %10, %8, %12 : vector<8x16xi1>, vector<8x16xf32>
    %cst_12 = arith.constant dense<0.000000e+00> : vector<8x16xf32>
    %14 = tpu.matmul %13, %2, %cst_12 {dimension_numbers = #tpu.dot_dimension_numbers<[1], [0], [0], [1], [0, 0, 1, 1], [], []>} : vector<8x16xf32>, vector<16x16xf32>, vector<8x16xf32> -> vector<8x16xf32>
    %15 = vector.broadcast %3 : vector<1x16xf32> to vector<8x16xf32>
    %16 = arith.addf %14, %15 : vector<8x16xf32>
    %c0_13 = arith.constant 0 : index
    %c0_14 = arith.constant 0 : index
    %c0_15 = arith.constant 0 : index
    %17 = vector.load %arg6[%c0_13, %c0_14, %c0_15] : memref<2x8x16xf32, #tpu.memory_space<vmem>>, vector<1x8x16xf32>
    %18 = vector.shape_cast %17 : vector<1x8x16xf32> to vector<8x16xf32>
    %19 = vector.shape_cast %16 : vector<8x16xf32> to vector<1x8x16xf32>
    tpu.vector_store %arg6[%c0_13, %c0_14, %c0_15], %19 {strides = array<i32>} : memref<2x8x16xf32, #tpu.memory_space<vmem>>, vector<1x8x16xf32>,
    %c1 = arith.constant 1 : index
    %c0_16 = arith.constant 0 : index
    %c0_17 = arith.constant 0 : index
    %20 = vector.load %arg1[%c1, %c0_16, %c0_17] : memref<2x8x32xf32, #tpu.memory_space<vmem>>, vector<1x8x32xf32>
    %21 = vector.shape_cast %20 : vector<1x8x32xf32> to vector<8x32xf32>
    %cst_18 = arith.constant dense<0.000000e+00> : vector<8x16xf32>
    %22 = tpu.matmul %21, %0, %cst_18 {dimension_numbers = #tpu.dot_dimension_numbers<[1], [0], [0], [1], [0, 0, 1, 1], [], []>} : vector<8x32xf32>, vector<32x16xf32>, vector<8x16xf32> -> vector<8x16xf32>
    %23 = vector.broadcast %1 : vector<1x16xf32> to vector<8x16xf32>
    %24 = arith.addf %22, %23 : vector<8x16xf32>
    %cst_19 = arith.constant 0.000000e+00 : f32
    %25 = vector.broadcast %cst_19 : f32 to vector<8x16xf32>
    %26 = arith.cmpf oge, %24, %25 : vector<8x16xf32>
    %cst_20 = arith.constant 1.000000e-01 : f32
    %27 = vector.broadcast %cst_20 : f32 to vector<8x16xf32>
    %28 = arith.mulf %27, %24 : vector<8x16xf32>
    %29 = arith.select %26, %24, %28 : vector<8x16xi1>, vector<8x16xf32>
    %cst_21 = arith.constant dense<0.000000e+00> : vector<8x16xf32>
    %30 = tpu.matmul %29, %2, %cst_21 {dimension_numbers = #tpu.dot_dimension_numbers<[1], [0], [0], [1], [0, 0, 1, 1], [], []>} : vector<8x16xf32>, vector<16x16xf32>, vector<8x16xf32> -> vector<8x16xf32>
    %31 = vector.broadcast %3 : vector<1x16xf32> to vector<8x16xf32>
    %32 = arith.addf %30, %31 : vector<8x16xf32>
    %c1_22 = arith.constant 1 : index
    %c0_23 = arith.constant 0 : index
    %c0_24 = arith.constant 0 : index
    %33 = vector.load %arg6[%c1_22, %c0_23, %c0_24] : memref<2x8x16xf32, #tpu.memory_space<vmem>>, vector<1x8x16xf32>
    %34 = vector.shape_cast %33 : vector<1x8x16xf32> to vector<8x16xf32>
    %35 = vector.shape_cast %32 : vector<8x16xf32> to vector<1x8x16xf32>
    tpu.vector_store %arg6[%c1_22, %c0_23, %c0_24], %35 {strides = array<i32>} : memref<2x8x16xf32, #tpu.memory_space<vmem>>, vector<1x8x16xf32>,
    return
  }
  func.func @transform_0(%arg0: i32) -> (i32, i32, i32) {
    %c0_i32 = arith.constant 0 : i32
    %c0_i32_0 = arith.constant 0 : i32
    %c0_i32_1 = arith.constant 0 : i32
    %c0_i32_2 = arith.constant 0 : i32
    return %c0_i32, %c0_i32_0, %c0_i32_1 : i32, i32, i32
  }
  func.func @transform_1(%arg0: i32) -> (i32, i32) {
    %c0_i32 = arith.constant 0 : i32
    %c0_i32_0 = arith.constant 0 : i32
    %c0_i32_1 = arith.constant 0 : i32
    return %c0_i32, %c0_i32_0 : i32, i32
  }
  func.func @transform_2(%arg0: i32) -> (i32, i32) {
    %c0_i32 = arith.constant 0 : i32
    %c0_i32_0 = arith.constant 0 : i32
    %c0_i32_1 = arith.constant 0 : i32
    return %c0_i32, %c0_i32_0 : i32, i32
  }
  func.func @transform_3(%arg0: i32) -> (i32, i32) {
    %c0_i32 = arith.constant 0 : i32
    %c0_i32_0 = arith.constant 0 : i32
    %c0_i32_1 = arith.constant 0 : i32
    return %c0_i32, %c0_i32_0 : i32, i32
  }
  func.func @transform_4(%arg0: i32) -> (i32, i32) {
    %c0_i32 = arith.constant 0 : i32
    %c0_i32_0 = arith.constant 0 : i32
    %c0_i32_1 = arith.constant 0 : i32
    return %c0_i32, %c0_i32_0 : i32, i32
  }
  func.func @transform_5(%arg0: i32) -> (i32, i32, i32) {
    %c0_i32 = arith.constant 0 : i32
    %c0_i32_0 = arith.constant 0 : i32
    %c0_i32_1 = arith.constant 0 : i32
    %c0_i32_2 = arith.constant 0 : i32
    return %c0_i32, %c0_i32_0, %c0_i32_1 : i32, i32, i32
  }
}

</mosaic_0001>

<bundles_post_ra>
// kernel: retargeter_encoder_forward.4
= control target key start
LH: loop header
LB: loop body
LE: loop exit
PB: predicated region body
PF: predicated region fallthrough
CT: control target
= control target key end

     0   :  { %15 = vsyncpa [#allocation3], 0  ;;  %s811_s0 = inlined_call_operand.vmem [shape: f32[2,8,16], index: 0, kind: input, shape index: {}]   ;;  %s812_s1 = inlined_call_operand.vmem [shape: f32[2,1,8], index: 1, kind: input, shape index: {}]   ;;  %s813_s2 = inlined_call_operand.hbm [shape: f32[2,1,8], index: 2, kind: input, shape index: {}]   ;;  %s814_s3 = inlined_call_operand.vmem [shape: f32[8,32], index: 3, kind: input, shape index: {}]   ;;  %s815_s4 = inlined_call_operand.vmem [shape: f32[24,32], index: 4, kind: input, shape index: {}]   ;;  %s816_s5 = inlined_call_operand.hbm [shape: f32[1,32], index: 5, kind: input, shape index: {}]   ;;  %s817_s6 = inlined_call_operand.vmem [shape: f32[8,32], index: 6, kind: input, shape index: {}]   ;;  %s818_s7 = inlined_call_operand.hbm [shape: f32[1,32], index: 7, kind: input, shape index: {}]   ;;  %s819_s8 = inlined_call_operand.vmem [shape: f32[2,1,32], index: 8, kind: output, shape index: {0}]   ;;  %s820_s9 = inlined_call_operand.vmem [shape: f32[2,8,32], index: 9, kind: output, shape index: {1}]  }
   0x1   :  { %16 = vsyncpa [#allocation5], 0  ;;  %s690_s30 = smov [#allocation4]   ;;  %s691_s11 = smov [#allocation2]  }
   0x2   :  { %s43_s10 = sshll.u32 %s690_s30, 4  ;;  %s26_s12 = sshll.u32 %s691_s11, 4  ;;  %s44_s10 = int_to_ptr.vmem [resolvable:$true] %s43_s10  ;;  %s27_s12 = int_to_ptr.vmem [resolvable:$true] %s26_s12 }
   0x3   :  { %s634_s13 = scalar_lea.vmem %s44_s10, 16  ;;  %s638_s14 = scalar_lea.vmem %s44_s10, 32 }
   0x4   :  { %p635_p0 = scmp.ne.s32.totalorder %s44_s10, %s634_s13  ;;  %p639_p1 = scmp.lt.s32.totalorder %s44_s10, %s44_s10 }
   0x5   :  { %p640_p2 = scmp.lt.s32.totalorder %s638_s14, %s634_s13 }
   0x7   :  { %p641_p3 = por %p640_p2, %p639_p1 }
   0x9   :  { %p642_p4 = pnand %p641_p3, %p635_p0 }
   0xb   :  { %645 = shalt.err (!%p642_p4)
}
   0xc   :  { %46 = dma.hbm_to_vmem [thread:$0]  %s816_s5, 16, %s44_s10, [#allocation5]  }
   0xd   :  { %s654_s17 = scalar_lea.vmem %s27_s12, 32  ;;  %p659_p6 = scmp.lt.s32.totalorder %s27_s12, %s27_s12 }
   0xe   :  { %p655_p5 = scmp.ne.s32.totalorder %s27_s12, %s654_s17  ;;  %p660_p7 = scmp.lt.s32.totalorder %s654_s17, %s654_s17 }
  0x10   :  { %p661_p8 = por %p660_p7, %p659_p6 }
  0x12   :  { %p662_p9 = pnand %p661_p8, %p655_p5 }
  0x14   :  { %665 = shalt.err (!%p662_p9)
}
  0x15   :  { %s692_s18 = smov 16   ;;  %s693_s19 = smov 1  }
  0x16   :  { %32 = dma.hbm_to_vmem [thread:$0]  %s813_s2, 32, %s27_s12, [#allocation3], %s692_s18, %s692_s18, %s693_s19  }
  0x17   :  { %s694_s22 = smov [#allocation6]  }
  0x18   :  { %s55_s23 = sshll.u32 %s694_s22, 4  ;;  %s56_s23 = int_to_ptr.vmem [resolvable:$true] %s55_s23 }
  0x19   :  { %s674_s24 = scalar_lea.vmem %s56_s23, 16  ;;  %s678_s25 = scalar_lea.vmem %s56_s23, 32 }
  0x1a   :  { %p675_p10 = scmp.ne.s32.totalorder %s56_s23, %s674_s24  ;;  %p679_p11 = scmp.lt.s32.totalorder %s56_s23, %s56_s23 }
  0x1b   :  { %p680_p12 = scmp.lt.s32.totalorder %s678_s25, %s674_s24 }
  0x1d   :  { %p681_p13 = por %p680_p12, %p679_p11 }
  0x1f   :  { %p682_p0 = pnand %p681_p13, %p675_p10 }
  0x21   :  { %685 = shalt.err (!%p682_p0)
}
  0x22   :  { %58 = dma.hbm_to_vmem [thread:$0]  %s818_s7, 16, %s56_s23, [#allocation5]  }
  0x23   :  { %686 = dma.done.wait [#allocation3], 32  }
  0x24   :  { %687 = vsyncadd [#allocation3], 4294967264 }
  0x25   :  { %688 = dma.done.wait [#allocation5], 32  }
  0x26   :  { %689 = vsyncadd [#allocation5], 4294967264  ;;  %v695_v0 = vmov 0.0   ;;  %vm696_vm0 = vmmov 0   ;;  %vm77_vm1 = vcmask 64512   ;;  %v70_v1 = vld [vmem:[%s815_s4 + $0x10] sm:$0xff]  ;;  %v151_v11 = vlaneseq }
  0x27   :  { %585 = vmatprep.subr.mxu0 %v695_v0  ;;  %590 = vmatprep.subr.mxu1 %v695_v0  ;;  %v69_v2 = vld [vmem:[%s815_s4 + $0x8] sm:$0xff]  ;;  %v76_v3 = vld [vmem:[%s812_s1] sm:$0x1]  ;;  %vm155_vm2 = vcmask 130048   ;;  %v565_v8 = vld [vmem:[%s812_s1 + $0x1] sm:$0x1] }
  0x28   :  { %587 = vmatprep.mubr.msk.f32.mxu0 %vm696_vm0, %v695_v0  ;;  %594 = vmatprep.mubr.msk.f32.mxu1 %vm696_vm0, %v695_v0  ;;  %v68_v4 = vld [vmem:[%s815_s4] sm:$0xff]  ;;  %v564_v9 = vld [vmem:[%s811_s0 + $0x8] sm:$0xff]  ;;  %v152_v12 = vshrl.u32 %v151_v11, 7  ;;  %vm311_vm3 = vcmask 253952   ;;  %vm313_vm4 = vcmask 261120  }
  0x29   :  { %586 = vmatpush3.msra.mxu0 %v70_v1  ;;  %591 = vmatpush3.msra.mxu1 %v69_v2  ;;  %v73_v5 = vld [vmem:[%s817_s6] sm:$0xff] }
  0x2a   :  { %v75_v6 = vld [vmem:[%s811_s0] sm:$0xff]  ;;  %588 = vmatmul.mubr.msk.f32.vlgmr.msra.gmra.mxu0 %vm77_vm1, %v76_v3  ;;  %592 = vmatprep.subr.mxu1 %v695_v0  ;;  %v153_v13 = vsub.s32 0, %v152_v12 }
  0x2b   :  { %597 = vmatprep.subr.mxu0 %v695_v0  ;;  %593 = vmatpush3.msra.mxu1 %v68_v4  ;;  %v237_v7 = vld [vmem:[#allocation2] sm:$0x1]  ;;  %v472_v10 = vld [vmem:[#allocation2 + $0x1] sm:$0x1]  ;;  %v562_v17 = vld [vmem:[#allocation4] ss:$0 sm:$0xff] }
  0x2c   :  { %598 = vmatpush3.msra.mxu0 %v73_v5  ;;  %595 = vmatmul.mubr.msk.f32.vlgmr.msra.gmra.mxu1 %vm155_vm2, %v75_v6  ;;  %v74_v19 = vld [vmem:[#allocation6] sm:$0x1] }
  0x2d   :  { %602 = vmatprep.subr.mxu1 %v695_v0  ;;  %599 = vmatprep.mubr.msk.f32.mxu0 %vm696_vm0, %v695_v0  ;;  %v72_v21 = vld [vmem:[%s814_s3] sm:$0xff] }
  0x2e   :  { %603 = vmatpush3.msra.mxu1 %v70_v1  ;;  %600 = vmatmul.mubr.msk.f32.vlgmr.msra.gmra.mxu0 %vm77_vm1, %v237_v7 }
  0x2f   :  { %607 = vmatprep.subr.mxu0 %v695_v0  ;;  %604 = vmatprep.mubr.msk.f32.mxu1 %vm696_vm0, %v695_v0 }
  0x30   :  { %608 = vmatpush3.msra.mxu0 %v69_v2  ;;  %605 = vmatmul.mubr.msk.f32.vlgmr.msra.gmra.mxu1 %vm77_vm1, %v565_v8 }
  0x31   :  { %609 = vmatprep.subr.mxu0 %v695_v0  ;;  %611 = vmatprep.mubr.msk.f32.mxu0 %vm696_vm0, %v695_v0 }
  0x32   :  { %610 = vmatpush3.msra.mxu0 %v68_v4  ;;  %614 = vmatprep.subr.mxu1 %v695_v0 }
  0x33   :  { %612 = vmatmul.mubr.msk.f32.vlgmr.msra.gmra.mxu0 %vm155_vm2, %v564_v9  ;;  %615 = vmatpush3.msra.mxu1 %v73_v5 }
  0x34   :  { %616 = vmatprep.mubr.msk.f32.mxu1 %vm696_vm0, %v695_v0 }
  0x35   :  { %617 = vmatmul.mubr.msk.f32.vlgmr.msra.gmra.mxu1 %vm77_vm1, %v472_v10 }
  0xea   :  { %v147_v14 = vpop.f32.mrf.mxu0 }
  0xeb   :  { %v154_v15 = vrot.slane %v147_v14, %v153_v13 }
  0xec   :  { %v589_v16 = vpop.f32.mrf.mxu0  ;;  %v225_v18 = vpop.f32.mrf.mxu1 }
  0xed   :  { %v226_v20 = vadd.f32 %v225_v18, %v154_v15 }
  0xee   :  { %v596_v22 = vpop.f32.mrf.mxu1  ;;  %v307_v23 = vpop.f32.mrf.mxu0 }
  0xef   :  { %v235_v24 = vadd.f32 %v562_v17, %v226_v20  ;;  %v308_v25 = vadd.f32 %v307_v23, %v74_v19 }
  0xf0   :  { %v601_v26 = vpop.f32.mrf.mxu0  ;;  %v388_v27 = vpop.f32.mrf.mxu1 }
  0xf1   :  { %v236_v28 = vadd.f32 %v235_v24, %v72_v21  ;;  %312 = vst.msk [vmem:[%s819_s8] sm:$0x1] %vm311_vm3, %v308_v25  ;;  %v395_v29 = vrot.slane %v388_v27, %v153_v13 }
  0xf2   :  { %v606_v30 = vpop.f32.mrf.mxu1 }
  0xf3   :  { %314 = vst.msk [vmem:[%s820_s9] sm:$0xff] %vm313_vm4, %v236_v28  ;;  %v465_v31 = vpop.f32.mrf.mxu0 }
  0xf4   :  { %v466_v32 = vadd.f32 %v465_v31, %v395_v29 }
  0xf5   :  { %v613_v33 = vpop.f32.mrf.mxu0  ;;  %v542_v34 = vpop.f32.mrf.mxu1 }
  0xf6   :  { %v469_v35 = vadd.f32 %v562_v17, %v466_v32  ;;  %v543_v36 = vadd.f32 %v542_v34, %v74_v19 }
  0xf7   :  { %v618_v37 = vpop.f32.mrf.mxu1 }
  0xf8   :  { %v470_v38 = vadd.f32 %v469_v35, %v72_v21  ;;  %569 = vst.msk [vmem:[%s819_s8 + $0x1] sm:$0x1] %vm311_vm3, %v543_v36 }
  0xfa   :  { %570 = vst.msk [vmem:[%s820_s9 + $0x8] sm:$0xff] %vm313_vm4, %v470_v38 }
  0xfb   :  { %558 = vsyncpa [#allocation3], 1 }
  0xfc   :  { %559 = vsyncpa [#allocation5], 1 }

// kernel: retargeter_encoder_forward.7
= control target key start
LH: loop header
LB: loop body
LE: loop exit
PB: predicated region body
PF: predicated region fallthrough
CT: control target
= control target key end

     0   :  { %v449_v1 = vmov 0.0   ;;  %vm450_vm0 = vmmov 0   ;;  %s527_s0 = inlined_call_operand.vmem [shape: f32[2,8,32], index: 0, kind: input, shape index: {}]   ;;  %s528_s1 = inlined_call_operand.vmem [shape: f32[32,16], index: 1, kind: input, shape index: {}]   ;;  %s529_s2 = inlined_call_operand.vmem [shape: f32[1,16], index: 2, kind: input, shape index: {}]   ;;  %s530_s3 = inlined_call_operand.vmem [shape: f32[16,16], index: 3, kind: input, shape index: {}]   ;;  %s531_s4 = inlined_call_operand.vmem [shape: f32[1,16], index: 4, kind: input, shape index: {}]   ;;  %s532_s5 = inlined_call_operand.hbm [shape: f32[2,8,16], index: 5, kind: output, shape index: {}]  }
   0x1   :  { %v24_v0 = vld [vmem:[%s528_s1 + $0x18] sm:$0xff]  ;;  %386 = vmatprep.subr.mxu0 %v449_v1  ;;  %v23_v2 = vld [vmem:[%s528_s1 + $0x10] sm:$0xff]  ;;  %394 = vmatprep.mubr.msk.f32.mxu0 %vm450_vm0, %v449_v1 }
   0x2   :  { %387 = vmatpush3.msra.mxu0 %v24_v0  ;;  %397 = vmatprep.subr.mxu1 %v449_v1 }
   0x3   :  { %10 = vsyncpa [#allocation3], 0  ;;  %388 = vmatprep.subr.mxu0 %v449_v1  ;;  %v22_v3 = vld [vmem:[%s528_s1 + $0x8] sm:$0xff]  ;;  %401 = vmatprep.mubr.msk.f32.mxu1 %vm450_vm0, %v449_v1  ;;  %v21_v4 = vld [vmem:[%s528_s1] sm:$0xff]  ;;  %vm36_vm1 = vcmask 261120   ;;  %vm119_vm3 = vcmask 130048  }
   0x4   :  { %389 = vmatpush3.msra.mxu0 %v23_v2  ;;  %v29_v5 = vld [vmem:[%s527_s0] sm:$0xff]  ;;  %v27_v6 = vld [vmem:[%s530_s3 + $0x8] sm:$0xff] }
   0x5   :  { %390 = vmatprep.subr.mxu0 %v449_v1  ;;  %398 = vmatpush3.msra.mxu1 %v27_v6  ;;  %v26_v7 = vld [vmem:[%s530_s3] sm:$0xff]  ;;  %v367_v14 = vld [vmem:[%s527_s0 + $0x8] sm:$0xff]  ;;  %s451_s0 = smov [#allocation2]  }
   0x6   :  { %391 = vmatpush3.msra.mxu0 %v22_v3  ;;  %399 = vmatprep.subr.mxu1 %v449_v1  ;;  %v363_v8 = vld [vmem:[%s529_s2] ss:$0 sm:$0xff]  ;;  %s352_s10 = sshll.u32 %s451_s0, 4  ;;  %s353_s10 = int_to_ptr.vmem [resolvable:$true] %s352_s10 }
   0x7   :  { %392 = vmatprep.subr.mxu0 %v449_v1  ;;  %400 = vmatpush3.msra.mxu1 %v26_v7  ;;  %v365_v15 = vld [vmem:[%s531_s4] ss:$0 sm:$0xff]  ;;  %s427_s4 = scalar_lea.vmem %s353_s10, 256  ;;  %p432_p1 = scmp.lt.s32.totalorder %s353_s10, %s353_s10 }
   0x8   :  { %393 = vmatpush3.msra.mxu0 %v21_v4  ;;  %404 = vmatprep.subr.mxu1 %v449_v1  ;;  %p428_p0 = scmp.ne.s32.totalorder %s353_s10, %s427_s4  ;;  %p433_p2 = scmp.lt.s32.totalorder %s427_s4, %s427_s4 }
   0x9   :  { %395 = vmatmul.mubr.msk.f32.vlgmr.msra.gmra.mxu0 %vm36_vm1, %v29_v5  ;;  %415 = vmatprep.subr.mxu0 %v449_v1 }
   0xa   :  { %419 = vmatprep.mubr.msk.f32.mxu0 %vm450_vm0, %v449_v1  ;;  %416 = vmatpush3.msra.mxu0 %v27_v6  ;;  %p434_p3 = por %p433_p2, %p432_p1 }
   0xb   :  { %417 = vmatprep.subr.mxu0 %v449_v1 }
   0xc   :  { %418 = vmatpush3.msra.mxu0 %v26_v7  ;;  %p435_p4 = pnand %p434_p3, %p428_p0 }
  0xc9   :  { %v106_v9 = vpop.f32.mrf.mxu0 }
  0xca   :  { %v107_v10 = vadd.f32 %v363_v8, %v106_v9 }
  0xcb   :  { %v396_v11 = vpop.f32.mrf.mxu0 }
  0xcc   :  { %vm110_vm2 = vcmp.ge.f32.partialorder %v107_v10, 0.0  ;;  %v111_v12 = vmul.f32 0.1, %v107_v10 }
  0xce   :  { %v112_v13 = vsel %vm110_vm2, %v107_v10, %v111_v12 }
  0xcf   :  { %402 = vmatmul.mubr.msk.f32.vlgmr.msra.gmra.mxu1 %vm119_vm3, %v112_v13 }
  0xd0   :  { %405 = vmatpush3.msra.mxu1 %v24_v0  ;;  %412 = vmatprep.mubr.msk.f32.mxu1 %vm450_vm0, %v449_v1 }
  0xd1   :  { %406 = vmatprep.subr.mxu1 %v449_v1 }
  0xd2   :  { %407 = vmatpush3.msra.mxu1 %v23_v2 }
  0xd3   :  { %408 = vmatprep.subr.mxu1 %v449_v1 }
  0xd4   :  { %409 = vmatpush3.msra.mxu1 %v22_v3 }
  0xd5   :  { %410 = vmatprep.subr.mxu1 %v449_v1 }
  0xd6   :  { %411 = vmatpush3.msra.mxu1 %v21_v4 }
  0xd7   :  { %413 = vmatmul.mubr.msk.f32.vlgmr.msra.gmra.mxu1 %vm36_vm1, %v367_v14 }
 0x18f   :  { %v189_v16 = vpop.f32.mrf.mxu1 }
 0x190   :  { %v190_v17 = vadd.f32 %v365_v15, %v189_v16 }
 0x191   :  { %v403_v18 = vpop.f32.mrf.mxu1 }
 0x192   :  { %193 = vst.msk [vmem:[#allocation2] sm:$0xff] %vm119_vm3, %v190_v17 }
 0x197   :  { %v265_v19 = vpop.f32.mrf.mxu1 }
 0x198   :  { %v266_v20 = vadd.f32 %v363_v8, %v265_v19 }
 0x199   :  { %v414_v21 = vpop.f32.mrf.mxu1 }
 0x19a   :  { %vm269_vm4 = vcmp.ge.f32.partialorder %v266_v20, 0.0  ;;  %v270_v22 = vmul.f32 0.1, %v266_v20 }
 0x19c   :  { %v271_v23 = vsel %vm269_vm4, %v266_v20, %v270_v22 }
 0x19d   :  { %420 = vmatmul.mubr.msk.f32.vlgmr.msra.gmra.mxu0 %vm119_vm3, %v271_v23 }
 0x25d   :  { %v341_v24 = vpop.f32.mrf.mxu0 }
 0x25e   :  { %v342_v25 = vadd.f32 %v365_v15, %v341_v24 }
 0x25f   :  { %v421_v26 = vpop.f32.mrf.mxu0 }
 0x260   :  { %346 = vst.msk [vmem:[#allocation2 + $0x8] sm:$0xff] %vm119_vm3, %v342_v25 }
 0x261   :  { %438 = shalt.err (!%p435_p4)
}
 0x262   :  { %s452_s11 = smov 128   ;;  %s453_s12 = smov 8  }
 0x263   :  { %358 = dma.vmem_to_hbm [thread:$0]  %s353_s10, 256, %s532_s5, [#allocation3], %s452_s11, %s452_s11, %s453_s12  }
 0x264   :  { %447 = dma.done.wait [#allocation3], 256  }
 0x265   :  { %448 = vsyncadd [#allocation3], 4294967040 }
 0x266   :  { %362 = vsyncpa [#allocation3], 1 }

// kernel: retargeter_encoder_forward.5
= control target key start
LH: loop header
LB: loop body
LE: loop exit
PB: predicated region body
PF: predicated region fallthrough
CT: control target
= control target key end

     0   :  { %vm80_vm0 = vcmask 261120   ;;  %vm168_vm1 = vcmask 64512   ;;  %s3594_s22 = smov 96   ;;  %vm258_vm2 = vcmask 65536   ;;  %vm254_vm3 = vcmask 72704   ;;  %s3596_s23 = smov 64   ;;  %s4234_s1 = inlined_call_operand.vmem [shape: f32[32,96], index: 1, kind: input, shape index: {}]   ;;  %s4235_s0 = inlined_call_operand.vmem [shape: f32[2,9,32], index: 0, kind: input, shape index: {}]   ;;  %s4236_s2 = inlined_call_operand.vmem [shape: f32[1,96], index: 2, kind: input, shape index: {}]   ;;  %s4237_s3 = inlined_call_operand.vmem [shape: f32[32,32], index: 3, kind: input, shape index: {}]   ;;  %s4238_s4 = inlined_call_operand.vmem [shape: f32[1,32], index: 4, kind: input, shape index: {}]   ;;  %s4239_s7 = inlined_call_operand.vmem [shape: f32[32,64], index: 7, kind: input, shape index: {}]   ;;  %s4240_s9 = inlined_call_operand.vmem [shape: f32[64,32], index: 9, kind: input, shape index: {}]   ;;  %s4241_s5 = inlined_call_operand.vmem [shape: f32[1,32], index: 5, kind: input, shape index: {}]   ;;  %s4242_s6 = inlined_call_operand.vmem [shape: f32[1,32], index: 6, kind: input, shape index: {}]   ;;  %s4243_s8 = inlined_call_operand.vmem [shape: f32[1,64], index: 8, kind: input, shape index: {}]   ;;  %s4244_s10 = inlined_call_operand.vmem [shape: f32[1,32], index: 10, kind: input, shape index: {}]   ;;  %s4245_s11 = inlined_call_operand.vmem [shape: f32[1,32], index: 11, kind: input, shape index: {}]   ;;  %s4246_s12 = inlined_call_operand.vmem [shape: f32[1,32], index: 12, kind: input, shape index: {}]   ;;  %s4247_s13 = inlined_call_operand.vmem [shape: f32[2,9,32], index: 13, kind: output, shape index: {}]  }
   0x1   :  { %v3677_v0 = vld [vmem:[%s4234_s1 + $0x18] sm:$0xff]  ;;  %v3682_v1 = vld [vmem:[%s4234_s1 + $0x10] sm:$0xff]  ;;  %v3688_v2 = vld [vmem:[%s4235_s0] sm:$0xff]  ;;  %vm289_vm4 = vcmask 1040384   ;;  %s3597_s24 = smov 56   ;;  %s3598_s25 = smov 80  }
   0x2   :  { %3268 = vmatprep.subr.mxu0 %v3677_v0  ;;  %v3694_v3 = vld [vmem:[%s4234_s1 + $0x8] sm:$0xff]  ;;  %3276 = vmatprep.mubr.msk.f32.mxu0 %vm80_vm0, %v3688_v2  ;;  %v3703_v4 = vld [vmem:[%s4234_s1] sm:$0xff]  ;;  %s3593_s1 = smov 88   ;;  %s3599_s26 = smov 112   ;;  %vm1317_vm5 = vcmask 253952   ;;  %vm1453_vm6 = vcmask 523264  }
   0x3   :  { %3269 = vmatpush3.msra.mxu0 %v3677_v0  ;;  %v3710_v5 = vld [vmem:[%s4235_s0 + $0x8] sm:$0x1]  ;;  %v3719_v6 = vld [vmem:[%s4236_s2] ss:$0 sm:$0xff]  ;;  %s3595_s2 = smov 120   ;;  %s3600_s27 = smov 72  }
   0x4   :  { %3270 = vmatprep.subr.mxu0 %v3682_v1  ;;  %s3601_s28 = smov 104   ;;  %s3602_s16 = smov 48  }
   0x5   :  { %3271 = vmatpush3.msra.mxu0 %v3682_v1  ;;  %s3603_s17 = smov 40  }
   0x6   :  { %3272 = vmatprep.subr.mxu0 %v3694_v3 }
   0x7   :  { %3273 = vmatpush3.msra.mxu0 %v3694_v3 }
   0x8   :  { %3274 = vmatprep.subr.mxu0 %v3703_v4 }
   0x9   :  { %3275 = vmatpush3.msra.mxu0 %v3703_v4 }
   0xa   :  { %3277 = vmatmul.mubr.msk.f32.vlgmr.msra.gmra.mxu0 %vm80_vm0, %v3710_v5 }
  0xca   :  { %v3278_v7 = vpop.f32.mrf.mxu0 }
  0xcb   :  { %v3722_v8 = vadd.f32 %v3278_v7, %v3719_v6 }
  0xcc   :  { %v153_v9 = vpop.f32.mrf.mxu0 }
  0xcd   :  { %v3725_v10 = vadd.f32 %v3719_v6, %v153_v9  ;;  %373 = vrot.lane.b32.xlu1 %v3722_v8, %s3593_s1  ;;  %166 = vrot.lane.b32.xlu0 %v3722_v8, %s3594_s22  ;;  %v3796_v9 = vld [vmem:[%s4237_s3 + $0x8] sm:$0xff] }
  0xcf   :  { %3283 = vmatprep.mubr.msk.f32.mxu1 %vm168_vm1, %v3725_v10 }
  0xd1   :  { %371 = vrot.lane.b32.xlu1 %v3725_v10, %s3593_s1  ;;  %164 = vrot.lane.b32.xlu0 %v3725_v10, %s3594_s22 }
  0xd5   :  { %369 = vrot.lane.b32.xlu1 %v3722_v8, %s3595_s2  ;;  %367 = vrot.lane.b32.xlu0 %v3725_v10, %s3595_s2 }
 0x13f   :  { %v167_v11 = vpop.permute.xlu0 %166  ;;  %v374_v12 = vpop.permute.xlu1 %373 }
 0x140   :  { %3279 = vmatprep.subr.msk.mxu1 %vm168_vm1, %v167_v11 }
 0x141   :  { %3280 = vmatpush3.xpose.msk.msra.mxu1 %vm168_vm1, %v167_v11  ;;  %v3803_v11 = vld [vmem:[%s4237_s3] sm:$0xff] }
 0x143   :  { %v165_v13 = vpop.permute.xlu0 %164  ;;  %v372_v15 = vpop.permute.xlu1 %371 }
 0x144   :  { %3281 = vmatprep.subr.msk.mxu1 %vm168_vm1, %v165_v13 }
 0x145   :  { %3282 = vmatpush3.xpose.msk.msra.mxu1 %vm168_vm1, %v165_v13 }
 0x146   :  { %3293 = vmatprep.subr.msk.mxu1 %vm168_vm1, %v374_v12 }
 0x147   :  { %v368_v14 = vpop.permute.xlu0 %367  ;;  %v370_v16 = vpop.permute.xlu1 %369 }
 0x148   :  { %3284 = vmatmul.mubr.msk.f32.vlgmr.msra.gmra.mxu1 %vm168_vm1, %v3722_v8 }
 0x149   :  { %3294 = vmatpush3.xpose.msk.msra.mxu1 %vm168_vm1, %v374_v12  ;;  %3297 = vmatprep.mubr.msk.f32.mxu1 %vm168_vm1, %v368_v14 }
 0x14a   :  { %3295 = vmatprep.subr.msk.mxu1 %vm168_vm1, %v372_v15 }
 0x14d   :  { %3296 = vmatpush3.xpose.msk.msra.mxu1 %vm168_vm1, %v372_v15 }
 0x150   :  { %3298 = vmatmul.mubr.msk.f32.vlgmr.msra.gmra.mxu1 %vm168_vm1, %v370_v16 }
 0x208   :  { %v3285_v17 = vpop.f32.mrf.mxu1 }
 0x209   :  { %v253_v18 = vmul.f32 0.35355338, %v3285_v17 }
 0x20a   :  { %v243_v19 = vpop.f32.mrf.mxu1 }
 0x20b   :  { %v252_v20 = vmul.f32 0.35355338, %v243_v19  ;;  %v259_v21 = vsel %vm258_vm2, %v253_v18, -inf }
 0x20c   :  { %260 = vmax.xlane.f32.xlu1 %v259_v21 }
 0x20d   :  { %v255_v22 = vsel %vm254_vm3, %v252_v20, -inf }
 0x20e   :  { %256 = vmax.xlane.f32.xlu0 %v255_v22 }
 0x210   :  { %v3299_v23 = vpop.f32.mrf.mxu1 }
 0x211   :  { %v459_v26 = vmul.f32 0.35355338, %v3299_v23 }
 0x212   :  { %v449_v24 = vpop.f32.mrf.mxu1 }
 0x213   :  { %v458_v25 = vmul.f32 0.35355338, %v449_v24  ;;  %v463_v28 = vsel %vm258_vm2, %v459_v26, -inf }
 0x215   :  { %v460_v27 = vsel %vm254_vm3, %v458_v25, -inf }
 0x216   :  { %461 = vmax.xlane.f32.xlu0 %v460_v27 }
 0x21a   :  { %464 = vmax.xlane.f32.xlu0 %v463_v28 }
 0x21d   :  { %280 = vrot.lane.b32.xlu1 %v3722_v8, %s3596_s23 }
 0x295   :  { %v261_v29 = vpop.xlane.xlu1 %260 }
 0x296   :  { %v263_v30 = vsub.f32 %v253_v18, %v261_v29 }
 0x297   :  { %v257_v31 = vpop.xlane.xlu0 %256 }
 0x298   :  { %v266_v32 = vmul.f32 1.442695, %v263_v30  ;;  %v262_v33 = vsub.f32 %v252_v20, %v257_v31 }
 0x299   :  { %v281_v34 = vpop.permute.xlu1 %280 }
 0x29a   :  { %3513 = vpow2.f32 %v266_v32  ;;  %v264_v35 = vmul.f32 1.442695, %v262_v33  ;;  %3286 = vmatprep.subr.msk.mxu0 %vm289_vm4, %v281_v34 }
 0x29b   :  { %3287 = vmatpush3.msk.msra.mxu0 %vm289_vm4, %v281_v34 }
 0x29c   :  { %3515 = vpow2.f32 %v264_v35 }
 0x29f   :  { %v462_v36 = vpop.xlane.xlu0 %461 }
 0x2a0   :  { %v466_v46 = vsub.f32 %v458_v25, %v462_v36 }
 0x2a2   :  { %v468_v47 = vmul.f32 1.442695, %v466_v46 }
 0x2a3   :  { %v465_v37 = vpop.xlane.xlu0 %464 }
 0x2a4   :  { %v467_v38 = vsub.f32 %v459_v26, %v465_v37 }
 0x2a6   :  { %v470_v39 = vmul.f32 1.442695, %v467_v38 }
 0x2a7   :  { %v3514_v40 = vpop.eup %3513 }
 0x2a8   :  { %3517 = vpow2.f32 %v470_v39  ;;  %v271_v41 = vsel %vm258_vm2, %v3514_v40, 0.0 }
 0x2a9   :  { %v3516_v42 = vpop.eup %3515  ;;  %272 = vadd.xlane.f32.xlu0 %v271_v41  ;;  %3519 = vpow2.f32 %v468_v47 }
 0x2aa   :  { %v268_v43 = vsel %vm254_vm3, %v3516_v42, 0.0 }
 0x2ab   :  { %269 = vadd.xlane.f32.xlu1 %v268_v43 }
 0x2b5   :  { %v3518_v44 = vpop.eup %3517 }
 0x2b6   :  { %v475_v45 = vsel %vm258_vm2, %v3518_v44, 0.0  ;;  %v3520_v48 = vpop.eup %3519 }
 0x2b7   :  { %476 = vadd.xlane.f32.xlu0 %v475_v45  ;;  %v472_v49 = vsel %vm254_vm3, %v3520_v48, 0.0 }
 0x2bc   :  { %484 = vrot.lane.b32.xlu1 %v3722_v8, %s3597_s24 }
 0x2cd   :  { %278 = vrot.lane.b32.xlu0 %v3725_v10, %s3596_s23 }
 0x2d1   :  { %738 = vrot.lane.b32.xlu0 %v3722_v8, %s3598_s25 }
 0x2d5   :  { %732 = vrot.lane.b32.xlu0 %v3725_v10, %s3599_s26 }
 0x2d9   :  { %1024 = vrot.lane.b32.xlu0 %v3722_v8, %s3600_s27 }
 0x2dd   :  { %1018 = vrot.lane.b32.xlu0 %v3725_v10, %s3601_s28 }
 0x2e0   :  { %473 = vadd.xlane.f32.xlu1 %v472_v49 }
 0x2f1   :  { %482 = vrot.lane.b32.xlu1 %v3725_v10, %s3597_s24 }
 0x2f5   :  { %736 = vrot.lane.b32.xlu1 %v3725_v10, %s3598_s25 }
 0x2f9   :  { %734 = vrot.lane.b32.xlu1 %v3722_v8, %s3599_s26 }
 0x2fd   :  { %1022 = vrot.lane.b32.xlu1 %v3725_v10, %s3600_s27 }
 0x301   :  { %1020 = vrot.lane.b32.xlu1 %v3722_v8, %s3601_s28 }
 0x332   :  { %v273_v50 = vpop.xlane.xlu0 %272 }
 0x333   :  { %3521 = vrcp.f32 %v273_v50 }
 0x334   :  { %v270_v51 = vpop.xlane.xlu1 %269 }
 0x335   :  { %3523 = vrcp.f32 %v270_v51 }
 0x338   :  { %v485_v58 = vpop.permute.xlu1 %484 }
 0x340   :  { %v477_v52 = vpop.xlane.xlu0 %476  ;;  %v3522_v53 = vpop.eup %3521 }
 0x341   :  { %v277_v57 = vmul.f32 %v3522_v53, %v3514_v40  ;;  %3525 = vrcp.f32 %v477_v52 }
 0x342   :  { %v3524_v54 = vpop.eup %3523 }
 0x343   :  { %v276_v55 = vmul.f32 %v3524_v54, %v3516_v42 }
 0x344   :  { %v279_v56 = vpop.permute.xlu0 %278 }
 0x345   :  { %3288 = vmatprep.subr.mxu0 %v279_v56  ;;  %3290 = vmatprep.mubr.msk.f32.mxu0 %vm254_vm3, %v276_v55 }
 0x346   :  { %3289 = vmatpush3.msra.mxu0 %v279_v56 }
 0x347   :  { %3291 = vmatmul.mubr.msk.f32.vlgmr.msra.gmra.mxu0 %vm254_vm3, %v277_v57  ;;  %3300 = vmatprep.subr.msk.mxu0 %vm289_vm4, %v485_v58 }
 0x348   :  { %3301 = vmatpush3.msk.msra.mxu0 %vm289_vm4, %v485_v58  ;;  %v739_v13 = vpop.permute.xlu0 %738 }
 0x34c   :  { %v733_v17 = vpop.permute.xlu0 %732 }
 0x34e   :  { %v3526_v61 = vpop.eup %3525 }
 0x34f   :  { %v481_v7 = vmul.f32 %v3526_v61, %v3518_v44  ;;  %v3845_v61 = vld [vmem:[%s4237_s3 + $0x10] sm:$0xff] }
 0x350   :  { %v1025_v19 = vpop.permute.xlu0 %1024 }
 0x354   :  { %v1019_v21 = vpop.permute.xlu0 %1018 }
 0x369   :  { %v474_v59 = vpop.xlane.xlu1 %473 }
 0x36a   :  { %3527 = vrcp.f32 %v474_v59 }
 0x36d   :  { %v483_v60 = vpop.permute.xlu1 %482 }
 0x36e   :  { %3302 = vmatprep.subr.mxu0 %v483_v60 }
 0x36f   :  { %3303 = vmatpush3.msra.mxu0 %v483_v60 }
 0x370   :  { %3307 = vmatprep.subr.mxu0 %v3796_v9 }
 0x371   :  { %v737_v18 = vpop.permute.xlu1 %736 }
 0x375   :  { %v735_v20 = vpop.permute.xlu1 %734 }
 0x377   :  { %v3528_v62 = vpop.eup %3527 }
 0x378   :  { %v480_v63 = vmul.f32 %v3528_v62, %v3520_v48 }
 0x379   :  { %v1023_v22 = vpop.permute.xlu1 %1022 }
 0x37a   :  { %3304 = vmatprep.mubr.msk.f32.mxu0 %vm254_vm3, %v480_v63 }
 0x37b   :  { %3305 = vmatmul.mubr.msk.f32.vlgmr.msra.gmra.mxu0 %vm254_vm3, %v481_v7 }
 0x37c   :  { %3308 = vmatpush3.msra.mxu0 %v3796_v9 }
 0x37d   :  { %3312 = vmatprep.subr.mxu0 %v3803_v11  ;;  %v1021_v23 = vpop.permute.xlu1 %1020 }
 0x407   :  { %v3292_v12 = vpop.f32.mrf.mxu0 }
 0x409   :  { %v358_v14 = vpop.f32.mrf.mxu0 }
 0x43b   :  { %v3306_v15 = vpop.f32.mrf.mxu0 }
 0x43d   :  { %v561_v16 = vpop.f32.mrf.mxu0 }
 0x43e   :  { %3309 = vmatprep.mubr.msk.f32.mxu0 %vm168_vm1, %v561_v16 }
 0x43f   :  { %3310 = vmatmul.mubr.msk.f32.vlgmr.msra.gmra.mxu0 %vm168_vm1, %v3306_v15 }
 0x440   :  { %3313 = vmatpush3.msra.mxu0 %v3803_v11  ;;  %3314 = vmatprep.mubr.msk.f32.mxu0 %vm168_vm1, %v358_v14 }
 0x441   :  { %3317 = vmatprep.subr.msk.mxu0 %vm168_vm1, %v739_v13 }
 0x443   :  { %3315 = vmatmul.mubr.msk.f32.vlgmr.msra.gmra.mxu0 %vm168_vm1, %v3292_v12 }
 0x444   :  { %3318 = vmatpush3.xpose.msk.msra.mxu0 %vm168_vm1, %v739_v13  ;;  %3321 = vmatprep.mubr.msk.f32.mxu0 %vm168_vm1, %v733_v17 }
 0x445   :  { %3319 = vmatprep.subr.msk.mxu0 %vm168_vm1, %v737_v18 }
 0x448   :  { %3320 = vmatpush3.xpose.msk.msra.mxu0 %vm168_vm1, %v737_v18 }
 0x449   :  { %3336 = vmatprep.subr.msk.mxu0 %vm168_vm1, %v1025_v19 }
 0x44b   :  { %3322 = vmatmul.mubr.msk.f32.vlgmr.msra.gmra.mxu0 %vm168_vm1, %v735_v20 }
 0x44c   :  { %3337 = vmatpush3.xpose.msk.msra.mxu0 %vm168_vm1, %v1025_v19  ;;  %3340 = vmatprep.mubr.msk.f32.mxu0 %vm168_vm1, %v1019_v21 }
 0x44d   :  { %3338 = vmatprep.subr.msk.mxu0 %vm168_vm1, %v1023_v22 }
 0x450   :  { %3339 = vmatpush3.xpose.msk.msra.mxu0 %vm168_vm1, %v1023_v22 }
 0x453   :  { %3341 = vmatmul.mubr.msk.f32.vlgmr.msra.gmra.mxu0 %vm168_vm1, %v1021_v23 }
 0x4ff   :  { %v3311_v24 = vpop.f32.mrf.mxu0 }
 0x501   :  { %v642_v25 = vpop.f32.mrf.mxu0 }
 0x503   :  { %v3316_v26 = vpop.f32.mrf.mxu0 }
 0x504   :  { %v3823_v27 = vadd.f32 %v3316_v26, %v3311_v24  ;;  %v3863_v26 = vld [vmem:[%s4237_s3 + $0x18] sm:$0xff] }
 0x505   :  { %v723_v28 = vpop.f32.mrf.mxu0 }
 0x506   :  { %v3825_v29 = vadd.f32 %v723_v28, %v642_v25 }
 0x50b   :  { %v3323_v30 = vpop.f32.mrf.mxu0 }
 0x50c   :  { %v824_v31 = vmul.f32 0.35355338, %v3323_v30 }
 0x50d   :  { %v814_v32 = vpop.f32.mrf.mxu0 }
 0x50e   :  { %v823_v33 = vmul.f32 0.35355338, %v814_v32  ;;  %v828_v34 = vsel %vm258_vm2, %v824_v31, -inf }
 0x50f   :  { %829 = vmax.xlane.f32.xlu1 %v828_v34 }
 0x510   :  { %v825_v35 = vsel %vm254_vm3, %v823_v33, -inf }
 0x511   :  { %826 = vmax.xlane.f32.xlu0 %v825_v35  ;;  %v3874_v35 = vld [vmem:[%s4238_s4] ss:$0 sm:$0xff] }
 0x513   :  { %v3342_v36 = vpop.f32.mrf.mxu0 }
 0x514   :  { %v1110_v55 = vmul.f32 0.35355338, %v3342_v36 }
 0x515   :  { %v1100_v37 = vpop.f32.mrf.mxu0 }
 0x516   :  { %v1109_v38 = vmul.f32 0.35355338, %v1100_v37  ;;  %v1114_v57 = vsel %vm258_vm2, %v1110_v55, -inf }
 0x518   :  { %v1111_v39 = vsel %vm254_vm3, %v1109_v38, -inf }
 0x520   :  { %849 = vrot.lane.b32.xlu1 %v3722_v8, %s3602_s16 }
 0x544   :  { %1112 = vmax.xlane.f32.xlu1 %v1111_v39 }
 0x598   :  { %v830_v40 = vpop.xlane.xlu1 %829 }
 0x599   :  { %v832_v41 = vsub.f32 %v824_v31, %v830_v40 }
 0x59a   :  { %v827_v42 = vpop.xlane.xlu0 %826 }
 0x59b   :  { %v835_v43 = vmul.f32 1.442695, %v832_v41  ;;  %v831_v44 = vsub.f32 %v823_v33, %v827_v42 }
 0x59c   :  { %v850_v45 = vpop.permute.xlu1 %849 }
 0x59d   :  { %3529 = vpow2.f32 %v835_v43  ;;  %v833_v46 = vmul.f32 1.442695, %v831_v44  ;;  %3324 = vmatprep.subr.msk.mxu1 %vm289_vm4, %v850_v45 }
 0x59e   :  { %3325 = vmatpush3.msk.msra.mxu1 %vm289_vm4, %v850_v45 }
 0x59f   :  { %3531 = vpow2.f32 %v833_v46 }
 0x5aa   :  { %v3530_v47 = vpop.eup %3529 }
 0x5ab   :  { %v840_v48 = vsel %vm258_vm2, %v3530_v47, 0.0 }
 0x5ac   :  { %v3532_v49 = vpop.eup %3531  ;;  %841 = vadd.xlane.f32.xlu0 %v840_v48 }
 0x5ad   :  { %v837_v50 = vsel %vm254_vm3, %v3532_v49, 0.0 }
 0x5b0   :  { %838 = vadd.xlane.f32.xlu0 %v837_v50 }
 0x5c6   :  { %847 = vrot.lane.b32.xlu0 %v3725_v10, %s3602_s16 }
 0x5cd   :  { %v1113_v51 = vpop.xlane.xlu1 %1112 }
 0x5ce   :  { %v1117_v52 = vsub.f32 %v1109_v38, %v1113_v51 }
 0x5d0   :  { %v1119_v53 = vmul.f32 1.442695, %v1117_v52 }
 0x5d2   :  { %3533 = vpow2.f32 %v1119_v53  ;;  %v3892_v53 = vld [vmem:[%s4239_s7 + $0x10] sm:$0xff] }
 0x5df   :  { %v3534_v54 = vpop.eup %3533 }
 0x5e0   :  { %v1123_v56 = vsel %vm254_vm3, %v3534_v54, 0.0 }
 0x5e1   :  { %1124 = vadd.xlane.f32.xlu1 %v1123_v56  ;;  %v3916_v56 = vld [vmem:[%s4240_s9 + $0x38] sm:$0xff] }
 0x5e5   :  { %1115 = vmax.xlane.f32.xlu0 %v1114_v57  ;;  %v3921_v57 = vld [vmem:[%s4240_s9 + $0x30] sm:$0xff] }
 0x5f2   :  { %1135 = vrot.lane.b32.xlu1 %v3722_v8, %s3603_s17 }
 0x635   :  { %v842_v58 = vpop.xlane.xlu0 %841 }
 0x636   :  { %3535 = vrcp.f32 %v842_v58  ;;  %v3928_v58 = vld [vmem:[%s4240_s9 + $0x28] sm:$0xff] }
 0x639   :  { %v839_v59 = vpop.xlane.xlu0 %838 }
 0x63a   :  { %3537 = vrcp.f32 %v839_v59  ;;  %v3935_v59 = vld [vmem:[%s4240_s9 + $0x20] sm:$0xff] }
 0x63d   :  { %v848_v60 = vpop.permute.xlu0 %847 }
 0x63e   :  { %3326 = vmatprep.subr.mxu1 %v848_v60 }
 0x63f   :  { %3327 = vmatpush3.msra.mxu1 %v848_v60 }
 0x640   :  { %3331 = vmatprep.subr.mxu1 %v3845_v61 }
 0x643   :  { %v3536_v62 = vpop.eup %3535 }
 0x644   :  { %v846_v12 = vmul.f32 %v3536_v62, %v3530_v47 }
 0x647   :  { %v3538_v63 = vpop.eup %3537 }
 0x648   :  { %v845_v7 = vmul.f32 %v3538_v63, %v3532_v49 }
 0x64a   :  { %3328 = vmatprep.mubr.msk.f32.mxu1 %vm254_vm3, %v845_v7 }
 0x64b   :  { %3329 = vmatmul.mubr.msk.f32.vlgmr.msra.gmra.mxu1 %vm254_vm3, %v846_v12 }
 0x64c   :  { %3332 = vmatpush3.msra.mxu1 %v3845_v61 }
 0x66a   :  { %v1125_v8 = vpop.xlane.xlu1 %1124 }
 0x66e   :  { %v1136_v13 = vpop.permute.xlu1 %1135  ;;  %v1116_v14 = vpop.xlane.xlu0 %1115 }
 0x66f   :  { %v1118_v15 = vsub.f32 %v1110_v55, %v1116_v14  ;;  %3343 = vmatprep.subr.msk.mxu1 %vm289_vm4, %v1136_v13  ;;  %v3906_v55 = vld [vmem:[%s4239_s7] sm:$0xff] }
 0x671   :  { %v1121_v16 = vmul.f32 1.442695, %v1118_v15  ;;  %v3944_v15 = vld [vmem:[%s4241_s5] ss:$0 sm:$0xff] }
 0x673   :  { %3539 = vpow2.f32 %v1121_v16 }
 0x674   :  { %3541 = vrcp.f32 %v1125_v8 }
 0x680   :  { %v3540_v17 = vpop.eup %3539 }
 0x681   :  { %v1126_v18 = vsel %vm258_vm2, %v3540_v17, 0.0  ;;  %v3542_v19 = vpop.eup %3541 }
 0x682   :  { %1127 = vadd.xlane.f32.xlu0 %v1126_v18  ;;  %v1131_v23 = vmul.f32 %v3542_v19, %v3534_v54  ;;  %v3899_v54 = vld [vmem:[%s4239_s7 + $0x8] sm:$0xff]  ;;  %v3950_v19 = vld [vmem:[%s4242_s6] ss:$0 sm:$0xff] }
 0x698   :  { %1133 = vrot.lane.b32.xlu0 %v3725_v10, %s3603_s17 }
 0x70b   :  { %v3330_v20 = vpop.f32.mrf.mxu1  ;;  %v1128_v21 = vpop.xlane.xlu0 %1127 }
 0x70c   :  { %3543 = vrcp.f32 %v1128_v21 }
 0x70d   :  { %v926_v22 = vpop.f32.mrf.mxu1 }
 0x70e   :  { %3333 = vmatprep.mubr.msk.f32.mxu1 %vm168_vm1, %v926_v22 }
 0x70f   :  { %3334 = vmatmul.mubr.msk.f32.vlgmr.msra.gmra.mxu1 %vm168_vm1, %v3330_v20  ;;  %v1134_v24 = vpop.permute.xlu0 %1133 }
 0x710   :  { %3344 = vmatpush3.msk.msra.mxu1 %vm289_vm4, %v1136_v13  ;;  %3347 = vmatprep.mubr.msk.f32.mxu1 %vm254_vm3, %v1131_v23  ;;  %v3962_v23 = vld [vmem:[%s4235_s0 + $0x10] sm:$0xff] }
 0x711   :  { %3345 = vmatprep.subr.mxu1 %v1134_v24 }
 0x712   :  { %3346 = vmatpush3.msra.mxu1 %v1134_v24  ;;  %v3978_v24 = vld [vmem:[%s4235_s0 + $0x18] sm:$0x1] }
 0x713   :  { %3350 = vmatprep.subr.mxu1 %v3863_v26 }
 0x719   :  { %v3544_v25 = vpop.eup %3543 }
 0x71a   :  { %v1132_v10 = vmul.f32 %v3544_v25, %v3540_v17  ;;  %v4015_v25 = vld [vmem:[%s4243_s8] ss:$0 sm:$0xff] }
 0x71c   :  { %3348 = vmatmul.mubr.msk.f32.vlgmr.msra.gmra.mxu1 %vm254_vm3, %v1132_v10 }
 0x71d   :  { %3351 = vmatpush3.msra.mxu1 %v3863_v26 }
 0x71e   :  { %3366 = vmatprep.subr.mxu1 %v3916_v56 }
 0x7cf   :  { %v3335_v28 = vpop.f32.mrf.mxu1 }
 0x7d0   :  { %v1017_v30 = vadd.f32 %v3335_v28, %v3823_v27 }
 0x7d1   :  { %v1007_v31 = vpop.f32.mrf.mxu1 }
 0x7d2   :  { %v1016_v32 = vadd.f32 %v1007_v31, %v3825_v29 }
 0x7dc   :  { %v3349_v33 = vpop.f32.mrf.mxu1 }
 0x7de   :  { %v1212_v34 = vpop.f32.mrf.mxu1 }
 0x7df   :  { %3352 = vmatprep.mubr.msk.f32.mxu1 %vm168_vm1, %v1212_v34 }
 0x7e0   :  { %3353 = vmatmul.mubr.msk.f32.vlgmr.msra.gmra.mxu1 %vm168_vm1, %v3349_v33 }
 0x7e1   :  { %3367 = vmatpush3.msra.mxu1 %v3916_v56 }
 0x7e2   :  { %3368 = vmatprep.subr.mxu1 %v3921_v57 }
 0x7e3   :  { %3369 = vmatpush3.msra.mxu1 %v3921_v57 }
 0x7e4   :  { %3370 = vmatprep.subr.mxu1 %v3928_v58 }
 0x7e5   :  { %3371 = vmatpush3.msra.mxu1 %v3928_v58 }
 0x7e6   :  { %3372 = vmatprep.subr.mxu1 %v3935_v59 }
 0x7e7   :  { %3373 = vmatpush3.msra.mxu1 %v3935_v59 }
 0x8a0   :  { %v3354_v36 = vpop.f32.mrf.mxu1 }
 0x8a1   :  { %v1303_v37 = vadd.f32 %v3354_v36, %v1017_v30 }
 0x8a2   :  { %v1293_v38 = vpop.f32.mrf.mxu1 }
 0x8a3   :  { %v1311_v39 = vadd.f32 %v3874_v35, %v1303_v37  ;;  %v1302_v27 = vadd.f32 %v1293_v38, %v1016_v32 }
 0x8a5   :  { %v1310_v29 = vadd.f32 %v3874_v35, %v1302_v27  ;;  %v1313_v40 = vadd.f32 %v1311_v39, %v3710_v5 }
 0x8a7   :  { %v1318_v41 = vsel %vm1317_vm5, %v1313_v40, 0.0  ;;  %v1312_v42 = vadd.f32 %v1310_v29, %v3688_v2  ;;  %v3887_v2 = vld [vmem:[%s4239_s7 + $0x18] sm:$0xff] }
 0x8a8   :  { %1319 = vadd.xlane.f32.xlu0 %v1318_v41  ;;  %3355 = vmatprep.subr.mxu0 %v3887_v2 }
 0x8a9   :  { %v1314_v43 = vsel %vm80_vm0, %v1312_v42, 0.0  ;;  %3356 = vmatpush3.msra.mxu0 %v3887_v2 }
 0x8aa   :  { %1315 = vadd.xlane.f32.xlu1 %v1314_v43  ;;  %3357 = vmatprep.subr.mxu0 %v3892_v53 }
 0x8ab   :  { %3358 = vmatpush3.msra.mxu0 %v3892_v53 }
 0x8ac   :  { %3359 = vmatprep.subr.mxu0 %v3899_v54 }
 0x8ad   :  { %3360 = vmatpush3.msra.mxu0 %v3899_v54 }
 0x8ae   :  { %3361 = vmatprep.subr.mxu0 %v3906_v55 }
 0x8af   :  { %3362 = vmatpush3.msra.mxu0 %v3906_v55 }
 0x8b0   :  { %3385 = vmatprep.subr.mxu0 %v3677_v0 }
 0x931   :  { %v1320_v44 = vpop.xlane.xlu0 %1319 }
 0x932   :  { %v1323_v45 = vmul.f32 0.03125, %v1320_v44 }
 0x933   :  { %v1316_v46 = vpop.xlane.xlu1 %1315 }
 0x934   :  { %v1325_v47 = vsub.f32 %v1313_v40, %v1323_v45  ;;  %v1322_v48 = vmul.f32 0.03125, %v1316_v46 }
 0x936   :  { %v1324_v49 = vsub.f32 %v1312_v42, %v1322_v48  ;;  %v1327_v50 = vmul.f32 %v1325_v47, %v1325_v47 }
 0x938   :  { %v1331_v51 = vsel %vm1317_vm5, %v1327_v50, 0.0  ;;  %v1326_v52 = vmul.f32 %v1324_v49, %v1324_v49 }
 0x939   :  { %1332 = vadd.xlane.f32.xlu0 %v1331_v51 }
 0x93a   :  { %v1328_v5 = vsel %vm80_vm0, %v1326_v52, 0.0 }
 0x93b   :  { %1329 = vadd.xlane.f32.xlu1 %v1328_v5 }
 0x9c2   :  { %v1333_v60 = vpop.xlane.xlu0 %1332 }
 0x9c3   :  { %v1335_v62 = vmul.f32 0.03125, %v1333_v60 }
 0x9c4   :  { %v1330_v63 = vpop.xlane.xlu1 %1329 }
 0x9c5   :  { %v1337_v7 = vadd.f32 1e-05, %v1335_v62  ;;  %v1334_v12 = vmul.f32 0.03125, %v1330_v63 }
 0x9c7   :  { %3545 = vrsqrt.f32 %v1337_v7  ;;  %v1336_v8 = vadd.f32 1e-05, %v1334_v12 }
 0x9c9   :  { %3547 = vrsqrt.f32 %v1336_v8 }
 0x9d4   :  { %v3546_v13 = vpop.eup %3545 }
 0x9d5   :  { %v1341_v14 = vmul.f32 %v3546_v13, %v1325_v47 }
 0x9d6   :  { %v3548_v16 = vpop.eup %3547 }
 0x9d7   :  { %v1340_v17 = vmul.f32 %v3548_v16, %v1324_v49  ;;  %v1349_v18 = vmul.f32 %v3944_v15, %v1341_v14 }
 0x9d9   :  { %v1348_v20 = vmul.f32 %v3944_v15, %v1340_v17  ;;  %v3957_v22 = vadd.f32 %v3950_v19, %v1349_v18 }
 0x9db   :  { %v3954_v21 = vadd.f32 %v3950_v19, %v1348_v20 }
 0x9dd   :  { %3363 = vmatprep.mubr.msk.f32.mxu0 %vm80_vm0, %v3954_v21 }
 0x9de   :  { %3364 = vmatmul.mubr.msk.f32.vlgmr.msra.gmra.mxu0 %vm80_vm0, %v3957_v22 }
 0x9df   :  { %3386 = vmatpush3.msra.mxu0 %v3677_v0  ;;  %3393 = vmatprep.mubr.msk.f32.mxu0 %vm80_vm0, %v3962_v23  ;;  %v3987_v0 = vld [vmem:[%s4240_s9 + $0x18] sm:$0xff] }
 0x9e0   :  { %3387 = vmatprep.subr.mxu0 %v3682_v1  ;;  %3374 = vmatprep.subr.mxu1 %v3987_v0 }
 0x9e1   :  { %3388 = vmatpush3.msra.mxu0 %v3682_v1  ;;  %3375 = vmatpush3.msra.mxu1 %v3987_v0  ;;  %v3994_v1 = vld [vmem:[%s4240_s9 + $0x10] sm:$0xff] }
 0x9e2   :  { %3389 = vmatprep.subr.mxu0 %v3694_v3  ;;  %3376 = vmatprep.subr.mxu1 %v3994_v1 }
 0x9e3   :  { %3390 = vmatpush3.msra.mxu0 %v3694_v3  ;;  %3377 = vmatpush3.msra.mxu1 %v3994_v1  ;;  %v4001_v3 = vld [vmem:[%s4240_s9 + $0x8] sm:$0xff] }
 0x9e4   :  { %3391 = vmatprep.subr.mxu0 %v3703_v4  ;;  %3378 = vmatprep.subr.mxu1 %v4001_v3 }
 0x9e5   :  { %3392 = vmatpush3.msra.mxu0 %v3703_v4  ;;  %v4007_v4 = vld [vmem:[%s4240_s9] sm:$0xff]  ;;  %3379 = vmatpush3.msra.mxu1 %v4001_v3 }
 0x9e6   :  { %3394 = vmatmul.mubr.msk.f32.vlgmr.msra.gmra.mxu0 %vm80_vm0, %v3978_v24  ;;  %3380 = vmatprep.subr.mxu1 %v4007_v4 }
 0x9e7   :  { %3381 = vmatpush3.msra.mxu1 %v4007_v4 }
 0xa9e   :  { %v3365_v10 = vpop.f32.mrf.mxu0 }
 0xa9f   :  { %v1442_v28 = vadd.f32 %v3365_v10, %v4015_v25 }
 0xaa0   :  { %v1436_v30 = vpop.f32.mrf.mxu0 }
 0xaa1   :  { %v1437_v31 = vadd.f32 %v4015_v25, %v1436_v30  ;;  %v1446_v33 = vmax.f32 %v1442_v28, 0.0 }
 0xaa3   :  { %v1445_v32 = vmax.f32 %v1437_v31, 0.0 }
 0xaa5   :  { %3382 = vmatprep.mubr.msk.f32.mxu1 %vm1453_vm6, %v1445_v32 }
 0xaa6   :  { %v3395_v34 = vpop.f32.mrf.mxu0  ;;  %3383 = vmatmul.mubr.msk.f32.vlgmr.msra.gmra.mxu1 %vm1453_vm6, %v1446_v33 }
 0xaa7   :  { %v4022_v36 = vadd.f32 %v3395_v34, %v3719_v6 }
 0xaa8   :  { %v1656_v37 = vpop.f32.mrf.mxu0 }
 0xaa9   :  { %v4025_v38 = vadd.f32 %v3719_v6, %v1656_v37  ;;  %1669 = vrot.lane.b32.xlu1 %v4022_v36, %s3594_s22 }
 0xaab   :  { %1667 = vrot.lane.b32.xlu0 %v4025_v38, %s3594_s22  ;;  %3400 = vmatprep.mubr.msk.f32.mxu0 %vm168_vm1, %v4025_v38 }
 0xb1b   :  { %v1670_v39 = vpop.permute.xlu1 %1669 }
 0xb1c   :  { %3396 = vmatprep.subr.msk.mxu0 %vm168_vm1, %v1670_v39 }
 0xb1d   :  { %3397 = vmatpush3.xpose.msk.msra.mxu0 %vm168_vm1, %v1670_v39  ;;  %v1668_v27 = vpop.permute.xlu0 %1667 }
 0xb1e   :  { %3398 = vmatprep.subr.msk.mxu0 %vm168_vm1, %v1668_v27 }
 0xb21   :  { %3399 = vmatpush3.xpose.msk.msra.mxu0 %vm168_vm1, %v1668_v27 }
 0xb24   :  { %3401 = vmatmul.mubr.msk.f32.vlgmr.msra.gmra.mxu0 %vm168_vm1, %v4022_v36 }
 0xb66   :  { %v4067_v10 = vpop.f32.mrf.mxu1 }
 0xb68   :  { %v4069_v28 = vpop.f32.mrf.mxu1 }
 0xbe4   :  { %v3402_v6 = vpop.f32.mrf.mxu0 }
 0xbe5   :  { %v1755_v29 = vmul.f32 0.35355338, %v3402_v6 }
 0xbe6   :  { %v1745_v40 = vpop.f32.mrf.mxu0 }
 0xbe7   :  { %v1754_v41 = vmul.f32 0.35355338, %v1745_v40  ;;  %v1759_v42 = vsel %vm258_vm2, %v1755_v29, -inf }
 0xbe8   :  { %1760 = vmax.xlane.f32.xlu0 %v1759_v42 }
 0xbe9   :  { %v1756_v43 = vsel %vm254_vm3, %v1754_v41, -inf }
 0xbea   :  { %1757 = vmax.xlane.f32.xlu1 %v1756_v43 }
 0xbfb   :  { %1780 = vrot.lane.b32.xlu1 %v4022_v36, %s3596_s23 }
 0xbff   :  { %1872 = vrot.lane.b32.xlu1 %v4022_v36, %s3593_s1 }
 0xc03   :  { %1870 = vrot.lane.b32.xlu1 %v4025_v38, %s3593_s1 }
 0xc71   :  { %v1761_v44 = vpop.xlane.xlu0 %1760 }
 0xc72   :  { %v1763_v45 = vsub.f32 %v1755_v29, %v1761_v44 }
 0xc73   :  { %v1758_v46 = vpop.xlane.xlu1 %1757 }
 0xc74   :  { %v1766_v47 = vmul.f32 1.442695, %v1763_v45  ;;  %v1762_v48 = vsub.f32 %v1754_v41, %v1758_v46 }
 0xc76   :  { %3549 = vpow2.f32 %v1766_v47  ;;  %v1764_v49 = vmul.f32 1.442695, %v1762_v48 }
 0xc77   :  { %v1781_v50 = vpop.permute.xlu1 %1780 }
 0xc78   :  { %3551 = vpow2.f32 %v1764_v49  ;;  %3403 = vmatprep.subr.msk.mxu1 %vm289_vm4, %v1781_v50 }
 0xc79   :  { %3404 = vmatpush3.msk.msra.mxu1 %vm289_vm4, %v1781_v50 }
 0xc7b   :  { %v1873_v62 = vpop.permute.xlu1 %1872 }
 0xc7f   :  { %v1871_v63 = vpop.permute.xlu1 %1870 }
 0xc83   :  { %v3550_v51 = vpop.eup %3549 }
 0xc84   :  { %v1771_v52 = vsel %vm258_vm2, %v3550_v51, 0.0 }
 0xc85   :  { %v3552_v5 = vpop.eup %3551  ;;  %1772 = vadd.xlane.f32.xlu0 %v1771_v52 }
 0xc86   :  { %v1768_v60 = vsel %vm254_vm3, %v3552_v5, 0.0 }
 0xc87   :  { %1769 = vadd.xlane.f32.xlu1 %v1768_v60 }
 0xc98   :  { %1868 = vrot.lane.b32.xlu1 %v4022_v36, %s3595_s2 }
 0xc9b   :  { %1778 = vrot.lane.b32.xlu0 %v4025_v38, %s3596_s23 }
 0xc9f   :  { %1866 = vrot.lane.b32.xlu0 %v4025_v38, %s3595_s2 }
 0xd0e   :  { %v1773_v7 = vpop.xlane.xlu0 %1772 }
 0xd0f   :  { %3553 = vrcp.f32 %v1773_v7 }
 0xd10   :  { %v1770_v12 = vpop.xlane.xlu1 %1769 }
 0xd11   :  { %3555 = vrcp.f32 %v1770_v12 }
 0xd12   :  { %v1779_v8 = vpop.permute.xlu0 %1778 }
 0xd13   :  { %3405 = vmatprep.subr.mxu1 %v1779_v8 }
 0xd14   :  { %3406 = vmatpush3.msra.mxu1 %v1779_v8  ;;  %v1869_v20 = vpop.permute.xlu1 %1868 }
 0xd15   :  { %3410 = vmatprep.subr.msk.mxu1 %vm168_vm1, %v1873_v62 }
 0xd16   :  { %v1867_v18 = vpop.permute.xlu0 %1866 }
 0xd1c   :  { %v3554_v13 = vpop.eup %3553 }
 0xd1d   :  { %v1777_v17 = vmul.f32 %v3554_v13, %v3550_v51 }
 0xd1e   :  { %v3556_v14 = vpop.eup %3555 }
 0xd1f   :  { %v1776_v16 = vmul.f32 %v3556_v14, %v3552_v5 }
 0xd21   :  { %3407 = vmatprep.mubr.msk.f32.mxu1 %vm254_vm3, %v1776_v16 }
 0xd22   :  { %3408 = vmatmul.mubr.msk.f32.vlgmr.msra.gmra.mxu1 %vm254_vm3, %v1777_v17 }
 0xd23   :  { %3411 = vmatpush3.xpose.msk.msra.mxu1 %vm168_vm1, %v1873_v62  ;;  %3414 = vmatprep.mubr.msk.f32.mxu1 %vm168_vm1, %v1867_v18 }
 0xd24   :  { %3412 = vmatprep.subr.msk.mxu1 %vm168_vm1, %v1871_v63 }
 0xd27   :  { %3413 = vmatpush3.xpose.msk.msra.mxu1 %vm168_vm1, %v1871_v63 }
 0xd28   :  { %3429 = vmatprep.subr.mxu1 %v3803_v11 }
 0xd2a   :  { %3415 = vmatmul.mubr.msk.f32.vlgmr.msra.gmra.mxu1 %vm168_vm1, %v1869_v20 }
 0xd2b   :  { %3430 = vmatpush3.msra.mxu1 %v3803_v11 }
 0xde2   :  { %v3409_v30 = vpop.f32.mrf.mxu1 }
 0xde4   :  { %v1857_v31 = vpop.f32.mrf.mxu1 }
 0xde5   :  { %3431 = vmatprep.mubr.msk.f32.mxu1 %vm168_vm1, %v1857_v31 }
 0xde6   :  { %3432 = vmatmul.mubr.msk.f32.vlgmr.msra.gmra.mxu1 %vm168_vm1, %v3409_v30 }
 0xdea   :  { %v3416_v32 = vpop.f32.mrf.mxu1 }
 0xdeb   :  { %v1958_v33 = vmul.f32 0.35355338, %v3416_v32 }
 0xdec   :  { %v1948_v34 = vpop.f32.mrf.mxu1 }
 0xded   :  { %v1957_v37 = vmul.f32 0.35355338, %v1948_v34  ;;  %v1962_v39 = vsel %vm258_vm2, %v1958_v33, -inf }
 0xdee   :  { %1963 = vmax.xlane.f32.xlu1 %v1962_v39 }
 0xdef   :  { %v1959_v27 = vsel %vm254_vm3, %v1957_v37, -inf }
 0xdf0   :  { %1960 = vmax.xlane.f32.xlu0 %v1959_v27 }
 0xdff   :  { %1983 = vrot.lane.b32.xlu1 %v4022_v36, %s3597_s24 }
 0xe03   :  { %2237 = vrot.lane.b32.xlu1 %v4022_v36, %s3598_s25 }
 0xe07   :  { %2235 = vrot.lane.b32.xlu1 %v4025_v38, %s3598_s25 }
 0xe0b   :  { %2233 = vrot.lane.b32.xlu1 %v4022_v36, %s3599_s26 }
 0xe0f   :  { %2521 = vrot.lane.b32.xlu1 %v4025_v38, %s3600_s27 }
 0xe13   :  { %2519 = vrot.lane.b32.xlu1 %v4022_v36, %s3601_s28 }
 0xe77   :  { %v1964_v11 = vpop.xlane.xlu1 %1963 }
 0xe78   :  { %v1966_v6 = vsub.f32 %v1958_v33, %v1964_v11 }
 0xe79   :  { %v1961_v29 = vpop.xlane.xlu0 %1960 }
 0xe7a   :  { %v1969_v40 = vmul.f32 1.442695, %v1966_v6  ;;  %v1965_v41 = vsub.f32 %v1957_v37, %v1961_v29 }
 0xe7b   :  { %v1984_v42 = vpop.permute.xlu1 %1983 }
 0xe7c   :  { %3557 = vpow2.f32 %v1969_v40  ;;  %v1967_v43 = vmul.f32 1.442695, %v1965_v41  ;;  %3417 = vmatprep.subr.msk.mxu0 %vm289_vm4, %v1984_v42 }
 0xe7d   :  { %3418 = vmatpush3.msk.msra.mxu0 %vm289_vm4, %v1984_v42 }
 0xe7e   :  { %3559 = vpow2.f32 %v1967_v43 }
 0xe7f   :  { %v2238_v62 = vpop.permute.xlu1 %2237 }
 0xe83   :  { %v2236_v12 = vpop.permute.xlu1 %2235 }
 0xe87   :  { %v2234_v14 = vpop.permute.xlu1 %2233 }
 0xe89   :  { %v3558_v44 = vpop.eup %3557 }
 0xe8a   :  { %v1974_v45 = vsel %vm258_vm2, %v3558_v44, 0.0 }
 0xe8b   :  { %v3560_v46 = vpop.eup %3559  ;;  %1975 = vadd.xlane.f32.xlu0 %v1974_v45  ;;  %v2522_v16 = vpop.permute.xlu1 %2521 }
 0xe8c   :  { %v1971_v47 = vsel %vm254_vm3, %v3560_v46, 0.0 }
 0xe8f   :  { %1972 = vadd.xlane.f32.xlu0 %v1971_v47  ;;  %v2520_v17 = vpop.permute.xlu1 %2519 }
 0xea5   :  { %1981 = vrot.lane.b32.xlu0 %v4025_v38, %s3597_s24 }
 0xea9   :  { %2231 = vrot.lane.b32.xlu0 %v4025_v38, %s3599_s26 }
 0xead   :  { %2523 = vrot.lane.b32.xlu0 %v4022_v36, %s3600_s27 }
 0xeb1   :  { %2517 = vrot.lane.b32.xlu0 %v4025_v38, %s3601_s28 }
 0xf14   :  { %v1976_v48 = vpop.xlane.xlu0 %1975 }
 0xf15   :  { %3561 = vrcp.f32 %v1976_v48 }
 0xf18   :  { %v1973_v49 = vpop.xlane.xlu0 %1972 }
 0xf19   :  { %3563 = vrcp.f32 %v1973_v49 }
 0xf1c   :  { %v1982_v50 = vpop.permute.xlu0 %1981 }
 0xf1d   :  { %3419 = vmatprep.subr.mxu0 %v1982_v50 }
 0xf1e   :  { %3420 = vmatpush3.msra.mxu0 %v1982_v50 }
 0xf1f   :  { %3424 = vmatprep.subr.mxu0 %v3796_v9 }
 0xf20   :  { %v2232_v63 = vpop.permute.xlu0 %2231 }
 0xf22   :  { %v3562_v51 = vpop.eup %3561 }
 0xf23   :  { %v1980_v60 = vmul.f32 %v3562_v51, %v3558_v44 }
 0xf24   :  { %v2524_v13 = vpop.permute.xlu0 %2523 }
 0xf26   :  { %v3564_v52 = vpop.eup %3563 }
 0xf27   :  { %v1979_v5 = vmul.f32 %v3564_v52, %v3560_v46 }
 0xf29   :  { %3421 = vmatprep.mubr.msk.f32.mxu0 %vm254_vm3, %v1979_v5 }
 0xf2a   :  { %3422 = vmatmul.mubr.msk.f32.vlgmr.msra.gmra.mxu0 %vm254_vm3, %v1980_v60 }
 0xf2b   :  { %3425 = vmatpush3.msra.mxu0 %v3796_v9  ;;  %v2518_v9 = vpop.permute.xlu0 %2517 }
 0xf2c   :  { %3434 = vmatprep.subr.msk.mxu0 %vm168_vm1, %v2238_v62 }
 0xfea   :  { %v3423_v7 = vpop.f32.mrf.mxu0 }
 0xfec   :  { %v2060_v8 = vpop.f32.mrf.mxu0 }
 0xfed   :  { %3426 = vmatprep.mubr.msk.f32.mxu0 %vm168_vm1, %v2060_v8 }
 0xfee   :  { %3427 = vmatmul.mubr.msk.f32.vlgmr.msra.gmra.mxu0 %vm168_vm1, %v3423_v7 }
 0xfef   :  { %3435 = vmatpush3.xpose.msk.msra.mxu0 %vm168_vm1, %v2238_v62  ;;  %3438 = vmatprep.mubr.msk.f32.mxu0 %vm168_vm1, %v2232_v63 }
 0xff0   :  { %3436 = vmatprep.subr.msk.mxu0 %vm168_vm1, %v2236_v12 }
 0xff3   :  { %3437 = vmatpush3.xpose.msk.msra.mxu0 %vm168_vm1, %v2236_v12 }
 0xff4   :  { %3453 = vmatprep.subr.msk.mxu0 %vm168_vm1, %v2524_v13 }
 0xff6   :  { %3439 = vmatmul.mubr.msk.f32.vlgmr.msra.gmra.mxu0 %vm168_vm1, %v2234_v14 }
 0xff7   :  { %3454 = vmatpush3.xpose.msk.msra.mxu0 %vm168_vm1, %v2524_v13  ;;  %3457 = vmatprep.mubr.msk.f32.mxu0 %vm168_vm1, %v2518_v9 }
 0xff8   :  { %3455 = vmatprep.subr.msk.mxu0 %vm168_vm1, %v2522_v16 }
 0xffb   :  { %3456 = vmatpush3.xpose.msk.msra.mxu0 %vm168_vm1, %v2522_v16 }
 0xffc   :  { %3472 = vmatprep.subr.mxu0 %v3887_v2 }
 0xffe   :  { %3458 = vmatmul.mubr.msk.f32.vlgmr.msra.gmra.mxu0 %vm168_vm1, %v2520_v17 }
 0xfff   :  { %3473 = vmatpush3.msra.mxu0 %v3887_v2 }
0x1000   :  { %3474 = vmatprep.subr.mxu0 %v3892_v53 }
0x1001   :  { %3475 = vmatpush3.msra.mxu0 %v3892_v53 }
0x1002   :  { %3476 = vmatprep.subr.mxu0 %v3899_v54 }
0x1003   :  { %3477 = vmatpush3.msra.mxu0 %v3899_v54 }
0x1004   :  { %3478 = vmatprep.subr.mxu0 %v3906_v55 }
0x1005   :  { %3479 = vmatpush3.msra.mxu0 %v3906_v55 }
0x10ae   :  { %v4125_v18 = vpop.f32.mrf.mxu0 }
0x10b0   :  { %v4127_v20 = vpop.f32.mrf.mxu0 }
0x10b6   :  { %v3440_v30 = vpop.f32.mrf.mxu0 }
0x10b7   :  { %v2323_v31 = vmul.f32 0.35355338, %v3440_v30 }
0x10b8   :  { %v2313_v32 = vpop.f32.mrf.mxu0 }
0x10b9   :  { %v2322_v2 = vmul.f32 0.35355338, %v2313_v32  ;;  %v2327_v33 = vsel %vm258_vm2, %v2323_v31, -inf }
0x10ba   :  { %2328 = vmax.xlane.f32.xlu1 %v2327_v33 }
0x10bb   :  { %v2324_v53 = vsel %vm254_vm3, %v2322_v2, -inf }
0x10bc   :  { %2325 = vmax.xlane.f32.xlu0 %v2324_v53 }
0x10be   :  { %v3459_v54 = vpop.f32.mrf.mxu0 }
0x10bf   :  { %v2609_v50 = vmul.f32 0.35355338, %v3459_v54 }
0x10c0   :  { %v2599_v34 = vpop.f32.mrf.mxu0 }
0x10c1   :  { %v2608_v55 = vmul.f32 0.35355338, %v2599_v34  ;;  %v2613_v52 = vsel %vm258_vm2, %v2609_v50, -inf }
0x10c3   :  { %v2610_v37 = vsel %vm254_vm3, %v2608_v55, -inf }
0x10cb   :  { %2348 = vrot.lane.b32.xlu1 %v4022_v36, %s3602_s16 }
0x10ef   :  { %2611 = vmax.xlane.f32.xlu1 %v2610_v37 }
0x1143   :  { %v2329_v39 = vpop.xlane.xlu1 %2328 }
0x1144   :  { %v2331_v27 = vsub.f32 %v2323_v31, %v2329_v39  ;;  %v3433_v31 = vpop.f32.mrf.mxu1 }
0x1145   :  { %v2326_v11 = vpop.xlane.xlu0 %2325  ;;  %v2228_v37 = vadd.f32 %v3433_v31, %v4125_v18 }
0x1146   :  { %v2334_v6 = vmul.f32 1.442695, %v2331_v27  ;;  %v2330_v29 = vsub.f32 %v2322_v2, %v2326_v11  ;;  %v2222_v32 = vpop.f32.mrf.mxu1 }
0x1147   :  { %v2349_v40 = vpop.permute.xlu1 %2348  ;;  %v2223_v27 = vadd.f32 %v2222_v32, %v4127_v20 }
0x1148   :  { %3565 = vpow2.f32 %v2334_v6  ;;  %v2332_v41 = vmul.f32 1.442695, %v2330_v29  ;;  %3441 = vmatprep.subr.msk.mxu1 %vm289_vm4, %v2349_v40 }
0x1149   :  { %3442 = vmatpush3.msk.msra.mxu1 %vm289_vm4, %v2349_v40 }
0x114a   :  { %3567 = vpow2.f32 %v2332_v41 }
0x1155   :  { %v3566_v42 = vpop.eup %3565 }
0x1156   :  { %v2339_v43 = vsel %vm258_vm2, %v3566_v42, 0.0 }
0x1157   :  { %v3568_v44 = vpop.eup %3567  ;;  %2340 = vadd.xlane.f32.xlu0 %v2339_v43 }
0x1158   :  { %v2336_v45 = vsel %vm254_vm3, %v3568_v44, 0.0 }
0x115b   :  { %2337 = vadd.xlane.f32.xlu0 %v2336_v45 }
0x1171   :  { %2346 = vrot.lane.b32.xlu0 %v4025_v38, %s3602_s16 }
0x1178   :  { %v2612_v46 = vpop.xlane.xlu1 %2611 }
0x1179   :  { %v2616_v47 = vsub.f32 %v2608_v55, %v2612_v46 }
0x117b   :  { %v2618_v48 = vmul.f32 1.442695, %v2616_v47 }
0x117d   :  { %3569 = vpow2.f32 %v2618_v48 }
0x118a   :  { %v3570_v49 = vpop.eup %3569 }
0x118b   :  { %v2622_v51 = vsel %vm254_vm3, %v3570_v49, 0.0 }
0x118c   :  { %2623 = vadd.xlane.f32.xlu1 %v2622_v51 }
0x1190   :  { %2614 = vmax.xlane.f32.xlu0 %v2613_v52 }
0x119d   :  { %2634 = vrot.lane.b32.xlu1 %v4022_v36, %s3603_s17 }
0x11e0   :  { %v2341_v5 = vpop.xlane.xlu0 %2340 }
0x11e1   :  { %3571 = vrcp.f32 %v2341_v5 }
0x11e4   :  { %v2338_v60 = vpop.xlane.xlu0 %2337 }
0x11e5   :  { %3573 = vrcp.f32 %v2338_v60 }
0x11e8   :  { %v2347_v62 = vpop.permute.xlu0 %2346 }
0x11e9   :  { %3443 = vmatprep.subr.mxu1 %v2347_v62 }
0x11ea   :  { %3444 = vmatpush3.msra.mxu1 %v2347_v62 }
0x11eb   :  { %3448 = vmatprep.subr.mxu1 %v3845_v61 }
0x11ee   :  { %v3572_v63 = vpop.eup %3571 }
0x11ef   :  { %v2345_v8 = vmul.f32 %v3572_v63, %v3566_v42 }
0x11f2   :  { %v3574_v7 = vpop.eup %3573 }
0x11f3   :  { %v2344_v12 = vmul.f32 %v3574_v7, %v3568_v44 }
0x11f5   :  { %3445 = vmatprep.mubr.msk.f32.mxu1 %vm254_vm3, %v2344_v12 }
0x11f6   :  { %3446 = vmatmul.mubr.msk.f32.vlgmr.msra.gmra.mxu1 %vm254_vm3, %v2345_v8 }
0x11f7   :  { %3449 = vmatpush3.msra.mxu1 %v3845_v61 }
0x1215   :  { %v2624_v36 = vpop.xlane.xlu1 %2623 }
0x1219   :  { %v2635_v13 = vpop.permute.xlu1 %2634  ;;  %v2615_v14 = vpop.xlane.xlu0 %2614 }
0x121a   :  { %v2617_v9 = vsub.f32 %v2609_v50, %v2615_v14  ;;  %3460 = vmatprep.subr.msk.mxu1 %vm289_vm4, %v2635_v13 }
0x121c   :  { %v2620_v16 = vmul.f32 1.442695, %v2617_v9 }
0x121e   :  { %3575 = vpow2.f32 %v2620_v16 }
0x121f   :  { %3577 = vrcp.f32 %v2624_v36 }
0x122b   :  { %v3576_v17 = vpop.eup %3575 }
0x122c   :  { %v2625_v30 = vsel %vm258_vm2, %v3576_v17, 0.0  ;;  %v3578_v2 = vpop.eup %3577 }
0x122d   :  { %2626 = vadd.xlane.f32.xlu0 %v2625_v30  ;;  %v2630_v54 = vmul.f32 %v3578_v2, %v3570_v49 }
0x1243   :  { %2632 = vrot.lane.b32.xlu0 %v4025_v38, %s3603_s17 }
0x12b6   :  { %v3447_v61 = vpop.f32.mrf.mxu1  ;;  %v2627_v33 = vpop.xlane.xlu0 %2626 }
0x12b7   :  { %3579 = vrcp.f32 %v2627_v33 }
0x12b8   :  { %v2425_v53 = vpop.f32.mrf.mxu1 }
0x12b9   :  { %3450 = vmatprep.mubr.msk.f32.mxu1 %vm168_vm1, %v2425_v53 }
0x12ba   :  { %3451 = vmatmul.mubr.msk.f32.vlgmr.msra.gmra.mxu1 %vm168_vm1, %v3447_v61  ;;  %v2633_v34 = vpop.permute.xlu0 %2632 }
0x12bb   :  { %3461 = vmatpush3.msk.msra.mxu1 %vm289_vm4, %v2635_v13  ;;  %3464 = vmatprep.mubr.msk.f32.mxu1 %vm254_vm3, %v2630_v54 }
0x12bc   :  { %3462 = vmatprep.subr.mxu1 %v2633_v34 }
0x12bd   :  { %3463 = vmatpush3.msra.mxu1 %v2633_v34 }
0x12be   :  { %3467 = vmatprep.subr.mxu1 %v3863_v26 }
0x12c4   :  { %v3580_v38 = vpop.eup %3579 }
0x12c5   :  { %v2631_v55 = vmul.f32 %v3580_v38, %v3576_v17 }
0x12c7   :  { %3465 = vmatmul.mubr.msk.f32.vlgmr.msra.gmra.mxu1 %vm254_vm3, %v2631_v55 }
0x12c8   :  { %3468 = vmatpush3.msra.mxu1 %v3863_v26 }
0x12c9   :  { %3483 = vmatprep.subr.mxu1 %v3916_v56 }
0x137a   :  { %v3452_v39 = vpop.f32.mrf.mxu1 }
0x137b   :  { %v2516_v11 = vadd.f32 %v3452_v39, %v2228_v37 }
0x137c   :  { %v2506_v6 = vpop.f32.mrf.mxu1 }
0x137d   :  { %v2515_v29 = vadd.f32 %v2506_v6, %v2223_v27 }
0x1387   :  { %v3466_v40 = vpop.f32.mrf.mxu1 }
0x1389   :  { %v2711_v41 = vpop.f32.mrf.mxu1 }
0x138a   :  { %3469 = vmatprep.mubr.msk.f32.mxu1 %vm168_vm1, %v2711_v41 }
0x138b   :  { %3470 = vmatmul.mubr.msk.f32.vlgmr.msra.gmra.mxu1 %vm168_vm1, %v3466_v40 }
0x138c   :  { %3484 = vmatpush3.msra.mxu1 %v3916_v56 }
0x138d   :  { %3485 = vmatprep.subr.mxu1 %v3921_v57 }
0x138e   :  { %3486 = vmatpush3.msra.mxu1 %v3921_v57 }
0x138f   :  { %3487 = vmatprep.subr.mxu1 %v3928_v58 }
0x1390   :  { %3488 = vmatpush3.msra.mxu1 %v3928_v58 }
0x1391   :  { %3489 = vmatprep.subr.mxu1 %v3935_v59 }
0x1392   :  { %3490 = vmatpush3.msra.mxu1 %v3935_v59 }
0x1393   :  { %3491 = vmatprep.subr.mxu1 %v3987_v0 }
0x1394   :  { %3492 = vmatpush3.msra.mxu1 %v3987_v0 }
0x1395   :  { %3493 = vmatprep.subr.mxu1 %v3994_v1 }
0x1396   :  { %3494 = vmatpush3.msra.mxu1 %v3994_v1 }
0x1397   :  { %3495 = vmatprep.subr.mxu1 %v4001_v3 }
0x1398   :  { %3496 = vmatpush3.msra.mxu1 %v4001_v3 }
0x1399   :  { %3497 = vmatprep.subr.mxu1 %v4007_v4 }
0x139a   :  { %3498 = vmatpush3.msra.mxu1 %v4007_v4  ;;  %v3085_v4 = vld [vmem:[%s4244_s10] ss:$0 sm:$0xff] }
0x139b   :  { %v1532_v45 = vadd.f32 %v4067_v10, %v3085_v4 }
0x139d   :  { %v1536_v50 = vadd.f32 %v1532_v45, %v3957_v22 }
0x139f   :  { %v1540_v5 = vsel %vm1317_vm5, %v1536_v50, 0.0 }
0x144b   :  { %v3471_v26 = vpop.f32.mrf.mxu1 }
0x144c   :  { %v2802_v56 = vadd.f32 %v3471_v26, %v2516_v11 }
0x144d   :  { %v2792_v57 = vpop.f32.mrf.mxu1 }
0x144e   :  { %v2804_v58 = vadd.f32 %v3874_v35, %v2802_v56  ;;  %v2801_v59 = vadd.f32 %v2792_v57, %v2515_v29 }
0x1450   :  { %v2803_v0 = vadd.f32 %v3874_v35, %v2801_v59  ;;  %v2806_v18 = vadd.f32 %v3978_v24, %v2804_v58  ;;  %v1527_v24 = vadd.f32 %v3085_v4, %v4069_v28 }
0x1452   :  { %v2810_v1 = vsel %vm1317_vm5, %v2806_v18, 0.0  ;;  %v2805_v20 = vadd.f32 %v3962_v23, %v2803_v0  ;;  %v1535_v52 = vadd.f32 %v1527_v24, %v3954_v21 }
0x1453   :  { %2811 = vadd.xlane.f32.xlu0 %v2810_v1 }
0x1454   :  { %v2807_v3 = vsel %vm80_vm0, %v2805_v20, 0.0  ;;  %v1537_v10 = vsel %vm80_vm0, %v1535_v52, 0.0 }
0x1455   :  { %2808 = vadd.xlane.f32.xlu1 %v2807_v3 }
0x14dc   :  { %v2812_v42 = vpop.xlane.xlu0 %2811 }
0x14dd   :  { %v2814_v43 = vmul.f32 0.03125, %v2812_v42 }
0x14de   :  { %v2809_v44 = vpop.xlane.xlu1 %2808 }
0x14df   :  { %v2816_v35 = vsub.f32 %v2806_v18, %v2814_v43  ;;  %v2813_v46 = vmul.f32 0.03125, %v2809_v44 }
0x14e1   :  { %v2815_v47 = vsub.f32 %v2805_v20, %v2813_v46  ;;  %v2818_v48 = vmul.f32 %v2816_v35, %v2816_v35 }
0x14e3   :  { %v2822_v23 = vsel %vm1317_vm5, %v2818_v48, 0.0  ;;  %v2817_v49 = vmul.f32 %v2815_v47, %v2815_v47 }
0x14e4   :  { %2823 = vadd.xlane.f32.xlu0 %v2822_v23 }
0x14e5   :  { %v2819_v51 = vsel %vm80_vm0, %v2817_v49, 0.0  ;;  %v3089_v49 = vld [vmem:[%s4246_s12] ss:$0 sm:$0xff] }
0x14e6   :  { %2820 = vadd.xlane.f32.xlu1 %v2819_v51 }
0x14e8   :  { %1541 = vadd.xlane.f32.xlu0 %v1540_v5 }
0x14ea   :  { %1538 = vadd.xlane.f32.xlu1 %v1537_v10 }
0x156d   :  { %v2824_v28 = vpop.xlane.xlu0 %2823 }
0x156e   :  { %v2826_v60 = vmul.f32 0.03125, %v2824_v28 }
0x156f   :  { %v2821_v62 = vpop.xlane.xlu1 %2820 }
0x1570   :  { %v2828_v63 = vadd.f32 1e-05, %v2826_v60  ;;  %v2825_v7 = vmul.f32 0.03125, %v2821_v62 }
0x1572   :  { %3581 = vrsqrt.f32 %v2828_v63  ;;  %v2827_v12 = vadd.f32 1e-05, %v2825_v7 }
0x1573   :  { %v1539_v33 = vpop.xlane.xlu1 %1538 }
0x1574   :  { %3583 = vrsqrt.f32 %v2827_v12 }
0x157f   :  { %v3582_v22 = vpop.eup %3581 }
0x1580   :  { %v2832_v8 = vmul.f32 %v3582_v22, %v2816_v35 }
0x1581   :  { %v3584_v36 = vpop.eup %3583 }
0x1582   :  { %v2831_v13 = vmul.f32 %v3584_v36, %v2815_v47  ;;  %v2834_v21 = vmul.f32 %v3944_v15, %v2832_v8  ;;  %v3088_v47 = vld [vmem:[%s4245_s11] ss:$0 sm:$0xff] }
0x1584   :  { %v2833_v14 = vmul.f32 %v3944_v15, %v2831_v13  ;;  %v2836_v16 = vadd.f32 %v3950_v19, %v2834_v21  ;;  %v1542_v15 = vpop.xlane.xlu0 %1541 }
0x1585   :  { %v1544_v53 = vmul.f32 0.03125, %v1542_v15 }
0x1586   :  { %v2835_v9 = vadd.f32 %v3950_v19, %v2833_v14  ;;  %v1543_v19 = vmul.f32 0.03125, %v1539_v33 }
0x1587   :  { %v1546_v34 = vsub.f32 %v1536_v50, %v1544_v53 }
0x1588   :  { %3480 = vmatprep.mubr.msk.f32.mxu0 %vm80_vm0, %v2835_v9  ;;  %v1545_v37 = vsub.f32 %v1535_v52, %v1543_v19 }
0x1589   :  { %3481 = vmatmul.mubr.msk.f32.vlgmr.msra.gmra.mxu0 %vm80_vm0, %v2836_v16  ;;  %v1548_v6 = vmul.f32 %v1546_v34, %v1546_v34 }
0x158a   :  { %v1547_v40 = vmul.f32 %v1545_v37, %v1545_v37 }
0x158b   :  { %v1552_v41 = vsel %vm1317_vm5, %v1548_v6, 0.0 }
0x158c   :  { %v1549_v26 = vsel %vm80_vm0, %v1547_v40, 0.0 }
0x1649   :  { %v3482_v17 = vpop.f32.mrf.mxu0 }
0x164a   :  { %v2915_v30 = vadd.f32 %v3482_v17, %v4015_v25 }
0x164b   :  { %v2909_v31 = vpop.f32.mrf.mxu0 }
0x164c   :  { %v2910_v32 = vadd.f32 %v4015_v25, %v2909_v31  ;;  %v2919_v61 = vmax.f32 %v2915_v30, 0.0 }
0x164e   :  { %v2918_v2 = vmax.f32 %v2910_v32, 0.0 }
0x1650   :  { %3499 = vmatprep.mubr.msk.f32.mxu1 %vm1453_vm6, %v2918_v2 }
0x1651   :  { %3500 = vmatmul.mubr.msk.f32.vlgmr.msra.gmra.mxu1 %vm1453_vm6, %v2919_v61 }
0x1711   :  { %v3501_v54 = vpop.f32.mrf.mxu1 }
0x1712   :  { %v2998_v38 = vadd.f32 %v3501_v54, %v3085_v4 }
0x1713   :  { %v2992_v55 = vpop.f32.mrf.mxu1 }
0x1714   :  { %v2993_v39 = vadd.f32 %v3085_v4, %v2992_v55  ;;  %v3002_v27 = vadd.f32 %v2998_v38, %v2836_v16 }
0x1716   :  { %v3006_v11 = vsel %vm1317_vm5, %v3002_v27, 0.0  ;;  %v3001_v25 = vadd.f32 %v2993_v39, %v2835_v9 }
0x1717   :  { %3007 = vadd.xlane.f32.xlu0 %v3006_v11 }
0x1718   :  { %v3003_v29 = vsel %vm80_vm0, %v3001_v25, 0.0 }
0x1719   :  { %3004 = vadd.xlane.f32.xlu1 %v3003_v29 }
0x171b   :  { %1553 = vadd.xlane.f32.xlu0 %v1552_v41 }
0x171d   :  { %1550 = vadd.xlane.f32.xlu1 %v1549_v26 }
0x17a0   :  { %v3008_v56 = vpop.xlane.xlu0 %3007 }
0x17a1   :  { %v3010_v57 = vmul.f32 0.03125, %v3008_v56 }
0x17a2   :  { %v3005_v58 = vpop.xlane.xlu1 %3004 }
0x17a3   :  { %v3012_v59 = vsub.f32 %v3002_v27, %v3010_v57  ;;  %v3009_v0 = vmul.f32 0.03125, %v3005_v58 }
0x17a4   :  { %v1554_v18 = vpop.xlane.xlu0 %1553 }
0x17a5   :  { %v3011_v1 = vsub.f32 %v3001_v25, %v3009_v0  ;;  %v1556_v20 = vmul.f32 0.03125, %v1554_v18  ;;  %v3014_v3 = vmul.f32 %v3012_v59, %v3012_v59 }
0x17a6   :  { %v1551_v4 = vpop.xlane.xlu1 %1550 }
0x17a7   :  { %v1558_v42 = vadd.f32 1e-05, %v1556_v20  ;;  %v1555_v43 = vmul.f32 0.03125, %v1551_v4  ;;  %v3018_v44 = vsel %vm1317_vm5, %v3014_v3, 0.0  ;;  %v3013_v45 = vmul.f32 %v3011_v1, %v3011_v1 }
0x17a8   :  { %3019 = vadd.xlane.f32.xlu0 %v3018_v44 }
0x17a9   :  { %3585 = vrsqrt.f32 %v1558_v42  ;;  %v1557_v35 = vadd.f32 1e-05, %v1555_v43  ;;  %v3015_v46 = vsel %vm80_vm0, %v3013_v45, 0.0 }
0x17aa   :  { %3016 = vadd.xlane.f32.xlu1 %v3015_v46 }
0x17ab   :  { %3587 = vrsqrt.f32 %v1557_v35 }
0x17b6   :  { %v3586_v24 = vpop.eup %3585 }
0x17b7   :  { %v1562_v48 = vmul.f32 %v3586_v24, %v1546_v34 }
0x17b8   :  { %v3588_v23 = vpop.eup %3587 }
0x17b9   :  { %v1570_v50 = vmul.f32 %v3088_v47, %v1562_v48  ;;  %v1561_v51 = vmul.f32 %v3588_v23, %v1545_v37 }
0x17bb   :  { %v1578_v52 = vadd.f32 %v3089_v49, %v1570_v50  ;;  %v1569_v5 = vmul.f32 %v3088_v47, %v1561_v51 }
0x17bd   :  { %1580 = vst.msk [vmem:[%s4247_s13 + $0x8] sm:$0x1] %vm1317_vm5, %v1578_v52  ;;  %v1577_v10 = vadd.f32 %v3089_v49, %v1569_v5 }
0x17bf   :  { %1579 = vst.msk [vmem:[%s4247_s13] sm:$0xff] %vm80_vm0, %v1577_v10 }
0x1831   :  { %v3020_v28 = vpop.xlane.xlu0 %3019 }
0x1832   :  { %v3022_v60 = vmul.f32 0.03125, %v3020_v28 }
0x1833   :  { %v3017_v62 = vpop.xlane.xlu1 %3016 }
0x1834   :  { %v3024_v63 = vadd.f32 1e-05, %v3022_v60  ;;  %v3021_v7 = vmul.f32 0.03125, %v3017_v62 }
0x1836   :  { %3589 = vrsqrt.f32 %v3024_v63  ;;  %v3023_v12 = vadd.f32 1e-05, %v3021_v7 }
0x1838   :  { %3591 = vrsqrt.f32 %v3023_v12 }
0x1843   :  { %v3590_v22 = vpop.eup %3589 }
0x1844   :  { %v3028_v8 = vmul.f32 %v3590_v22, %v3012_v59 }
0x1845   :  { %v3592_v36 = vpop.eup %3591 }
0x1846   :  { %v3030_v13 = vmul.f32 %v3088_v47, %v3028_v8  ;;  %v3027_v21 = vmul.f32 %v3592_v36, %v3011_v1 }
0x1848   :  { %v3032_v14 = vadd.f32 %v3089_v49, %v3030_v13  ;;  %v3029_v9 = vmul.f32 %v3088_v47, %v3027_v21 }
0x184a   :  { %3135 = vst.msk [vmem:[%s4247_s13 + $0x18] sm:$0x1] %vm1317_vm5, %v3032_v14  ;;  %v3031_v16 = vadd.f32 %v3089_v49, %v3029_v9 }
0x184c   :  { %3134 = vst.msk [vmem:[%s4247_s13 + $0x10] sm:$0xff] %vm80_vm0, %v3031_v16 }

// kernel: retargeter_encoder_forward.6
= control target key start
LH: loop header
LB: loop body
LE: loop exit
PB: predicated region body
PF: predicated region fallthrough
CT: control target
= control target key end

     0   :  { %vm82_vm0 = vcmask 261120   ;;  %vm170_vm1 = vcmask 64512   ;;  %s3637_s27 = smov 96   ;;  %vm260_vm2 = vcmask 65536   ;;  %vm256_vm3 = vcmask 72704   ;;  %s3639_s28 = smov 64   ;;  %s4346_s1 = inlined_call_operand.vmem [shape: f32[32,96], index: 1, kind: input, shape index: {}]   ;;  %s4347_s0 = inlined_call_operand.vmem [shape: f32[2,9,32], index: 0, kind: input, shape index: {}]   ;;  %s4348_s2 = inlined_call_operand.vmem [shape: f32[1,96], index: 2, kind: input, shape index: {}]   ;;  %s4349_s14 = inlined_call_operand.vmem [shape: f32[2,4,9,9], index: 14, kind: output, shape index: {1}]   ;;  %s4350_s3 = inlined_call_operand.vmem [shape: f32[32,32], index: 3, kind: input, shape index: {}]   ;;  %s4351_s4 = inlined_call_operand.vmem [shape: f32[1,32], index: 4, kind: input, shape index: {}]   ;;  %s4352_s7 = inlined_call_operand.vmem [shape: f32[32,64], index: 7, kind: input, shape index: {}]   ;;  %s4353_s9 = inlined_call_operand.vmem [shape: f32[64,32], index: 9, kind: input, shape index: {}]   ;;  %s4354_s5 = inlined_call_operand.vmem [shape: f32[1,32], index: 5, kind: input, shape index: {}]   ;;  %s4355_s6 = inlined_call_operand.vmem [shape: f32[1,32], index: 6, kind: input, shape index: {}]   ;;  %s4356_s8 = inlined_call_operand.vmem [shape: f32[1,64], index: 8, kind: input, shape index: {}]   ;;  %s4357_s10 = inlined_call_operand.vmem [shape: f32[1,32], index: 10, kind: input, shape index: {}]   ;;  %s4358_s11 = inlined_call_operand.vmem [shape: f32[1,32], index: 11, kind: input, shape index: {}]   ;;  %s4359_s12 = inlined_call_operand.vmem [shape: f32[1,32], index: 12, kind: input, shape index: {}]   ;;  %s4360_s13 = inlined_call_operand.vmem [shape: f32[2,9,32], index: 13, kind: output, shape index: {0}]  }
   0x1   :  { %v3725_v0 = vld [vmem:[%s4346_s1 + $0x18] sm:$0xff]  ;;  %v3730_v1 = vld [vmem:[%s4346_s1 + $0x10] sm:$0xff]  ;;  %v3736_v2 = vld [vmem:[%s4347_s0] sm:$0xff]  ;;  %vm293_vm4 = vcmask 1040384   ;;  %s3640_s29 = smov 56   ;;  %s3641_s30 = smov 80  }
   0x2   :  { %3311 = vmatprep.subr.mxu0 %v3725_v0  ;;  %v3742_v3 = vld [vmem:[%s4346_s1 + $0x8] sm:$0xff]  ;;  %3319 = vmatprep.mubr.msk.f32.mxu0 %vm82_vm0, %v3736_v2  ;;  %v3751_v4 = vld [vmem:[%s4346_s1] sm:$0xff]  ;;  %s3636_s1 = smov 88   ;;  %s3642_s15 = smov 112   ;;  %vm1330_vm5 = vcmask 253952   ;;  %vm1466_vm6 = vcmask 523264  }
   0x3   :  { %3312 = vmatpush3.msra.mxu0 %v3725_v0  ;;  %v3758_v5 = vld [vmem:[%s4347_s0 + $0x8] sm:$0x1]  ;;  %v3767_v6 = vld [vmem:[%s4348_s2] ss:$0 sm:$0xff]  ;;  %s3638_s2 = smov 120   ;;  %s3643_s16 = smov 72  }
   0x4   :  { %3313 = vmatprep.subr.mxu0 %v3730_v1  ;;  %s3644_s17 = smov 104   ;;  %s3645_s21 = smov 48  }
   0x5   :  { %3314 = vmatpush3.msra.mxu0 %v3730_v1  ;;  %s3646_s22 = smov 40  }
   0x6   :  { %3315 = vmatprep.subr.mxu0 %v3742_v3 }
   0x7   :  { %3316 = vmatpush3.msra.mxu0 %v3742_v3 }
   0x8   :  { %3317 = vmatprep.subr.mxu0 %v3751_v4 }
   0x9   :  { %3318 = vmatpush3.msra.mxu0 %v3751_v4 }
   0xa   :  { %3320 = vmatmul.mubr.msk.f32.vlgmr.msra.gmra.mxu0 %vm82_vm0, %v3758_v5 }
  0xca   :  { %v3321_v7 = vpop.f32.mrf.mxu0 }
  0xcb   :  { %v3770_v8 = vadd.f32 %v3321_v7, %v3767_v6 }
  0xcc   :  { %v155_v9 = vpop.f32.mrf.mxu0 }
  0xcd   :  { %v3773_v10 = vadd.f32 %v3767_v6, %v155_v9  ;;  %377 = vrot.lane.b32.xlu1 %v3770_v8, %s3636_s1  ;;  %168 = vrot.lane.b32.xlu0 %v3770_v8, %s3637_s27  ;;  %v3860_v9 = vld [vmem:[%s4350_s3 + $0x8] sm:$0xff] }
  0xcf   :  { %3326 = vmatprep.mubr.msk.f32.mxu1 %vm170_vm1, %v3773_v10 }
  0xd1   :  { %375 = vrot.lane.b32.xlu1 %v3773_v10, %s3636_s1  ;;  %166 = vrot.lane.b32.xlu0 %v3773_v10, %s3637_s27 }
  0xd5   :  { %373 = vrot.lane.b32.xlu1 %v3770_v8, %s3638_s2  ;;  %371 = vrot.lane.b32.xlu0 %v3773_v10, %s3638_s2 }
 0x13f   :  { %v169_v11 = vpop.permute.xlu0 %168  ;;  %v378_v12 = vpop.permute.xlu1 %377 }
 0x140   :  { %3322 = vmatprep.subr.msk.mxu1 %vm170_vm1, %v169_v11 }
 0x141   :  { %3323 = vmatpush3.xpose.msk.msra.mxu1 %vm170_vm1, %v169_v11  ;;  %v3867_v11 = vld [vmem:[%s4350_s3] sm:$0xff] }
 0x143   :  { %v167_v13 = vpop.permute.xlu0 %166  ;;  %v376_v15 = vpop.permute.xlu1 %375 }
 0x144   :  { %3324 = vmatprep.subr.msk.mxu1 %vm170_vm1, %v167_v13 }
 0x145   :  { %3325 = vmatpush3.xpose.msk.msra.mxu1 %vm170_vm1, %v167_v13 }
 0x146   :  { %3336 = vmatprep.subr.msk.mxu1 %vm170_vm1, %v378_v12 }
 0x147   :  { %v372_v14 = vpop.permute.xlu0 %371  ;;  %v374_v16 = vpop.permute.xlu1 %373 }
 0x148   :  { %3327 = vmatmul.mubr.msk.f32.vlgmr.msra.gmra.mxu1 %vm170_vm1, %v3770_v8 }
 0x149   :  { %3337 = vmatpush3.xpose.msk.msra.mxu1 %vm170_vm1, %v378_v12  ;;  %3340 = vmatprep.mubr.msk.f32.mxu1 %vm170_vm1, %v372_v14 }
 0x14a   :  { %3338 = vmatprep.subr.msk.mxu1 %vm170_vm1, %v376_v15 }
 0x14d   :  { %3339 = vmatpush3.xpose.msk.msra.mxu1 %vm170_vm1, %v376_v15 }
 0x150   :  { %3341 = vmatmul.mubr.msk.f32.vlgmr.msra.gmra.mxu1 %vm170_vm1, %v374_v16 }
 0x208   :  { %v3328_v17 = vpop.f32.mrf.mxu1 }
 0x209   :  { %v255_v18 = vmul.f32 0.35355338, %v3328_v17 }
 0x20a   :  { %v245_v19 = vpop.f32.mrf.mxu1 }
 0x20b   :  { %v254_v20 = vmul.f32 0.35355338, %v245_v19  ;;  %v261_v21 = vsel %vm260_vm2, %v255_v18, -inf }
 0x20c   :  { %262 = vmax.xlane.f32.xlu1 %v261_v21 }
 0x20d   :  { %v257_v22 = vsel %vm256_vm3, %v254_v20, -inf }
 0x20e   :  { %258 = vmax.xlane.f32.xlu0 %v257_v22 }
 0x210   :  { %v3342_v23 = vpop.f32.mrf.mxu1 }
 0x211   :  { %v463_v26 = vmul.f32 0.35355338, %v3342_v23 }
 0x212   :  { %v453_v24 = vpop.f32.mrf.mxu1 }
 0x213   :  { %v462_v25 = vmul.f32 0.35355338, %v453_v24  ;;  %v467_v28 = vsel %vm260_vm2, %v463_v26, -inf }
 0x215   :  { %v464_v27 = vsel %vm256_vm3, %v462_v25, -inf }
 0x216   :  { %465 = vmax.xlane.f32.xlu0 %v464_v27 }
 0x21a   :  { %468 = vmax.xlane.f32.xlu0 %v467_v28 }
 0x21d   :  { %284 = vrot.lane.b32.xlu1 %v3770_v8, %s3639_s28 }
 0x295   :  { %v263_v29 = vpop.xlane.xlu1 %262 }
 0x296   :  { %v265_v30 = vsub.f32 %v255_v18, %v263_v29 }
 0x297   :  { %v259_v31 = vpop.xlane.xlu0 %258 }
 0x298   :  { %v268_v32 = vmul.f32 1.442695, %v265_v30  ;;  %v264_v33 = vsub.f32 %v254_v20, %v259_v31 }
 0x299   :  { %v285_v34 = vpop.permute.xlu1 %284 }
 0x29a   :  { %3556 = vpow2.f32 %v268_v32  ;;  %v266_v35 = vmul.f32 1.442695, %v264_v33  ;;  %3329 = vmatprep.subr.msk.mxu0 %vm293_vm4, %v285_v34 }
 0x29b   :  { %3330 = vmatpush3.msk.msra.mxu0 %vm293_vm4, %v285_v34 }
 0x29c   :  { %3558 = vpow2.f32 %v266_v35 }
 0x29f   :  { %v466_v36 = vpop.xlane.xlu0 %465 }
 0x2a0   :  { %v470_v46 = vsub.f32 %v462_v25, %v466_v36 }
 0x2a2   :  { %v472_v47 = vmul.f32 1.442695, %v470_v46 }
 0x2a3   :  { %v469_v37 = vpop.xlane.xlu0 %468 }
 0x2a4   :  { %v471_v38 = vsub.f32 %v463_v26, %v469_v37 }
 0x2a6   :  { %v474_v39 = vmul.f32 1.442695, %v471_v38 }
 0x2a7   :  { %v3557_v40 = vpop.eup %3556 }
 0x2a8   :  { %3560 = vpow2.f32 %v474_v39  ;;  %v273_v41 = vsel %vm260_vm2, %v3557_v40, 0.0 }
 0x2a9   :  { %v3559_v42 = vpop.eup %3558  ;;  %274 = vadd.xlane.f32.xlu0 %v273_v41  ;;  %3562 = vpow2.f32 %v472_v47 }
 0x2aa   :  { %v270_v43 = vsel %vm256_vm3, %v3559_v42, 0.0 }
 0x2ab   :  { %271 = vadd.xlane.f32.xlu1 %v270_v43 }
 0x2b5   :  { %v3561_v44 = vpop.eup %3560 }
 0x2b6   :  { %v479_v45 = vsel %vm260_vm2, %v3561_v44, 0.0  ;;  %v3563_v48 = vpop.eup %3562 }
 0x2b7   :  { %480 = vadd.xlane.f32.xlu0 %v479_v45  ;;  %v476_v49 = vsel %vm256_vm3, %v3563_v48, 0.0 }
 0x2bc   :  { %491 = vrot.lane.b32.xlu1 %v3770_v8, %s3640_s29 }
 0x2cd   :  { %282 = vrot.lane.b32.xlu0 %v3773_v10, %s3639_s28 }
 0x2d1   :  { %745 = vrot.lane.b32.xlu0 %v3770_v8, %s3641_s30 }
 0x2d5   :  { %739 = vrot.lane.b32.xlu0 %v3773_v10, %s3642_s15 }
 0x2d9   :  { %1034 = vrot.lane.b32.xlu0 %v3770_v8, %s3643_s16 }
 0x2dd   :  { %1028 = vrot.lane.b32.xlu0 %v3773_v10, %s3644_s17 }
 0x2e0   :  { %477 = vadd.xlane.f32.xlu1 %v476_v49 }
 0x2f1   :  { %489 = vrot.lane.b32.xlu1 %v3773_v10, %s3640_s29 }
 0x2f5   :  { %743 = vrot.lane.b32.xlu1 %v3773_v10, %s3641_s30 }
 0x2f9   :  { %741 = vrot.lane.b32.xlu1 %v3770_v8, %s3642_s15 }
 0x2fd   :  { %1032 = vrot.lane.b32.xlu1 %v3773_v10, %s3643_s16 }
 0x301   :  { %1030 = vrot.lane.b32.xlu1 %v3770_v8, %s3644_s17 }
 0x332   :  { %v275_v50 = vpop.xlane.xlu0 %274 }
 0x333   :  { %3564 = vrcp.f32 %v275_v50 }
 0x334   :  { %v272_v51 = vpop.xlane.xlu1 %271 }
 0x335   :  { %3566 = vrcp.f32 %v272_v51 }
 0x338   :  { %v492_v58 = vpop.permute.xlu1 %491 }
 0x340   :  { %v3565_v52 = vpop.eup %3564  ;;  %v481_v53 = vpop.xlane.xlu0 %480 }
 0x341   :  { %3568 = vrcp.f32 %v481_v53  ;;  %v279_v54 = vmul.f32 %v3565_v52, %v3557_v40 }
 0x342   :  { %v3567_v55 = vpop.eup %3566 }
 0x343   :  { %v278_v56 = vmul.f32 %v3567_v55, %v3559_v42  ;;  %281 = vst.msk [vmem:[%s4349_s14 + $0x8] sm:$0x1] %vm260_vm2, %v279_v54 }
 0x344   :  { %v283_v57 = vpop.permute.xlu0 %282 }
 0x345   :  { %3331 = vmatprep.subr.mxu0 %v283_v57  ;;  %280 = vst.msk [vmem:[%s4349_s14] sm:$0xff] %vm256_vm3, %v278_v56  ;;  %3333 = vmatprep.mubr.msk.f32.mxu0 %vm256_vm3, %v278_v56 }
 0x346   :  { %3332 = vmatpush3.msra.mxu0 %v283_v57 }
 0x347   :  { %3334 = vmatmul.mubr.msk.f32.vlgmr.msra.gmra.mxu0 %vm256_vm3, %v279_v54  ;;  %3343 = vmatprep.subr.msk.mxu0 %vm293_vm4, %v492_v58 }
 0x348   :  { %3344 = vmatpush3.msk.msra.mxu0 %vm293_vm4, %v492_v58  ;;  %v746_v13 = vpop.permute.xlu0 %745 }
 0x34c   :  { %v740_v17 = vpop.permute.xlu0 %739 }
 0x34e   :  { %v3569_v59 = vpop.eup %3568 }
 0x34f   :  { %v485_v60 = vmul.f32 %v3569_v59, %v3561_v44 }
 0x350   :  { %v1035_v19 = vpop.permute.xlu0 %1034 }
 0x351   :  { %3084 = vst.msk [vmem:[%s4349_s14 + $0x18] sm:$0x1] %vm260_vm2, %v485_v60 }
 0x354   :  { %v1029_v21 = vpop.permute.xlu0 %1028 }
 0x369   :  { %v478_v61 = vpop.xlane.xlu1 %477 }
 0x36a   :  { %3570 = vrcp.f32 %v478_v61  ;;  %v3909_v61 = vld [vmem:[%s4350_s3 + $0x10] sm:$0xff] }
 0x36d   :  { %v490_v62 = vpop.permute.xlu1 %489 }
 0x36e   :  { %3345 = vmatprep.subr.mxu0 %v490_v62 }
 0x36f   :  { %3346 = vmatpush3.msra.mxu0 %v490_v62 }
 0x370   :  { %3350 = vmatprep.subr.mxu0 %v3860_v9 }
 0x371   :  { %v744_v18 = vpop.permute.xlu1 %743 }
 0x375   :  { %v742_v20 = vpop.permute.xlu1 %741 }
 0x377   :  { %v3571_v63 = vpop.eup %3570 }
 0x378   :  { %v484_v7 = vmul.f32 %v3571_v63, %v3563_v48 }
 0x379   :  { %v1033_v22 = vpop.permute.xlu1 %1032 }
 0x37a   :  { %3083 = vst.msk [vmem:[%s4349_s14 + $0x10] sm:$0xff] %vm256_vm3, %v484_v7  ;;  %3347 = vmatprep.mubr.msk.f32.mxu0 %vm256_vm3, %v484_v7 }
 0x37b   :  { %3348 = vmatmul.mubr.msk.f32.vlgmr.msra.gmra.mxu0 %vm256_vm3, %v485_v60 }
 0x37c   :  { %3351 = vmatpush3.msra.mxu0 %v3860_v9 }
 0x37d   :  { %3355 = vmatprep.subr.mxu0 %v3867_v11  ;;  %v1031_v23 = vpop.permute.xlu1 %1030 }
 0x407   :  { %v3335_v12 = vpop.f32.mrf.mxu0 }
 0x409   :  { %v362_v14 = vpop.f32.mrf.mxu0 }
 0x43b   :  { %v3349_v15 = vpop.f32.mrf.mxu0 }
 0x43d   :  { %v568_v16 = vpop.f32.mrf.mxu0 }
 0x43e   :  { %3352 = vmatprep.mubr.msk.f32.mxu0 %vm170_vm1, %v568_v16 }
 0x43f   :  { %3353 = vmatmul.mubr.msk.f32.vlgmr.msra.gmra.mxu0 %vm170_vm1, %v3349_v15 }
 0x440   :  { %3356 = vmatpush3.msra.mxu0 %v3867_v11  ;;  %3357 = vmatprep.mubr.msk.f32.mxu0 %vm170_vm1, %v362_v14 }
 0x441   :  { %3360 = vmatprep.subr.msk.mxu0 %vm170_vm1, %v746_v13 }
 0x443   :  { %3358 = vmatmul.mubr.msk.f32.vlgmr.msra.gmra.mxu0 %vm170_vm1, %v3335_v12 }
 0x444   :  { %3361 = vmatpush3.xpose.msk.msra.mxu0 %vm170_vm1, %v746_v13  ;;  %3364 = vmatprep.mubr.msk.f32.mxu0 %vm170_vm1, %v740_v17 }
 0x445   :  { %3362 = vmatprep.subr.msk.mxu0 %vm170_vm1, %v744_v18 }
 0x448   :  { %3363 = vmatpush3.xpose.msk.msra.mxu0 %vm170_vm1, %v744_v18 }
 0x449   :  { %3379 = vmatprep.subr.msk.mxu0 %vm170_vm1, %v1035_v19 }
 0x44b   :  { %3365 = vmatmul.mubr.msk.f32.vlgmr.msra.gmra.mxu0 %vm170_vm1, %v742_v20 }
 0x44c   :  { %3380 = vmatpush3.xpose.msk.msra.mxu0 %vm170_vm1, %v1035_v19  ;;  %3383 = vmatprep.mubr.msk.f32.mxu0 %vm170_vm1, %v1029_v21 }
 0x44d   :  { %3381 = vmatprep.subr.msk.mxu0 %vm170_vm1, %v1033_v22 }
 0x450   :  { %3382 = vmatpush3.xpose.msk.msra.mxu0 %vm170_vm1, %v1033_v22 }
 0x453   :  { %3384 = vmatmul.mubr.msk.f32.vlgmr.msra.gmra.mxu0 %vm170_vm1, %v1031_v23 }
 0x4ff   :  { %v3354_v24 = vpop.f32.mrf.mxu0 }
 0x501   :  { %v649_v25 = vpop.f32.mrf.mxu0 }
 0x503   :  { %v3359_v26 = vpop.f32.mrf.mxu0 }
 0x504   :  { %v3887_v27 = vadd.f32 %v3359_v26, %v3354_v24 }
 0x505   :  { %v730_v28 = vpop.f32.mrf.mxu0 }
 0x506   :  { %v3889_v29 = vadd.f32 %v730_v28, %v649_v25 }
 0x50b   :  { %v3366_v30 = vpop.f32.mrf.mxu0 }
 0x50c   :  { %v831_v31 = vmul.f32 0.35355338, %v3366_v30 }
 0x50d   :  { %v821_v32 = vpop.f32.mrf.mxu0 }
 0x50e   :  { %v830_v33 = vmul.f32 0.35355338, %v821_v32  ;;  %v835_v34 = vsel %vm260_vm2, %v831_v31, -inf }
 0x50f   :  { %836 = vmax.xlane.f32.xlu1 %v835_v34 }
 0x510   :  { %v832_v35 = vsel %vm256_vm3, %v830_v33, -inf }
 0x511   :  { %833 = vmax.xlane.f32.xlu0 %v832_v35  ;;  %v3954_v35 = vld [vmem:[%s4351_s4] ss:$0 sm:$0xff] }
 0x513   :  { %v3385_v36 = vpop.f32.mrf.mxu0 }
 0x514   :  { %v1120_v55 = vmul.f32 0.35355338, %v3385_v36 }
 0x515   :  { %v1110_v37 = vpop.f32.mrf.mxu0 }
 0x516   :  { %v1119_v38 = vmul.f32 0.35355338, %v1110_v37  ;;  %v1124_v57 = vsel %vm260_vm2, %v1120_v55, -inf }
 0x518   :  { %v1121_v39 = vsel %vm256_vm3, %v1119_v38, -inf }
 0x520   :  { %859 = vrot.lane.b32.xlu1 %v3770_v8, %s3645_s21 }
 0x544   :  { %1122 = vmax.xlane.f32.xlu1 %v1121_v39 }
 0x598   :  { %v837_v40 = vpop.xlane.xlu1 %836 }
 0x599   :  { %v839_v41 = vsub.f32 %v831_v31, %v837_v40 }
 0x59a   :  { %v834_v42 = vpop.xlane.xlu0 %833 }
 0x59b   :  { %v842_v43 = vmul.f32 1.442695, %v839_v41  ;;  %v838_v44 = vsub.f32 %v830_v33, %v834_v42 }
 0x59c   :  { %v860_v45 = vpop.permute.xlu1 %859 }
 0x59d   :  { %3572 = vpow2.f32 %v842_v43  ;;  %v840_v46 = vmul.f32 1.442695, %v838_v44  ;;  %3367 = vmatprep.subr.msk.mxu1 %vm293_vm4, %v860_v45 }
 0x59e   :  { %3368 = vmatpush3.msk.msra.mxu1 %vm293_vm4, %v860_v45 }
 0x59f   :  { %3574 = vpow2.f32 %v840_v46 }
 0x5aa   :  { %v3573_v47 = vpop.eup %3572 }
 0x5ab   :  { %v847_v48 = vsel %vm260_vm2, %v3573_v47, 0.0 }
 0x5ac   :  { %v3575_v49 = vpop.eup %3574  ;;  %848 = vadd.xlane.f32.xlu0 %v847_v48 }
 0x5ad   :  { %v844_v50 = vsel %vm256_vm3, %v3575_v49, 0.0 }
 0x5b0   :  { %845 = vadd.xlane.f32.xlu0 %v844_v50 }
 0x5c6   :  { %857 = vrot.lane.b32.xlu0 %v3773_v10, %s3645_s21 }
 0x5cd   :  { %v1123_v51 = vpop.xlane.xlu1 %1122 }
 0x5ce   :  { %v1127_v52 = vsub.f32 %v1119_v38, %v1123_v51 }
 0x5d0   :  { %v1129_v53 = vmul.f32 1.442695, %v1127_v52 }
 0x5d2   :  { %3576 = vpow2.f32 %v1129_v53  ;;  %v3972_v53 = vld [vmem:[%s4352_s7 + $0x10] sm:$0xff] }
 0x5df   :  { %v3577_v54 = vpop.eup %3576 }
 0x5e0   :  { %v1133_v56 = vsel %vm256_vm3, %v3577_v54, 0.0 }
 0x5e1   :  { %1134 = vadd.xlane.f32.xlu1 %v1133_v56  ;;  %v3996_v56 = vld [vmem:[%s4353_s9 + $0x38] sm:$0xff] }
 0x5e5   :  { %1125 = vmax.xlane.f32.xlu0 %v1124_v57  ;;  %v4001_v57 = vld [vmem:[%s4353_s9 + $0x30] sm:$0xff] }
 0x5f2   :  { %1148 = vrot.lane.b32.xlu1 %v3770_v8, %s3646_s22 }
 0x635   :  { %v849_v58 = vpop.xlane.xlu0 %848 }
 0x636   :  { %3578 = vrcp.f32 %v849_v58  ;;  %v4008_v58 = vld [vmem:[%s4353_s9 + $0x28] sm:$0xff] }
 0x639   :  { %v846_v59 = vpop.xlane.xlu0 %845 }
 0x63a   :  { %3580 = vrcp.f32 %v846_v59  ;;  %v4015_v59 = vld [vmem:[%s4353_s9 + $0x20] sm:$0xff] }
 0x63d   :  { %v858_v60 = vpop.permute.xlu0 %857 }
 0x63e   :  { %3369 = vmatprep.subr.mxu1 %v858_v60 }
 0x63f   :  { %3370 = vmatpush3.msra.mxu1 %v858_v60 }
 0x640   :  { %3374 = vmatprep.subr.mxu1 %v3909_v61 }
 0x643   :  { %v3579_v62 = vpop.eup %3578 }
 0x644   :  { %v853_v63 = vmul.f32 %v3579_v62, %v3573_v47 }
 0x646   :  { %3097 = vst.msk [vmem:[%s4349_s14 + $0x28] sm:$0x1] %vm260_vm2, %v853_v63 }
 0x647   :  { %v3581_v8 = vpop.eup %3580 }
 0x648   :  { %v852_v7 = vmul.f32 %v3581_v8, %v3575_v49 }
 0x64a   :  { %3096 = vst.msk [vmem:[%s4349_s14 + $0x20] sm:$0xff] %vm256_vm3, %v852_v7  ;;  %3371 = vmatprep.mubr.msk.f32.mxu1 %vm256_vm3, %v852_v7 }
 0x64b   :  { %3372 = vmatmul.mubr.msk.f32.vlgmr.msra.gmra.mxu1 %vm256_vm3, %v853_v63 }
 0x64c   :  { %3375 = vmatpush3.msra.mxu1 %v3909_v61 }
 0x66a   :  { %v1135_v12 = vpop.xlane.xlu1 %1134 }
 0x66b   :  { %3582 = vrcp.f32 %v1135_v12 }
 0x66e   :  { %v1149_v13 = vpop.permute.xlu1 %1148  ;;  %v1126_v14 = vpop.xlane.xlu0 %1125 }
 0x66f   :  { %v1128_v15 = vsub.f32 %v1120_v55, %v1126_v14  ;;  %3386 = vmatprep.subr.msk.mxu1 %vm293_vm4, %v1149_v13  ;;  %v3986_v55 = vld [vmem:[%s4352_s7] sm:$0xff] }
 0x671   :  { %v1131_v16 = vmul.f32 1.442695, %v1128_v15  ;;  %v4024_v15 = vld [vmem:[%s4354_s5] ss:$0 sm:$0xff] }
 0x673   :  { %3584 = vpow2.f32 %v1131_v16 }
 0x678   :  { %v3583_v17 = vpop.eup %3582 }
 0x679   :  { %v1141_v18 = vmul.f32 %v3583_v17, %v3577_v54  ;;  %v3979_v54 = vld [vmem:[%s4352_s7 + $0x8] sm:$0xff] }
 0x67b   :  { %3107 = vst.msk [vmem:[%s4349_s14 + $0x30] sm:$0xff] %vm256_vm3, %v1141_v18 }
 0x680   :  { %v3585_v19 = vpop.eup %3584 }
 0x681   :  { %v1136_v20 = vsel %vm260_vm2, %v3585_v19, 0.0 }
 0x682   :  { %1137 = vadd.xlane.f32.xlu0 %v1136_v20 }
 0x698   :  { %1146 = vrot.lane.b32.xlu0 %v3773_v10, %s3646_s22  ;;  %v3943_v10 = vld [vmem:[%s4350_s3 + $0x18] sm:$0xff] }
 0x70b   :  { %v3373_v21 = vpop.f32.mrf.mxu1  ;;  %v1138_v22 = vpop.xlane.xlu0 %1137 }
 0x70c   :  { %3586 = vrcp.f32 %v1138_v22 }
 0x70d   :  { %v936_v23 = vpop.f32.mrf.mxu1 }
 0x70e   :  { %3376 = vmatprep.mubr.msk.f32.mxu1 %vm170_vm1, %v936_v23  ;;  %v4042_v23 = vld [vmem:[%s4347_s0 + $0x10] sm:$0xff] }
 0x70f   :  { %3377 = vmatmul.mubr.msk.f32.vlgmr.msra.gmra.mxu1 %vm170_vm1, %v3373_v21  ;;  %v1147_v24 = vpop.permute.xlu0 %1146 }
 0x710   :  { %3387 = vmatpush3.msk.msra.mxu1 %vm293_vm4, %v1149_v13  ;;  %3390 = vmatprep.mubr.msk.f32.mxu1 %vm256_vm3, %v1141_v18 }
 0x711   :  { %3388 = vmatprep.subr.mxu1 %v1147_v24 }
 0x712   :  { %3389 = vmatpush3.msra.mxu1 %v1147_v24  ;;  %v4058_v24 = vld [vmem:[%s4347_s0 + $0x18] sm:$0x1] }
 0x713   :  { %3393 = vmatprep.subr.mxu1 %v3943_v10 }
 0x719   :  { %v3587_v25 = vpop.eup %3586 }
 0x71a   :  { %v1142_v26 = vmul.f32 %v3587_v25, %v3585_v19  ;;  %v4030_v19 = vld [vmem:[%s4355_s6] ss:$0 sm:$0xff] }
 0x71b   :  { %v4095_v25 = vld [vmem:[%s4356_s8] ss:$0 sm:$0xff] }
 0x71c   :  { %3108 = vst.msk [vmem:[%s4349_s14 + $0x38] sm:$0x1] %vm260_vm2, %v1142_v26  ;;  %3391 = vmatmul.mubr.msk.f32.vlgmr.msra.gmra.mxu1 %vm256_vm3, %v1142_v26 }
 0x71d   :  { %3394 = vmatpush3.msra.mxu1 %v3943_v10 }
 0x71e   :  { %3409 = vmatprep.subr.mxu1 %v3996_v56 }
 0x7cf   :  { %v3378_v28 = vpop.f32.mrf.mxu1 }
 0x7d0   :  { %v1027_v30 = vadd.f32 %v3378_v28, %v3887_v27 }
 0x7d1   :  { %v1017_v31 = vpop.f32.mrf.mxu1 }
 0x7d2   :  { %v1026_v32 = vadd.f32 %v1017_v31, %v3889_v29 }
 0x7dc   :  { %v3392_v33 = vpop.f32.mrf.mxu1 }
 0x7de   :  { %v1225_v34 = vpop.f32.mrf.mxu1 }
 0x7df   :  { %3395 = vmatprep.mubr.msk.f32.mxu1 %vm170_vm1, %v1225_v34 }
 0x7e0   :  { %3396 = vmatmul.mubr.msk.f32.vlgmr.msra.gmra.mxu1 %vm170_vm1, %v3392_v33 }
 0x7e1   :  { %3410 = vmatpush3.msra.mxu1 %v3996_v56 }
 0x7e2   :  { %3411 = vmatprep.subr.mxu1 %v4001_v57 }
 0x7e3   :  { %3412 = vmatpush3.msra.mxu1 %v4001_v57 }
 0x7e4   :  { %3413 = vmatprep.subr.mxu1 %v4008_v58 }
 0x7e5   :  { %3414 = vmatpush3.msra.mxu1 %v4008_v58 }
 0x7e6   :  { %3415 = vmatprep.subr.mxu1 %v4015_v59 }
 0x7e7   :  { %3416 = vmatpush3.msra.mxu1 %v4015_v59 }
 0x8a0   :  { %v3397_v36 = vpop.f32.mrf.mxu1 }
 0x8a1   :  { %v1316_v37 = vadd.f32 %v3397_v36, %v1027_v30 }
 0x8a2   :  { %v1306_v38 = vpop.f32.mrf.mxu1 }
 0x8a3   :  { %v1324_v39 = vadd.f32 %v3954_v35, %v1316_v37  ;;  %v1315_v27 = vadd.f32 %v1306_v38, %v1026_v32 }
 0x8a5   :  { %v1323_v29 = vadd.f32 %v3954_v35, %v1315_v27  ;;  %v1326_v40 = vadd.f32 %v1324_v39, %v3758_v5 }
 0x8a7   :  { %v1331_v41 = vsel %vm1330_vm5, %v1326_v40, 0.0  ;;  %v1325_v42 = vadd.f32 %v1323_v29, %v3736_v2  ;;  %v3967_v2 = vld [vmem:[%s4352_s7 + $0x18] sm:$0xff] }
 0x8a8   :  { %1332 = vadd.xlane.f32.xlu0 %v1331_v41  ;;  %3398 = vmatprep.subr.mxu0 %v3967_v2 }
 0x8a9   :  { %v1327_v43 = vsel %vm82_vm0, %v1325_v42, 0.0  ;;  %3399 = vmatpush3.msra.mxu0 %v3967_v2 }
 0x8aa   :  { %1328 = vadd.xlane.f32.xlu1 %v1327_v43  ;;  %3400 = vmatprep.subr.mxu0 %v3972_v53 }
 0x8ab   :  { %3401 = vmatpush3.msra.mxu0 %v3972_v53 }
 0x8ac   :  { %3402 = vmatprep.subr.mxu0 %v3979_v54 }
 0x8ad   :  { %3403 = vmatpush3.msra.mxu0 %v3979_v54 }
 0x8ae   :  { %3404 = vmatprep.subr.mxu0 %v3986_v55 }
 0x8af   :  { %3405 = vmatpush3.msra.mxu0 %v3986_v55 }
 0x8b0   :  { %3428 = vmatprep.subr.mxu0 %v3725_v0 }
 0x931   :  { %v1333_v44 = vpop.xlane.xlu0 %1332 }
 0x932   :  { %v1336_v45 = vmul.f32 0.03125, %v1333_v44 }
 0x933   :  { %v1329_v46 = vpop.xlane.xlu1 %1328 }
 0x934   :  { %v1338_v47 = vsub.f32 %v1326_v40, %v1336_v45  ;;  %v1335_v48 = vmul.f32 0.03125, %v1329_v46 }
 0x936   :  { %v1337_v49 = vsub.f32 %v1325_v42, %v1335_v48  ;;  %v1340_v50 = vmul.f32 %v1338_v47, %v1338_v47 }
 0x938   :  { %v1344_v51 = vsel %vm1330_vm5, %v1340_v50, 0.0  ;;  %v1339_v52 = vmul.f32 %v1337_v49, %v1337_v49 }
 0x939   :  { %1345 = vadd.xlane.f32.xlu0 %v1344_v51 }
 0x93a   :  { %v1341_v5 = vsel %vm82_vm0, %v1339_v52, 0.0 }
 0x93b   :  { %1342 = vadd.xlane.f32.xlu1 %v1341_v5 }
 0x9c2   :  { %v1346_v60 = vpop.xlane.xlu0 %1345 }
 0x9c3   :  { %v1348_v62 = vmul.f32 0.03125, %v1346_v60 }
 0x9c4   :  { %v1343_v63 = vpop.xlane.xlu1 %1342 }
 0x9c5   :  { %v1350_v8 = vadd.f32 1e-05, %v1348_v62  ;;  %v1347_v7 = vmul.f32 0.03125, %v1343_v63 }
 0x9c7   :  { %3588 = vrsqrt.f32 %v1350_v8  ;;  %v1349_v12 = vadd.f32 1e-05, %v1347_v7 }
 0x9c9   :  { %3590 = vrsqrt.f32 %v1349_v12 }
 0x9d4   :  { %v3589_v13 = vpop.eup %3588 }
 0x9d5   :  { %v1354_v14 = vmul.f32 %v3589_v13, %v1338_v47 }
 0x9d6   :  { %v3591_v16 = vpop.eup %3590 }
 0x9d7   :  { %v1353_v17 = vmul.f32 %v3591_v16, %v1337_v49  ;;  %v1362_v18 = vmul.f32 %v4024_v15, %v1354_v14 }
 0x9d9   :  { %v1361_v20 = vmul.f32 %v4024_v15, %v1353_v17  ;;  %v4037_v22 = vadd.f32 %v4030_v19, %v1362_v18 }
 0x9db   :  { %v4034_v21 = vadd.f32 %v4030_v19, %v1361_v20 }
 0x9dd   :  { %3406 = vmatprep.mubr.msk.f32.mxu0 %vm82_vm0, %v4034_v21 }
 0x9de   :  { %3407 = vmatmul.mubr.msk.f32.vlgmr.msra.gmra.mxu0 %vm82_vm0, %v4037_v22 }
 0x9df   :  { %3429 = vmatpush3.msra.mxu0 %v3725_v0  ;;  %3436 = vmatprep.mubr.msk.f32.mxu0 %vm82_vm0, %v4042_v23  ;;  %v4067_v0 = vld [vmem:[%s4353_s9 + $0x18] sm:$0xff] }
 0x9e0   :  { %3430 = vmatprep.subr.mxu0 %v3730_v1  ;;  %3417 = vmatprep.subr.mxu1 %v4067_v0 }
 0x9e1   :  { %3431 = vmatpush3.msra.mxu0 %v3730_v1  ;;  %3418 = vmatpush3.msra.mxu1 %v4067_v0  ;;  %v4074_v1 = vld [vmem:[%s4353_s9 + $0x10] sm:$0xff] }
 0x9e2   :  { %3432 = vmatprep.subr.mxu0 %v3742_v3  ;;  %3419 = vmatprep.subr.mxu1 %v4074_v1 }
 0x9e3   :  { %3433 = vmatpush3.msra.mxu0 %v3742_v3  ;;  %3420 = vmatpush3.msra.mxu1 %v4074_v1  ;;  %v4081_v3 = vld [vmem:[%s4353_s9 + $0x8] sm:$0xff] }
 0x9e4   :  { %3434 = vmatprep.subr.mxu0 %v3751_v4  ;;  %3421 = vmatprep.subr.mxu1 %v4081_v3 }
 0x9e5   :  { %3435 = vmatpush3.msra.mxu0 %v3751_v4  ;;  %v4087_v4 = vld [vmem:[%s4353_s9] sm:$0xff]  ;;  %3422 = vmatpush3.msra.mxu1 %v4081_v3 }
 0x9e6   :  { %3437 = vmatmul.mubr.msk.f32.vlgmr.msra.gmra.mxu0 %vm82_vm0, %v4058_v24  ;;  %3423 = vmatprep.subr.mxu1 %v4087_v4 }
 0x9e7   :  { %3424 = vmatpush3.msra.mxu1 %v4087_v4 }
 0xa9e   :  { %v3408_v26 = vpop.f32.mrf.mxu0 }
 0xa9f   :  { %v1455_v28 = vadd.f32 %v3408_v26, %v4095_v25 }
 0xaa0   :  { %v1449_v30 = vpop.f32.mrf.mxu0 }
 0xaa1   :  { %v1450_v31 = vadd.f32 %v4095_v25, %v1449_v30  ;;  %v1459_v33 = vmax.f32 %v1455_v28, 0.0 }
 0xaa3   :  { %v1458_v32 = vmax.f32 %v1450_v31, 0.0 }
 0xaa5   :  { %3425 = vmatprep.mubr.msk.f32.mxu1 %vm1466_vm6, %v1458_v32 }
 0xaa6   :  { %v3438_v34 = vpop.f32.mrf.mxu0  ;;  %3426 = vmatmul.mubr.msk.f32.vlgmr.msra.gmra.mxu1 %vm1466_vm6, %v1459_v33 }
 0xaa7   :  { %v4102_v36 = vadd.f32 %v3438_v34, %v3767_v6 }
 0xaa8   :  { %v1669_v37 = vpop.f32.mrf.mxu0 }
 0xaa9   :  { %v4105_v38 = vadd.f32 %v3767_v6, %v1669_v37  ;;  %1682 = vrot.lane.b32.xlu1 %v4102_v36, %s3637_s27 }
 0xaab   :  { %1680 = vrot.lane.b32.xlu0 %v4105_v38, %s3637_s27  ;;  %3443 = vmatprep.mubr.msk.f32.mxu0 %vm170_vm1, %v4105_v38 }
 0xb1b   :  { %v1683_v39 = vpop.permute.xlu1 %1682 }
 0xb1c   :  { %3439 = vmatprep.subr.msk.mxu0 %vm170_vm1, %v1683_v39 }
 0xb1d   :  { %3440 = vmatpush3.xpose.msk.msra.mxu0 %vm170_vm1, %v1683_v39  ;;  %v1681_v27 = vpop.permute.xlu0 %1680 }
 0xb1e   :  { %3441 = vmatprep.subr.msk.mxu0 %vm170_vm1, %v1681_v27 }
 0xb21   :  { %3442 = vmatpush3.xpose.msk.msra.mxu0 %vm170_vm1, %v1681_v27 }
 0xb24   :  { %3444 = vmatmul.mubr.msk.f32.vlgmr.msra.gmra.mxu0 %vm170_vm1, %v4102_v36 }
 0xb66   :  { %v4155_v26 = vpop.f32.mrf.mxu1 }
 0xb68   :  { %v4157_v28 = vpop.f32.mrf.mxu1 }
 0xbe4   :  { %v3445_v6 = vpop.f32.mrf.mxu0 }
 0xbe5   :  { %v1768_v29 = vmul.f32 0.35355338, %v3445_v6 }
 0xbe6   :  { %v1758_v40 = vpop.f32.mrf.mxu0 }
 0xbe7   :  { %v1767_v41 = vmul.f32 0.35355338, %v1758_v40  ;;  %v1772_v42 = vsel %vm260_vm2, %v1768_v29, -inf }
 0xbe8   :  { %1773 = vmax.xlane.f32.xlu0 %v1772_v42 }
 0xbe9   :  { %v1769_v43 = vsel %vm256_vm3, %v1767_v41, -inf }
 0xbea   :  { %1770 = vmax.xlane.f32.xlu1 %v1769_v43 }
 0xbfb   :  { %1796 = vrot.lane.b32.xlu1 %v4102_v36, %s3639_s28 }
 0xbff   :  { %1888 = vrot.lane.b32.xlu1 %v4102_v36, %s3636_s1 }
 0xc03   :  { %1886 = vrot.lane.b32.xlu1 %v4105_v38, %s3636_s1 }
 0xc71   :  { %v1774_v44 = vpop.xlane.xlu0 %1773 }
 0xc72   :  { %v1776_v45 = vsub.f32 %v1768_v29, %v1774_v44 }
 0xc73   :  { %v1771_v46 = vpop.xlane.xlu1 %1770 }
 0xc74   :  { %v1779_v47 = vmul.f32 1.442695, %v1776_v45  ;;  %v1775_v48 = vsub.f32 %v1767_v41, %v1771_v46 }
 0xc76   :  { %3592 = vpow2.f32 %v1779_v47  ;;  %v1777_v49 = vmul.f32 1.442695, %v1775_v48 }
 0xc77   :  { %v1797_v50 = vpop.permute.xlu1 %1796 }
 0xc78   :  { %3594 = vpow2.f32 %v1777_v49  ;;  %3446 = vmatprep.subr.msk.mxu1 %vm293_vm4, %v1797_v50 }
 0xc79   :  { %3447 = vmatpush3.msk.msra.mxu1 %vm293_vm4, %v1797_v50 }
 0xc7b   :  { %v1889_v62 = vpop.permute.xlu1 %1888 }
 0xc7f   :  { %v1887_v63 = vpop.permute.xlu1 %1886 }
 0xc83   :  { %v3593_v51 = vpop.eup %3592 }
 0xc84   :  { %v1784_v52 = vsel %vm260_vm2, %v3593_v51, 0.0 }
 0xc85   :  { %v3595_v5 = vpop.eup %3594  ;;  %1785 = vadd.xlane.f32.xlu0 %v1784_v52 }
 0xc86   :  { %v1781_v60 = vsel %vm256_vm3, %v3595_v5, 0.0 }
 0xc87   :  { %1782 = vadd.xlane.f32.xlu1 %v1781_v60 }
 0xc98   :  { %1884 = vrot.lane.b32.xlu1 %v4102_v36, %s3638_s2 }
 0xc9b   :  { %1794 = vrot.lane.b32.xlu0 %v4105_v38, %s3639_s28 }
 0xc9f   :  { %1882 = vrot.lane.b32.xlu0 %v4105_v38, %s3638_s2 }
 0xd0e   :  { %v1786_v8 = vpop.xlane.xlu0 %1785 }
 0xd0f   :  { %3596 = vrcp.f32 %v1786_v8 }
 0xd10   :  { %v1783_v7 = vpop.xlane.xlu1 %1782 }
 0xd11   :  { %3598 = vrcp.f32 %v1783_v7 }
 0xd12   :  { %v1795_v12 = vpop.permute.xlu0 %1794 }
 0xd13   :  { %3448 = vmatprep.subr.mxu1 %v1795_v12 }
 0xd14   :  { %3449 = vmatpush3.msra.mxu1 %v1795_v12  ;;  %v1885_v20 = vpop.permute.xlu1 %1884 }
 0xd15   :  { %3453 = vmatprep.subr.msk.mxu1 %vm170_vm1, %v1889_v62 }
 0xd16   :  { %v1883_v18 = vpop.permute.xlu0 %1882 }
 0xd1c   :  { %v3597_v13 = vpop.eup %3596 }
 0xd1d   :  { %v1790_v14 = vmul.f32 %v3597_v13, %v3593_v51 }
 0xd1e   :  { %v3599_v16 = vpop.eup %3598 }
 0xd1f   :  { %v1789_v17 = vmul.f32 %v3599_v16, %v3595_v5  ;;  %3134 = vst.msk [vmem:[%s4349_s14 + $0x48] sm:$0x1] %vm260_vm2, %v1790_v14 }
 0xd21   :  { %3133 = vst.msk [vmem:[%s4349_s14 + $0x40] sm:$0xff] %vm256_vm3, %v1789_v17  ;;  %3450 = vmatprep.mubr.msk.f32.mxu1 %vm256_vm3, %v1789_v17 }
 0xd22   :  { %3451 = vmatmul.mubr.msk.f32.vlgmr.msra.gmra.mxu1 %vm256_vm3, %v1790_v14 }
 0xd23   :  { %3454 = vmatpush3.xpose.msk.msra.mxu1 %vm170_vm1, %v1889_v62  ;;  %3457 = vmatprep.mubr.msk.f32.mxu1 %vm170_vm1, %v1883_v18 }
 0xd24   :  { %3455 = vmatprep.subr.msk.mxu1 %vm170_vm1, %v1887_v63 }
 0xd27   :  { %3456 = vmatpush3.xpose.msk.msra.mxu1 %vm170_vm1, %v1887_v63 }
 0xd28   :  { %3472 = vmatprep.subr.mxu1 %v3867_v11 }
 0xd2a   :  { %3458 = vmatmul.mubr.msk.f32.vlgmr.msra.gmra.mxu1 %vm170_vm1, %v1885_v20 }
 0xd2b   :  { %3473 = vmatpush3.msra.mxu1 %v3867_v11 }
 0xde2   :  { %v3452_v30 = vpop.f32.mrf.mxu1 }
 0xde4   :  { %v1873_v31 = vpop.f32.mrf.mxu1 }
 0xde5   :  { %3474 = vmatprep.mubr.msk.f32.mxu1 %vm170_vm1, %v1873_v31 }
 0xde6   :  { %3475 = vmatmul.mubr.msk.f32.vlgmr.msra.gmra.mxu1 %vm170_vm1, %v3452_v30 }
 0xdea   :  { %v3459_v32 = vpop.f32.mrf.mxu1 }
 0xdeb   :  { %v1974_v33 = vmul.f32 0.35355338, %v3459_v32 }
 0xdec   :  { %v1964_v34 = vpop.f32.mrf.mxu1 }
 0xded   :  { %v1973_v37 = vmul.f32 0.35355338, %v1964_v34  ;;  %v1978_v39 = vsel %vm260_vm2, %v1974_v33, -inf }
 0xdee   :  { %1979 = vmax.xlane.f32.xlu1 %v1978_v39 }
 0xdef   :  { %v1975_v27 = vsel %vm256_vm3, %v1973_v37, -inf }
 0xdf0   :  { %1976 = vmax.xlane.f32.xlu0 %v1975_v27 }
 0xdff   :  { %2002 = vrot.lane.b32.xlu1 %v4102_v36, %s3640_s29 }
 0xe03   :  { %2256 = vrot.lane.b32.xlu1 %v4102_v36, %s3641_s30 }
 0xe07   :  { %2254 = vrot.lane.b32.xlu1 %v4105_v38, %s3641_s30 }
 0xe0b   :  { %2252 = vrot.lane.b32.xlu1 %v4102_v36, %s3642_s15 }
 0xe0f   :  { %2543 = vrot.lane.b32.xlu1 %v4105_v38, %s3643_s16 }
 0xe13   :  { %2541 = vrot.lane.b32.xlu1 %v4102_v36, %s3644_s17 }
 0xe77   :  { %v1980_v11 = vpop.xlane.xlu1 %1979 }
 0xe78   :  { %v1982_v6 = vsub.f32 %v1974_v33, %v1980_v11 }
 0xe79   :  { %v1977_v29 = vpop.xlane.xlu0 %1976 }
 0xe7a   :  { %v1985_v40 = vmul.f32 1.442695, %v1982_v6  ;;  %v1981_v41 = vsub.f32 %v1973_v37, %v1977_v29 }
 0xe7b   :  { %v2003_v42 = vpop.permute.xlu1 %2002 }
 0xe7c   :  { %3600 = vpow2.f32 %v1985_v40  ;;  %v1983_v43 = vmul.f32 1.442695, %v1981_v41  ;;  %3460 = vmatprep.subr.msk.mxu0 %vm293_vm4, %v2003_v42 }
 0xe7d   :  { %3461 = vmatpush3.msk.msra.mxu0 %vm293_vm4, %v2003_v42 }
 0xe7e   :  { %3602 = vpow2.f32 %v1983_v43 }
 0xe7f   :  { %v2257_v62 = vpop.permute.xlu1 %2256 }
 0xe83   :  { %v2255_v7 = vpop.permute.xlu1 %2254 }
 0xe87   :  { %v2253_v14 = vpop.permute.xlu1 %2252 }
 0xe89   :  { %v3601_v44 = vpop.eup %3600 }
 0xe8a   :  { %v1990_v45 = vsel %vm260_vm2, %v3601_v44, 0.0 }
 0xe8b   :  { %v3603_v46 = vpop.eup %3602  ;;  %1991 = vadd.xlane.f32.xlu0 %v1990_v45  ;;  %v2544_v16 = vpop.permute.xlu1 %2543 }
 0xe8c   :  { %v1987_v47 = vsel %vm256_vm3, %v3603_v46, 0.0 }
 0xe8f   :  { %1988 = vadd.xlane.f32.xlu0 %v1987_v47  ;;  %v2542_v17 = vpop.permute.xlu1 %2541 }
 0xea5   :  { %2000 = vrot.lane.b32.xlu0 %v4105_v38, %s3640_s29 }
 0xea9   :  { %2250 = vrot.lane.b32.xlu0 %v4105_v38, %s3642_s15 }
 0xead   :  { %2545 = vrot.lane.b32.xlu0 %v4102_v36, %s3643_s16 }
 0xeb1   :  { %2539 = vrot.lane.b32.xlu0 %v4105_v38, %s3644_s17 }
 0xf14   :  { %v1992_v48 = vpop.xlane.xlu0 %1991 }
 0xf15   :  { %3604 = vrcp.f32 %v1992_v48 }
 0xf18   :  { %v1989_v49 = vpop.xlane.xlu0 %1988 }
 0xf19   :  { %3606 = vrcp.f32 %v1989_v49 }
 0xf1c   :  { %v2001_v50 = vpop.permute.xlu0 %2000 }
 0xf1d   :  { %3462 = vmatprep.subr.mxu0 %v2001_v50 }
 0xf1e   :  { %3463 = vmatpush3.msra.mxu0 %v2001_v50 }
 0xf1f   :  { %3467 = vmatprep.subr.mxu0 %v3860_v9 }
 0xf20   :  { %v2251_v63 = vpop.permute.xlu0 %2250 }
 0xf22   :  { %v3605_v51 = vpop.eup %3604 }
 0xf23   :  { %v1996_v52 = vmul.f32 %v3605_v51, %v3601_v44 }
 0xf24   :  { %v2546_v13 = vpop.permute.xlu0 %2545 }
 0xf25   :  { %3143 = vst.msk [vmem:[%s4349_s14 + $0x58] sm:$0x1] %vm260_vm2, %v1996_v52 }
 0xf26   :  { %v3607_v5 = vpop.eup %3606 }
 0xf27   :  { %v1995_v60 = vmul.f32 %v3607_v5, %v3603_v46 }
 0xf29   :  { %3142 = vst.msk [vmem:[%s4349_s14 + $0x50] sm:$0xff] %vm256_vm3, %v1995_v60  ;;  %3464 = vmatprep.mubr.msk.f32.mxu0 %vm256_vm3, %v1995_v60 }
 0xf2a   :  { %3465 = vmatmul.mubr.msk.f32.vlgmr.msra.gmra.mxu0 %vm256_vm3, %v1996_v52 }
 0xf2b   :  { %3468 = vmatpush3.msra.mxu0 %v3860_v9  ;;  %v2540_v9 = vpop.permute.xlu0 %2539 }
 0xf2c   :  { %3477 = vmatprep.subr.msk.mxu0 %vm170_vm1, %v2257_v62 }
 0xfea   :  { %v3466_v8 = vpop.f32.mrf.mxu0 }
 0xfec   :  { %v2079_v12 = vpop.f32.mrf.mxu0 }
 0xfed   :  { %3469 = vmatprep.mubr.msk.f32.mxu0 %vm170_vm1, %v2079_v12 }
 0xfee   :  { %3470 = vmatmul.mubr.msk.f32.vlgmr.msra.gmra.mxu0 %vm170_vm1, %v3466_v8 }
 0xfef   :  { %3478 = vmatpush3.xpose.msk.msra.mxu0 %vm170_vm1, %v2257_v62  ;;  %3481 = vmatprep.mubr.msk.f32.mxu0 %vm170_vm1, %v2251_v63 }
 0xff0   :  { %3479 = vmatprep.subr.msk.mxu0 %vm170_vm1, %v2255_v7 }
 0xff3   :  { %3480 = vmatpush3.xpose.msk.msra.mxu0 %vm170_vm1, %v2255_v7 }
 0xff4   :  { %3496 = vmatprep.subr.msk.mxu0 %vm170_vm1, %v2546_v13 }
 0xff6   :  { %3482 = vmatmul.mubr.msk.f32.vlgmr.msra.gmra.mxu0 %vm170_vm1, %v2253_v14 }
 0xff7   :  { %3497 = vmatpush3.xpose.msk.msra.mxu0 %vm170_vm1, %v2546_v13  ;;  %3500 = vmatprep.mubr.msk.f32.mxu0 %vm170_vm1, %v2540_v9 }
 0xff8   :  { %3498 = vmatprep.subr.msk.mxu0 %vm170_vm1, %v2544_v16 }
 0xffb   :  { %3499 = vmatpush3.xpose.msk.msra.mxu0 %vm170_vm1, %v2544_v16 }
 0xffc   :  { %3515 = vmatprep.subr.mxu0 %v3967_v2 }
 0xffe   :  { %3501 = vmatmul.mubr.msk.f32.vlgmr.msra.gmra.mxu0 %vm170_vm1, %v2542_v17 }
 0xfff   :  { %3516 = vmatpush3.msra.mxu0 %v3967_v2 }
0x1000   :  { %3517 = vmatprep.subr.mxu0 %v3972_v53 }
0x1001   :  { %3518 = vmatpush3.msra.mxu0 %v3972_v53 }
0x1002   :  { %3519 = vmatprep.subr.mxu0 %v3979_v54 }
0x1003   :  { %3520 = vmatpush3.msra.mxu0 %v3979_v54 }
0x1004   :  { %3521 = vmatprep.subr.mxu0 %v3986_v55 }
0x1005   :  { %3522 = vmatpush3.msra.mxu0 %v3986_v55 }
0x10ae   :  { %v4221_v18 = vpop.f32.mrf.mxu0 }
0x10b0   :  { %v4223_v20 = vpop.f32.mrf.mxu0 }
0x10b6   :  { %v3483_v30 = vpop.f32.mrf.mxu0 }
0x10b7   :  { %v2342_v31 = vmul.f32 0.35355338, %v3483_v30 }
0x10b8   :  { %v2332_v32 = vpop.f32.mrf.mxu0 }
0x10b9   :  { %v2341_v2 = vmul.f32 0.35355338, %v2332_v32  ;;  %v2346_v33 = vsel %vm260_vm2, %v2342_v31, -inf }
0x10ba   :  { %2347 = vmax.xlane.f32.xlu1 %v2346_v33 }
0x10bb   :  { %v2343_v53 = vsel %vm256_vm3, %v2341_v2, -inf }
0x10bc   :  { %2344 = vmax.xlane.f32.xlu0 %v2343_v53 }
0x10be   :  { %v3502_v54 = vpop.f32.mrf.mxu0 }
0x10bf   :  { %v2631_v50 = vmul.f32 0.35355338, %v3502_v54 }
0x10c0   :  { %v2621_v34 = vpop.f32.mrf.mxu0 }
0x10c1   :  { %v2630_v55 = vmul.f32 0.35355338, %v2621_v34  ;;  %v2635_v52 = vsel %vm260_vm2, %v2631_v50, -inf }
0x10c3   :  { %v2632_v37 = vsel %vm256_vm3, %v2630_v55, -inf }
0x10cb   :  { %2370 = vrot.lane.b32.xlu1 %v4102_v36, %s3645_s21 }
0x10ef   :  { %2633 = vmax.xlane.f32.xlu1 %v2632_v37 }
0x1143   :  { %v2348_v39 = vpop.xlane.xlu1 %2347 }
0x1144   :  { %v2350_v27 = vsub.f32 %v2342_v31, %v2348_v39 }
0x1145   :  { %v2345_v11 = vpop.xlane.xlu0 %2344 }
0x1146   :  { %v2353_v6 = vmul.f32 1.442695, %v2350_v27  ;;  %v2349_v29 = vsub.f32 %v2341_v2, %v2345_v11 }
0x1147   :  { %v2371_v40 = vpop.permute.xlu1 %2370 }
0x1148   :  { %3608 = vpow2.f32 %v2353_v6  ;;  %v2351_v41 = vmul.f32 1.442695, %v2349_v29  ;;  %3484 = vmatprep.subr.msk.mxu1 %vm293_vm4, %v2371_v40 }
0x1149   :  { %3485 = vmatpush3.msk.msra.mxu1 %vm293_vm4, %v2371_v40 }
0x114a   :  { %3610 = vpow2.f32 %v2351_v41 }
0x1155   :  { %v3609_v42 = vpop.eup %3608 }
0x1156   :  { %v2358_v43 = vsel %vm260_vm2, %v3609_v42, 0.0 }
0x1157   :  { %v3611_v44 = vpop.eup %3610  ;;  %2359 = vadd.xlane.f32.xlu0 %v2358_v43 }
0x1158   :  { %v2355_v45 = vsel %vm256_vm3, %v3611_v44, 0.0 }
0x115b   :  { %2356 = vadd.xlane.f32.xlu0 %v2355_v45 }
0x1171   :  { %2368 = vrot.lane.b32.xlu0 %v4105_v38, %s3645_s21 }
0x1178   :  { %v2634_v46 = vpop.xlane.xlu1 %2633 }
0x1179   :  { %v2638_v47 = vsub.f32 %v2630_v55, %v2634_v46 }
0x117b   :  { %v2640_v48 = vmul.f32 1.442695, %v2638_v47 }
0x117d   :  { %3612 = vpow2.f32 %v2640_v48 }
0x118a   :  { %v3613_v49 = vpop.eup %3612 }
0x118b   :  { %v2644_v51 = vsel %vm256_vm3, %v3613_v49, 0.0 }
0x118c   :  { %2645 = vadd.xlane.f32.xlu1 %v2644_v51 }
0x1190   :  { %2636 = vmax.xlane.f32.xlu0 %v2635_v52 }
0x119d   :  { %2659 = vrot.lane.b32.xlu1 %v4102_v36, %s3646_s22 }
0x11e0   :  { %v2360_v5 = vpop.xlane.xlu0 %2359 }
0x11e1   :  { %3614 = vrcp.f32 %v2360_v5 }
0x11e4   :  { %v2357_v60 = vpop.xlane.xlu0 %2356 }
0x11e5   :  { %3616 = vrcp.f32 %v2357_v60 }
0x11e8   :  { %v2369_v62 = vpop.permute.xlu0 %2368 }
0x11e9   :  { %3486 = vmatprep.subr.mxu1 %v2369_v62 }
0x11ea   :  { %3487 = vmatpush3.msra.mxu1 %v2369_v62 }
0x11eb   :  { %3491 = vmatprep.subr.mxu1 %v3909_v61 }
0x11ee   :  { %v3615_v63 = vpop.eup %3614 }
0x11ef   :  { %v2364_v8 = vmul.f32 %v3615_v63, %v3609_v42 }
0x11f1   :  { %3156 = vst.msk [vmem:[%s4349_s14 + $0x68] sm:$0x1] %vm260_vm2, %v2364_v8 }
0x11f2   :  { %v3617_v7 = vpop.eup %3616 }
0x11f3   :  { %v2363_v12 = vmul.f32 %v3617_v7, %v3611_v44 }
0x11f5   :  { %3155 = vst.msk [vmem:[%s4349_s14 + $0x60] sm:$0xff] %vm256_vm3, %v2363_v12  ;;  %3488 = vmatprep.mubr.msk.f32.mxu1 %vm256_vm3, %v2363_v12 }
0x11f6   :  { %3489 = vmatmul.mubr.msk.f32.vlgmr.msra.gmra.mxu1 %vm256_vm3, %v2364_v8 }
0x11f7   :  { %3492 = vmatpush3.msra.mxu1 %v3909_v61  ;;  %v3476_v61 = vpop.f32.mrf.mxu1 }
0x11f8   :  { %v2247_v37 = vadd.f32 %v3476_v61, %v4221_v18 }
0x11f9   :  { %v2241_v2 = vpop.f32.mrf.mxu1 }
0x11fa   :  { %v2242_v27 = vadd.f32 %v2241_v2, %v4223_v20 }
0x1215   :  { %v2646_v36 = vpop.xlane.xlu1 %2645 }
0x1216   :  { %3618 = vrcp.f32 %v2646_v36 }
0x1219   :  { %v2660_v13 = vpop.permute.xlu1 %2659  ;;  %v2637_v14 = vpop.xlane.xlu0 %2636 }
0x121a   :  { %v2639_v9 = vsub.f32 %v2631_v50, %v2637_v14  ;;  %3503 = vmatprep.subr.msk.mxu1 %vm293_vm4, %v2660_v13 }
0x121c   :  { %v2642_v16 = vmul.f32 1.442695, %v2639_v9 }
0x121e   :  { %3620 = vpow2.f32 %v2642_v16 }
0x1223   :  { %v3619_v17 = vpop.eup %3618 }
0x1224   :  { %v2652_v30 = vmul.f32 %v3619_v17, %v3613_v49 }
0x1226   :  { %3166 = vst.msk [vmem:[%s4349_s14 + $0x70] sm:$0xff] %vm256_vm3, %v2652_v30 }
0x122b   :  { %v3621_v31 = vpop.eup %3620 }
0x122c   :  { %v2647_v32 = vsel %vm260_vm2, %v3621_v31, 0.0 }
0x122d   :  { %2648 = vadd.xlane.f32.xlu0 %v2647_v32 }
0x1243   :  { %2657 = vrot.lane.b32.xlu0 %v4105_v38, %s3646_s22 }
0x12b6   :  { %v3490_v33 = vpop.f32.mrf.mxu1  ;;  %v2649_v53 = vpop.xlane.xlu0 %2648 }
0x12b7   :  { %3622 = vrcp.f32 %v2649_v53 }
0x12b8   :  { %v2447_v54 = vpop.f32.mrf.mxu1 }
0x12b9   :  { %3493 = vmatprep.mubr.msk.f32.mxu1 %vm170_vm1, %v2447_v54 }
0x12ba   :  { %3494 = vmatmul.mubr.msk.f32.vlgmr.msra.gmra.mxu1 %vm170_vm1, %v3490_v33  ;;  %v2658_v34 = vpop.permute.xlu0 %2657 }
0x12bb   :  { %3504 = vmatpush3.msk.msra.mxu1 %vm293_vm4, %v2660_v13  ;;  %3507 = vmatprep.mubr.msk.f32.mxu1 %vm256_vm3, %v2652_v30 }
0x12bc   :  { %3505 = vmatprep.subr.mxu1 %v2658_v34 }
0x12bd   :  { %3506 = vmatpush3.msra.mxu1 %v2658_v34 }
0x12be   :  { %3510 = vmatprep.subr.mxu1 %v3943_v10 }
0x12c4   :  { %v3623_v38 = vpop.eup %3622 }
0x12c5   :  { %v2653_v55 = vmul.f32 %v3623_v38, %v3621_v31 }
0x12c7   :  { %3167 = vst.msk [vmem:[%s4349_s14 + $0x78] sm:$0x1] %vm260_vm2, %v2653_v55  ;;  %3508 = vmatmul.mubr.msk.f32.vlgmr.msra.gmra.mxu1 %vm256_vm3, %v2653_v55 }
0x12c8   :  { %3511 = vmatpush3.msra.mxu1 %v3943_v10 }
0x12c9   :  { %3526 = vmatprep.subr.mxu1 %v3996_v56 }
0x137a   :  { %v3495_v39 = vpop.f32.mrf.mxu1 }
0x137b   :  { %v2538_v11 = vadd.f32 %v3495_v39, %v2247_v37 }
0x137c   :  { %v2528_v6 = vpop.f32.mrf.mxu1 }
0x137d   :  { %v2537_v29 = vadd.f32 %v2528_v6, %v2242_v27 }
0x1387   :  { %v3509_v40 = vpop.f32.mrf.mxu1 }
0x1389   :  { %v2736_v41 = vpop.f32.mrf.mxu1 }
0x138a   :  { %3512 = vmatprep.mubr.msk.f32.mxu1 %vm170_vm1, %v2736_v41 }
0x138b   :  { %3513 = vmatmul.mubr.msk.f32.vlgmr.msra.gmra.mxu1 %vm170_vm1, %v3509_v40 }
0x138c   :  { %3527 = vmatpush3.msra.mxu1 %v3996_v56 }
0x138d   :  { %3528 = vmatprep.subr.mxu1 %v4001_v57 }
0x138e   :  { %3529 = vmatpush3.msra.mxu1 %v4001_v57 }
0x138f   :  { %3530 = vmatprep.subr.mxu1 %v4008_v58 }
0x1390   :  { %3531 = vmatpush3.msra.mxu1 %v4008_v58 }
0x1391   :  { %3532 = vmatprep.subr.mxu1 %v4015_v59 }
0x1392   :  { %3533 = vmatpush3.msra.mxu1 %v4015_v59 }
0x1393   :  { %3534 = vmatprep.subr.mxu1 %v4067_v0 }
0x1394   :  { %3535 = vmatpush3.msra.mxu1 %v4067_v0 }
0x1395   :  { %3536 = vmatprep.subr.mxu1 %v4074_v1 }
0x1396   :  { %3537 = vmatpush3.msra.mxu1 %v4074_v1 }
0x1397   :  { %3538 = vmatprep.subr.mxu1 %v4081_v3 }
0x1398   :  { %3539 = vmatpush3.msra.mxu1 %v4081_v3 }
0x1399   :  { %3540 = vmatprep.subr.mxu1 %v4087_v4 }
0x139a   :  { %3541 = vmatpush3.msra.mxu1 %v4087_v4  ;;  %v3120_v4 = vld [vmem:[%s4357_s10] ss:$0 sm:$0xff] }
0x139b   :  { %v1545_v45 = vadd.f32 %v4155_v26, %v3120_v4 }
0x139d   :  { %v1549_v50 = vadd.f32 %v1545_v45, %v4037_v22 }
0x139f   :  { %v1553_v5 = vsel %vm1330_vm5, %v1549_v50, 0.0 }
0x144b   :  { %v3514_v10 = vpop.f32.mrf.mxu1 }
0x144c   :  { %v2827_v56 = vadd.f32 %v3514_v10, %v2538_v11 }
0x144d   :  { %v2817_v57 = vpop.f32.mrf.mxu1 }
0x144e   :  { %v2829_v58 = vadd.f32 %v3954_v35, %v2827_v56  ;;  %v2826_v59 = vadd.f32 %v2817_v57, %v2537_v29 }
0x1450   :  { %v2828_v0 = vadd.f32 %v3954_v35, %v2826_v59  ;;  %v2831_v18 = vadd.f32 %v4058_v24, %v2829_v58  ;;  %v1540_v24 = vadd.f32 %v3120_v4, %v4157_v28 }
0x1452   :  { %v2835_v1 = vsel %vm1330_vm5, %v2831_v18, 0.0  ;;  %v2830_v20 = vadd.f32 %v4042_v23, %v2828_v0  ;;  %v1548_v52 = vadd.f32 %v1540_v24, %v4034_v21 }
0x1453   :  { %2836 = vadd.xlane.f32.xlu0 %v2835_v1 }
0x1454   :  { %v2832_v3 = vsel %vm82_vm0, %v2830_v20, 0.0  ;;  %v1550_v26 = vsel %vm82_vm0, %v1548_v52, 0.0 }
0x1455   :  { %2833 = vadd.xlane.f32.xlu1 %v2832_v3 }
0x14dc   :  { %v2837_v42 = vpop.xlane.xlu0 %2836 }
0x14dd   :  { %v2839_v43 = vmul.f32 0.03125, %v2837_v42 }
0x14de   :  { %v2834_v44 = vpop.xlane.xlu1 %2833 }
0x14df   :  { %v2841_v35 = vsub.f32 %v2831_v18, %v2839_v43  ;;  %v2838_v46 = vmul.f32 0.03125, %v2834_v44 }
0x14e1   :  { %v2840_v47 = vsub.f32 %v2830_v20, %v2838_v46  ;;  %v2843_v48 = vmul.f32 %v2841_v35, %v2841_v35 }
0x14e3   :  { %v2847_v23 = vsel %vm1330_vm5, %v2843_v48, 0.0  ;;  %v2842_v49 = vmul.f32 %v2840_v47, %v2840_v47 }
0x14e4   :  { %2848 = vadd.xlane.f32.xlu0 %v2847_v23 }
0x14e5   :  { %v2844_v51 = vsel %vm82_vm0, %v2842_v49, 0.0  ;;  %v3124_v49 = vld [vmem:[%s4359_s12] ss:$0 sm:$0xff] }
0x14e6   :  { %2845 = vadd.xlane.f32.xlu1 %v2844_v51 }
0x14e8   :  { %1554 = vadd.xlane.f32.xlu0 %v1553_v5 }
0x14ea   :  { %1551 = vadd.xlane.f32.xlu1 %v1550_v26 }
0x156d   :  { %v2849_v28 = vpop.xlane.xlu0 %2848 }
0x156e   :  { %v2851_v60 = vmul.f32 0.03125, %v2849_v28 }
0x156f   :  { %v2846_v62 = vpop.xlane.xlu1 %2845 }
0x1570   :  { %v2853_v63 = vadd.f32 1e-05, %v2851_v60  ;;  %v2850_v8 = vmul.f32 0.03125, %v2846_v62 }
0x1572   :  { %3624 = vrsqrt.f32 %v2853_v63  ;;  %v2852_v7 = vadd.f32 1e-05, %v2850_v8 }
0x1573   :  { %v1552_v33 = vpop.xlane.xlu1 %1551 }
0x1574   :  { %3626 = vrsqrt.f32 %v2852_v7 }
0x157f   :  { %v3625_v22 = vpop.eup %3624 }
0x1580   :  { %v2857_v12 = vmul.f32 %v3625_v22, %v2841_v35 }
0x1581   :  { %v3627_v36 = vpop.eup %3626 }
0x1582   :  { %v2856_v13 = vmul.f32 %v3627_v36, %v2840_v47  ;;  %v2859_v21 = vmul.f32 %v4024_v15, %v2857_v12  ;;  %v3123_v47 = vld [vmem:[%s4358_s11] ss:$0 sm:$0xff] }
0x1584   :  { %v2858_v14 = vmul.f32 %v4024_v15, %v2856_v13  ;;  %v2861_v16 = vadd.f32 %v4030_v19, %v2859_v21  ;;  %v1555_v15 = vpop.xlane.xlu0 %1554 }
0x1585   :  { %v1557_v53 = vmul.f32 0.03125, %v1555_v15 }
0x1586   :  { %v2860_v9 = vadd.f32 %v4030_v19, %v2858_v14  ;;  %v1556_v19 = vmul.f32 0.03125, %v1552_v33 }
0x1587   :  { %v1559_v34 = vsub.f32 %v1549_v50, %v1557_v53 }
0x1588   :  { %3523 = vmatprep.mubr.msk.f32.mxu0 %vm82_vm0, %v2860_v9  ;;  %v1558_v37 = vsub.f32 %v1548_v52, %v1556_v19 }
0x1589   :  { %3524 = vmatmul.mubr.msk.f32.vlgmr.msra.gmra.mxu0 %vm82_vm0, %v2861_v16  ;;  %v1561_v6 = vmul.f32 %v1559_v34, %v1559_v34 }
0x158a   :  { %v1560_v40 = vmul.f32 %v1558_v37, %v1558_v37 }
0x158b   :  { %v1565_v41 = vsel %vm1330_vm5, %v1561_v6, 0.0 }
0x158c   :  { %v1562_v10 = vsel %vm82_vm0, %v1560_v40, 0.0 }
0x1649   :  { %v3525_v17 = vpop.f32.mrf.mxu0 }
0x164a   :  { %v2940_v30 = vadd.f32 %v3525_v17, %v4095_v25 }
0x164b   :  { %v2934_v31 = vpop.f32.mrf.mxu0 }
0x164c   :  { %v2935_v32 = vadd.f32 %v4095_v25, %v2934_v31  ;;  %v2944_v2 = vmax.f32 %v2940_v30, 0.0 }
0x164e   :  { %v2943_v61 = vmax.f32 %v2935_v32, 0.0 }
0x1650   :  { %3542 = vmatprep.mubr.msk.f32.mxu1 %vm1466_vm6, %v2943_v61 }
0x1651   :  { %3543 = vmatmul.mubr.msk.f32.vlgmr.msra.gmra.mxu1 %vm1466_vm6, %v2944_v2 }
0x1711   :  { %v3544_v54 = vpop.f32.mrf.mxu1 }
0x1712   :  { %v3023_v38 = vadd.f32 %v3544_v54, %v3120_v4 }
0x1713   :  { %v3017_v55 = vpop.f32.mrf.mxu1 }
0x1714   :  { %v3018_v39 = vadd.f32 %v3120_v4, %v3017_v55  ;;  %v3027_v27 = vadd.f32 %v3023_v38, %v2861_v16 }
0x1716   :  { %v3031_v11 = vsel %vm1330_vm5, %v3027_v27, 0.0  ;;  %v3026_v25 = vadd.f32 %v3018_v39, %v2860_v9 }
0x1717   :  { %3032 = vadd.xlane.f32.xlu0 %v3031_v11 }
0x1718   :  { %v3028_v29 = vsel %vm82_vm0, %v3026_v25, 0.0 }
0x1719   :  { %3029 = vadd.xlane.f32.xlu1 %v3028_v29 }
0x171b   :  { %1566 = vadd.xlane.f32.xlu0 %v1565_v41 }
0x171d   :  { %1563 = vadd.xlane.f32.xlu1 %v1562_v10 }
0x17a0   :  { %v3033_v56 = vpop.xlane.xlu0 %3032 }
0x17a1   :  { %v3035_v57 = vmul.f32 0.03125, %v3033_v56 }
0x17a2   :  { %v3030_v58 = vpop.xlane.xlu1 %3029 }
0x17a3   :  { %v3037_v59 = vsub.f32 %v3027_v27, %v3035_v57  ;;  %v3034_v0 = vmul.f32 0.03125, %v3030_v58 }
0x17a4   :  { %v1567_v18 = vpop.xlane.xlu0 %1566 }
0x17a5   :  { %v3036_v1 = vsub.f32 %v3026_v25, %v3034_v0  ;;  %v1569_v20 = vmul.f32 0.03125, %v1567_v18  ;;  %v3039_v3 = vmul.f32 %v3037_v59, %v3037_v59 }
0x17a6   :  { %v1564_v4 = vpop.xlane.xlu1 %1563 }
0x17a7   :  { %v1571_v42 = vadd.f32 1e-05, %v1569_v20  ;;  %v1568_v43 = vmul.f32 0.03125, %v1564_v4  ;;  %v3043_v44 = vsel %vm1330_vm5, %v3039_v3, 0.0  ;;  %v3038_v45 = vmul.f32 %v3036_v1, %v3036_v1 }
0x17a8   :  { %3044 = vadd.xlane.f32.xlu0 %v3043_v44 }
0x17a9   :  { %3628 = vrsqrt.f32 %v1571_v42  ;;  %v1570_v35 = vadd.f32 1e-05, %v1568_v43  ;;  %v3040_v46 = vsel %vm82_vm0, %v3038_v45, 0.0 }
0x17aa   :  { %3041 = vadd.xlane.f32.xlu1 %v3040_v46 }
0x17ab   :  { %3630 = vrsqrt.f32 %v1570_v35 }
0x17b6   :  { %v3629_v24 = vpop.eup %3628 }
0x17b7   :  { %v1575_v48 = vmul.f32 %v3629_v24, %v1559_v34 }
0x17b8   :  { %v3631_v23 = vpop.eup %3630 }
0x17b9   :  { %v1583_v50 = vmul.f32 %v3123_v47, %v1575_v48  ;;  %v1574_v51 = vmul.f32 %v3631_v23, %v1558_v37 }
0x17bb   :  { %v1591_v52 = vadd.f32 %v3124_v49, %v1583_v50  ;;  %v1582_v5 = vmul.f32 %v3123_v47, %v1574_v51 }
0x17bd   :  { %1593 = vst.msk [vmem:[%s4360_s13 + $0x8] sm:$0x1] %vm1330_vm5, %v1591_v52  ;;  %v1590_v26 = vadd.f32 %v3124_v49, %v1582_v5 }
0x17bf   :  { %1592 = vst.msk [vmem:[%s4360_s13] sm:$0xff] %vm82_vm0, %v1590_v26 }
0x1831   :  { %v3045_v28 = vpop.xlane.xlu0 %3044 }
0x1832   :  { %v3047_v60 = vmul.f32 0.03125, %v3045_v28 }
0x1833   :  { %v3042_v62 = vpop.xlane.xlu1 %3041 }
0x1834   :  { %v3049_v63 = vadd.f32 1e-05, %v3047_v60  ;;  %v3046_v8 = vmul.f32 0.03125, %v3042_v62 }
0x1836   :  { %3632 = vrsqrt.f32 %v3049_v63  ;;  %v3048_v7 = vadd.f32 1e-05, %v3046_v8 }
0x1838   :  { %3634 = vrsqrt.f32 %v3048_v7 }
0x1843   :  { %v3633_v22 = vpop.eup %3632 }
0x1844   :  { %v3053_v12 = vmul.f32 %v3633_v22, %v3037_v59 }
0x1845   :  { %v3635_v36 = vpop.eup %3634 }
0x1846   :  { %v3055_v13 = vmul.f32 %v3123_v47, %v3053_v12  ;;  %v3052_v21 = vmul.f32 %v3635_v36, %v3036_v1 }
0x1848   :  { %v3057_v14 = vadd.f32 %v3124_v49, %v3055_v13  ;;  %v3054_v9 = vmul.f32 %v3123_v47, %v3052_v21 }
0x184a   :  { %3178 = vst.msk [vmem:[%s4360_s13 + $0x18] sm:$0x1] %vm1330_vm5, %v3057_v14  ;;  %v3056_v16 = vadd.f32 %v3124_v49, %v3054_v9 }
0x184c   :  { %3177 = vst.msk [vmem:[%s4360_s13 + $0x10] sm:$0xff] %vm82_vm0, %v3056_v16 }

</bundles_post_ra>
